<compile_context>
chip_gen: v6e
topology: v6e:2x2x1
jax: 0.10.0
libtpu: 0.0.40
codegen_flags: <defaults>
</compile_context>

<pallas_src>
import functools

import jax
import jax.numpy as jnp
from jax.experimental import pallas as pl
from jax.experimental.pallas import tpu as pltpu


def _round_up(x, m):
    return ((x + m - 1) // m) * m


@functools.lru_cache(maxsize=1)
def _tpu_defaults():
    """(vmem_capacity_bytes, wide_mxu) for the local TPU generation."""
    vmem_cap = None
    wide_mxu = False
    try:
        info = pltpu.get_tpu_info()
        vmem_cap = getattr(info, "vmem_capacity_bytes", None)
    except Exception:
        pass
    try:
        kind = jax.devices()[0].device_kind.lower()
        wide_mxu = ("v6" in kind) or ("v7" in kind)          # 256-wide MXU
        if vmem_cap is None:
            vmem_cap = (64 if "v7" in kind else 128) * 1024 * 1024
    except Exception:
        pass
    if not vmem_cap:
        vmem_cap = 64 * 1024 * 1024                          # conservative default
    return int(vmem_cap), bool(wide_mxu)


# ----------------------------------------------------------------------------
# Kernel: pack k*k shifted tap slices into a fused-K LHS scratch, one MXU dot.
# ----------------------------------------------------------------------------
def _conv_fused_kernel(xc_ref, xn_ref, w_ref, b_ref, o_ref, lhs_ref, *, k, s, Wq, Cin):
    # xc_ref:  (tm, s*s*Cin)    bf16 -- rows [i*tm, (i+1)*tm) of phase-packed input
    # xn_ref:  (tm, s*s*Cin)    bf16 -- rows of the NEXT tile (halo source)
    # w_ref:   (k*k*Cin, Cout_p) bf16 -- fused per-patch weights (grid-resident)
    # b_ref:   (1, Cout_p)      f32
    # o_ref:   (tm, Cout_p)     f32
    # lhs_ref: (tm, k*k*Cin)    bf16 VMEM scratch -- packed LHS for ONE fused dot
    tm = o_ref.shape[0]
    for kh in range(k):                         # static unroll over taps
        qh, rh = divmod(kh, s)
        for kw in range(k):
            qw, rw = divmod(kw, s)
            off = qh * Wq + qw                  # static row shift in flattened P
            col0 = (rh * s + rw) * Cin          # source phase channels
            dcol = (kh * k + kw) * Cin          # destination fused-K columns
            if off == 0:
                lhs_ref[:, dcol:dcol + Cin] = xc_ref[:, col0:col0 + Cin]
            else:
                lhs_ref[0:tm - off, dcol:dcol + Cin] = xc_ref[off:tm, col0:col0 + Cin]
                lhs_ref[tm - off:tm, dcol:dcol + Cin] = xn_ref[0:off, col0:col0 + Cin]
    # Single big contraction (K = k*k*Cin); f32 accumulation stays inside the
    # MXU path -- no repeated accumulator load/store passes through VMEM.
    acc = jnp.dot(lhs_ref[...], w_ref[...], preferred_element_type=jnp.float32)
    o_ref[...] = (acc + b_ref[...]).astype(o_ref.dtype)


def _pick_tm(Kch, Kfull, Cout_p, out_bytes, vmem_budget, w_bufs):
    """Largest M tile (multiple of 16) that fits the per-generation VMEM budget."""
    lane = 128
    kch_l = _round_up(Kch, lane)                 # VMEM lane padding of input blocks
    kfull_l = _round_up(Kfull, lane)             # packed-LHS scratch lane padding
    fixed = (w_bufs * _round_up(Kfull, 16) * Cout_p * 2     # fused weights
             + w_bufs * 8 * Cout_p * 4                      # bias row
             + 2 * 1024 * 1024)                             # Mosaic internal slack
    per_row = (2 * kch_l * 2            # current-tile blocks (double-buffered, bf16)
               + 2 * kch_l * 2          # next-tile / halo blocks
               + 2 * Cout_p * out_bytes  # output blocks (double-buffered)
               + kfull_l * 2)           # packed-LHS scratch
    avail = max(vmem_budget - fixed, per_row * 64)
    return max(64, min((avail // per_row) // 16 * 16, 2048))


# ----------------------------------------------------------------------------
# ConvLayer forward: reflection pad + Conv2d(stride, no extra conv padding).
# ----------------------------------------------------------------------------
@functools.partial(
    jax.jit, static_argnames=("kernel_size", "stride", "single_buffer_resident"))
def _conv_forward(x, weight, bias, *, kernel_size, stride, single_buffer_resident):
    N, Cin, H, W = x.shape
    Cout = weight.shape[0]
    k, s = kernel_size, stride
    pad = k // 2

    vmem_cap, wide_mxu = _tpu_defaults()
    vmem_budget = min((vmem_cap * 3) // 4, 100 * 1024 * 1024)

    # --- reflection pad (ReflectionPad2d), NCHW -> NHWC, cast to bf16 --------
    xp = jnp.pad(x, ((0, 0), (0, 0), (pad, pad), (pad, pad)), mode="reflect")
    xp = jnp.transpose(xp, (0, 2, 3, 1)).astype(jnp.bfloat16)     # (N, Hp, Wp, Cin)
    Hp, Wp = H + 2 * pad, W + 2 * pad
    Ho = (Hp - k) // s + 1
    Wo = (Wp - k) // s + 1

    # --- fold the stride: space-to-depth, phases merged into the lane axis ---
    # xp[n, ho*s+kh, wo*s+kw, c] =
    #   xflat[(n*Hq + ho + kh//s)*Wq + wo + kw//s, ((kh%s)*s + kw%s)*Cin + c]
    Qh = (k - 1) // s
    Qw = (k - 1) // s
    Hq = Ho + Qh
    Wq = _round_up(Wo + Qw, 8)          # sublane-align the qh*Wq row shifts
    H2, W2 = s * Hq, s * Wq
    xp = xp[:, :min(Hp, H2), :min(Wp, W2), :]
    xp = jnp.pad(xp, ((0, 0), (0, H2 - xp.shape[1]), (0, W2 - xp.shape[2]), (0, 0)))
    Kch = s * s * Cin
    xflat = (xp.reshape(N, Hq, s, Wq, s, Cin)
               .transpose(0, 1, 3, 2, 4, 5)
               .reshape(N * Hq * Wq, Kch))
    P = N * Hq * Wq

    # --- fused weights: (k*k*Cin, Cout_p), lane-dense Cout -------------------
    Kfull = k * k * Cin
    lane_block = 256 if (wide_mxu and Cout > 128) else 128      # v6e/v7x wide MXU
    Cout_p = _round_up(Cout, lane_block)
    w_fused = jnp.transpose(weight, (2, 3, 1, 0)).reshape(Kfull, Cout)
    w_fused = jnp.pad(w_fused, ((0, 0), (0, Cout_p - Cout))).astype(jnp.bfloat16)
    bias_row = jnp.pad(bias, (0, Cout_p - Cout)).reshape(1, Cout_p).astype(jnp.float32)

    # --- M tiling: sized from this generation's VMEM, >=2 tiles if possible --
    max_off = Qh * Wq + Qw              # largest per-tap row shift (must fit a tile)
    out_bytes = 4                       # f32 output (module semantics)
    w_bufs = 1 if single_buffer_resident else 2
    tm = _pick_tm(Kch, Kfull, Cout_p, out_bytes, vmem_budget, w_bufs)
    tm = min(tm, _round_up(P, 16))
    hard_lo = _round_up(max(max_off + 1, 16), 16)
    half = _round_up(pl.cdiv(P, 2), 16)
    if half >= hard_lo:                 # split so both v7x TensorCores get work
        tm = min(tm, half)
    tm = max(tm, hard_lo)
    n_tiles = pl.cdiv(P, tm)
    P_pad = (n_tiles + 1) * tm          # +1 zero tile: halo source of the last tile
    xflat = jnp.pad(xflat, ((0, P_pad - P), (0, 0)))

    def _resident_spec(shape, imap):
        # Grid-resident operands (constant index map): single-buffer to halve VMEM.
        if single_buffer_resident:
            return pl.BlockSpec(shape, imap, pipeline_mode=pl.Buffered(1))
        return pl.BlockSpec(shape, imap)

    kernel = functools.partial(_conv_fused_kernel, k=k, s=s, Wq=Wq, Cin=Cin)
    cost = pl.CostEstimate(
        flops=2 * n_tiles * tm * Kfull * Cout_p,
        transcendentals=0,
        bytes_accessed=int(2 * xflat.size * 2 + w_fused.size * 2
                           + bias_row.size * 4 + n_tiles * tm * Cout_p * out_bytes),
    )

    out_flat = pl.pallas_call(
        kernel,
        out_shape=jax.ShapeDtypeStruct((n_tiles * tm, Cout_p), jnp.float32),
        grid_spec=pltpu.PrefetchScalarGridSpec(
            num_scalar_prefetch=0,
            grid=(n_tiles,),
            in_specs=[
                pl.BlockSpec((tm, Kch), lambda i: (i, 0)),        # current tile
                pl.BlockSpec((tm, Kch), lambda i: (i + 1, 0)),    # next tile (halo)
                _resident_spec((Kfull, Cout_p), lambda i: (0, 0)),
                _resident_spec((1, Cout_p), lambda i: (0, 0)),
            ],
            out_specs=pl.BlockSpec((tm, Cout_p), lambda i: (i, 0)),
            scratch_shapes=[pltpu.VMEM((tm, Kfull), jnp.bfloat16)],
        ),
        compiler_params=pltpu.CompilerParams(
            dimension_semantics=("parallel",),
            vmem_limit_bytes=int(vmem_budget),
        ),
        cost_estimate=cost,
    )(xflat, xflat, w_fused, bias_row)

    # --- un-flatten: keep the valid (Ho, Wo, Cout) region, back to NCHW ------
    out = out_flat[:P].reshape(N, Hq, Wq, Cout_p)[:, :Ho, :Wo, :Cout]
    return jnp.transpose(out, (0, 3, 1, 2))


def conv_layer_forward(x, weight, bias, *, kernel_size, stride):
    """ConvLayer.forward: ReflectionPad2d(k//2) then Conv2d(k, stride)."""
    if hasattr(pl, "Buffered"):
        try:
            return _conv_forward(x, weight, bias, kernel_size=kernel_size,
                                 stride=stride, single_buffer_resident=True)
        except Exception:
            pass  # pipeline_mode=Buffered(1) unsupported here -> default buffering
    return _conv_forward(x, weight, bias, kernel_size=kernel_size,
                         stride=stride, single_buffer_resident=False)


if __name__ == "__main__":
    # Small deterministic problem: N=2, Cin=4, H=W=16, Cout=8, k=3, stride=2.
    key = jax.random.PRNGKey(0)
    kx, kw_, kb = jax.random.split(key, 3)

    N, Cin, H, W = 2, 4, 16, 16
    Cout, k, stride = 8, 3, 2

    x = jax.random.normal(kx, (N, Cin, H, W), dtype=jnp.float32)
    fan_in = Cin * k * k
    bound = 1.0 / (fan_in ** 0.5)
    weight = jax.random.uniform(kw_, (Cout, Cin, k, k), jnp.float32, -bound, bound)
    bias = jax.random.uniform(kb, (Cout,), jnp.float32, -bound, bound)

    out = conv_layer_forward(x, weight, bias, kernel_size=k, stride=stride)
    out = jax.block_until_ready(out)

    # Reference: same reflection pad + strided conv, inputs rounded to bf16
    # exactly as the kernel does (the kernel accumulates in f32).
    xp_ref = jnp.pad(x, ((0, 0), (0, 0), (1, 1), (1, 1)), mode="reflect")
    xp_ref = xp_ref.astype(jnp.bfloat16).astype(jnp.float32)
    w_ref = weight.astype(jnp.bfloat16).astype(jnp.float32)
    ref = jax.lax.conv_general_dilated(
        xp_ref, w_ref, window_strides=(stride, stride), padding="VALID",
        dimension_numbers=("NCHW", "OIHW", "NCHW"),
        precision=jax.lax.Precision.HIGHEST,
    ) + bias.reshape(1, Cout, 1, 1)

    assert out.shape == (N, Cout, 8, 8)
    assert bool(jnp.allclose(out, ref, atol=2e-2, rtol=2e-2))

    print("KERNEL_OK")
</pallas_src>

<mosaic_0001>
module attributes {stable_mosaic.version = 11 : i64} {
  func.func @_conv_fused_kernel(%arg0: i32, %arg1: memref<144x16xbf16, #tpu.memory_space<vmem>>, %arg2: memref<144x16xbf16, #tpu.memory_space<vmem>>, %arg3: memref<36x128xbf16, #tpu.memory_space<vmem>>, %arg4: memref<1x128xf32, #tpu.memory_space<vmem>>, %arg5: memref<144x128xf32, #tpu.memory_space<vmem>>, %arg6: memref<144x36xbf16, #tpu.memory_space<vmem>>) attributes {dimension_semantics = [#tpu.dimension_semantics<parallel>], iteration_bounds = array<i64: 2>, scalar_prefetch = 0 : i64, scratch_operands = 1 : i64, tpu.core_type = #tpu.core_type<tc>, window_params = [{transform_indices = @transform_0, window_bounds = array<i64: 144, 16>}, {transform_indices = @transform_1, window_bounds = array<i64: 144, 16>}, {pipeline_mode = #tpu.pipeline_mode<synchronous>, transform_indices = @transform_2, window_bounds = array<i64: 36, 128>}, {pipeline_mode = #tpu.pipeline_mode<synchronous>, transform_indices = @transform_3, window_bounds = array<i64: 1, 128>}, {transform_indices = @transform_4, window_bounds = array<i64: 144, 128>}]} {
    %c0 = arith.constant 0 : index
    %c0_0 = arith.constant 0 : index
    %0 = vector.load %arg1[%c0, %c0_0] : memref<144x16xbf16, #tpu.memory_space<vmem>>, vector<144x4xbf16>
    %c0_1 = arith.constant 0 : index
    %c0_2 = arith.constant 0 : index
    %1 = vector.load %arg6[%c0_1, %c0_2] : memref<144x36xbf16, #tpu.memory_space<vmem>>, vector<144x4xbf16>
    tpu.vector_store %arg6[%c0_1, %c0_2], %0 {strides = array<i32>} : memref<144x36xbf16, #tpu.memory_space<vmem>>, vector<144x4xbf16>,
    %c0_3 = arith.constant 0 : index
    %c4 = arith.constant 4 : index
    %2 = vector.load %arg1[%c0_3, %c4] : memref<144x16xbf16, #tpu.memory_space<vmem>>, vector<144x4xbf16>
    %c0_4 = arith.constant 0 : index
    %c4_5 = arith.constant 4 : index
    %3 = vector.load %arg6[%c0_4, %c4_5] : memref<144x36xbf16, #tpu.memory_space<vmem>>, vector<144x4xbf16>
    tpu.vector_store %arg6[%c0_4, %c4_5], %2 {strides = array<i32>} : memref<144x36xbf16, #tpu.memory_space<vmem>>, vector<144x4xbf16>,
    %c1 = arith.constant 1 : index
    %c0_6 = arith.constant 0 : index
    %4 = vector.load %arg1[%c1, %c0_6] : memref<144x16xbf16, #tpu.memory_space<vmem>>, vector<143x4xbf16>
    %c0_7 = arith.constant 0 : index
    %c8 = arith.constant 8 : index
    %5 = vector.load %arg6[%c0_7, %c8] : memref<144x36xbf16, #tpu.memory_space<vmem>>, vector<143x4xbf16>
    tpu.vector_store %arg6[%c0_7, %c8], %4 {strides = array<i32>} : memref<144x36xbf16, #tpu.memory_space<vmem>>, vector<143x4xbf16>,
    %c0_8 = arith.constant 0 : index
    %c0_9 = arith.constant 0 : index
    %6 = vector.load %arg2[%c0_8, %c0_9] : memref<144x16xbf16, #tpu.memory_space<vmem>>, vector<1x4xbf16>
    %c143 = arith.constant 143 : index
    %c8_10 = arith.constant 8 : index
    %7 = vector.load %arg6[%c143, %c8_10] : memref<144x36xbf16, #tpu.memory_space<vmem>>, vector<1x4xbf16>
    tpu.vector_store %arg6[%c143, %c8_10], %6 {strides = array<i32>} : memref<144x36xbf16, #tpu.memory_space<vmem>>, vector<1x4xbf16>,
    %c0_11 = arith.constant 0 : index
    %c8_12 = arith.constant 8 : index
    %8 = vector.load %arg1[%c0_11, %c8_12] : memref<144x16xbf16, #tpu.memory_space<vmem>>, vector<144x4xbf16>
    %c0_13 = arith.constant 0 : index
    %c12 = arith.constant 12 : index
    %9 = vector.load %arg6[%c0_13, %c12] : memref<144x36xbf16, #tpu.memory_space<vmem>>, vector<144x4xbf16>
    tpu.vector_store %arg6[%c0_13, %c12], %8 {strides = array<i32>} : memref<144x36xbf16, #tpu.memory_space<vmem>>, vector<144x4xbf16>,
    %c0_14 = arith.constant 0 : index
    %c12_15 = arith.constant 12 : index
    %10 = vector.load %arg1[%c0_14, %c12_15] : memref<144x16xbf16, #tpu.memory_space<vmem>>, vector<144x4xbf16>
    %c0_16 = arith.constant 0 : index
    %c16 = arith.constant 16 : index
    %11 = vector.load %arg6[%c0_16, %c16] : memref<144x36xbf16, #tpu.memory_space<vmem>>, vector<144x4xbf16>
    tpu.vector_store %arg6[%c0_16, %c16], %10 {strides = array<i32>} : memref<144x36xbf16, #tpu.memory_space<vmem>>, vector<144x4xbf16>,
    %c1_17 = arith.constant 1 : index
    %c8_18 = arith.constant 8 : index
    %12 = vector.load %arg1[%c1_17, %c8_18] : memref<144x16xbf16, #tpu.memory_space<vmem>>, vector<143x4xbf16>
    %c0_19 = arith.constant 0 : index
    %c20 = arith.constant 20 : index
    %13 = vector.load %arg6[%c0_19, %c20] : memref<144x36xbf16, #tpu.memory_space<vmem>>, vector<143x4xbf16>
    tpu.vector_store %arg6[%c0_19, %c20], %12 {strides = array<i32>} : memref<144x36xbf16, #tpu.memory_space<vmem>>, vector<143x4xbf16>,
    %c0_20 = arith.constant 0 : index
    %c8_21 = arith.constant 8 : index
    %14 = vector.load %arg2[%c0_20, %c8_21] : memref<144x16xbf16, #tpu.memory_space<vmem>>, vector<1x4xbf16>
    %c143_22 = arith.constant 143 : index
    %c20_23 = arith.constant 20 : index
    %15 = vector.load %arg6[%c143_22, %c20_23] : memref<144x36xbf16, #tpu.memory_space<vmem>>, vector<1x4xbf16>
    tpu.vector_store %arg6[%c143_22, %c20_23], %14 {strides = array<i32>} : memref<144x36xbf16, #tpu.memory_space<vmem>>, vector<1x4xbf16>,
    %c16_24 = arith.constant 16 : index
    %c0_25 = arith.constant 0 : index
    %16 = vector.load %arg1[%c16_24, %c0_25] : memref<144x16xbf16, #tpu.memory_space<vmem>>, vector<128x4xbf16>
    %c0_26 = arith.constant 0 : index
    %c24 = arith.constant 24 : index
    %17 = vector.load %arg6[%c0_26, %c24] : memref<144x36xbf16, #tpu.memory_space<vmem>>, vector<128x4xbf16>
    tpu.vector_store %arg6[%c0_26, %c24], %16 {strides = array<i32>} : memref<144x36xbf16, #tpu.memory_space<vmem>>, vector<128x4xbf16>,
    %c0_27 = arith.constant 0 : index
    %c0_28 = arith.constant 0 : index
    %18 = vector.load %arg2[%c0_27, %c0_28] : memref<144x16xbf16, #tpu.memory_space<vmem>>, vector<16x4xbf16>
    %c128 = arith.constant 128 : index
    %c24_29 = arith.constant 24 : index
    %19 = vector.load %arg6[%c128, %c24_29] : memref<144x36xbf16, #tpu.memory_space<vmem>>, vector<16x4xbf16>
    tpu.vector_store %arg6[%c128, %c24_29], %18 {strides = array<i32>} : memref<144x36xbf16, #tpu.memory_space<vmem>>, vector<16x4xbf16>,
    %c16_30 = arith.constant 16 : index
    %c4_31 = arith.constant 4 : index
    %20 = vector.load %arg1[%c16_30, %c4_31] : memref<144x16xbf16, #tpu.memory_space<vmem>>, vector<128x4xbf16>
    %c0_32 = arith.constant 0 : index
    %c28 = arith.constant 28 : index
    %21 = vector.load %arg6[%c0_32, %c28] : memref<144x36xbf16, #tpu.memory_space<vmem>>, vector<128x4xbf16>
    tpu.vector_store %arg6[%c0_32, %c28], %20 {strides = array<i32>} : memref<144x36xbf16, #tpu.memory_space<vmem>>, vector<128x4xbf16>,
    %c0_33 = arith.constant 0 : index
    %c4_34 = arith.constant 4 : index
    %22 = vector.load %arg2[%c0_33, %c4_34] : memref<144x16xbf16, #tpu.memory_space<vmem>>, vector<16x4xbf16>
    %c128_35 = arith.constant 128 : index
    %c28_36 = arith.constant 28 : index
    %23 = vector.load %arg6[%c128_35, %c28_36] : memref<144x36xbf16, #tpu.memory_space<vmem>>, vector<16x4xbf16>
    tpu.vector_store %arg6[%c128_35, %c28_36], %22 {strides = array<i32>} : memref<144x36xbf16, #tpu.memory_space<vmem>>, vector<16x4xbf16>,
    %c17 = arith.constant 17 : index
    %c0_37 = arith.constant 0 : index
    %24 = vector.load %arg1[%c17, %c0_37] : memref<144x16xbf16, #tpu.memory_space<vmem>>, vector<127x4xbf16>
    %c0_38 = arith.constant 0 : index
    %c32 = arith.constant 32 : index
    %25 = vector.load %arg6[%c0_38, %c32] : memref<144x36xbf16, #tpu.memory_space<vmem>>, vector<127x4xbf16>
    tpu.vector_store %arg6[%c0_38, %c32], %24 {strides = array<i32>} : memref<144x36xbf16, #tpu.memory_space<vmem>>, vector<127x4xbf16>,
    %c0_39 = arith.constant 0 : index
    %c0_40 = arith.constant 0 : index
    %26 = vector.load %arg2[%c0_39, %c0_40] : memref<144x16xbf16, #tpu.memory_space<vmem>>, vector<17x4xbf16>
    %c127 = arith.constant 127 : index
    %c32_41 = arith.constant 32 : index
    %27 = vector.load %arg6[%c127, %c32_41] : memref<144x36xbf16, #tpu.memory_space<vmem>>, vector<17x4xbf16>
    tpu.vector_store %arg6[%c127, %c32_41], %26 {strides = array<i32>} : memref<144x36xbf16, #tpu.memory_space<vmem>>, vector<17x4xbf16>,
    %c0_42 = arith.constant 0 : index
    %c0_43 = arith.constant 0 : index
    %28 = vector.load %arg6[%c0_42, %c0_43] : memref<144x36xbf16, #tpu.memory_space<vmem>>, vector<144x36xbf16>
    %c0_44 = arith.constant 0 : index
    %c0_45 = arith.constant 0 : index
    %29 = vector.load %arg3[%c0_44, %c0_45] : memref<36x128xbf16, #tpu.memory_space<vmem>>, vector<36x128xbf16>
    %cst = arith.constant dense<0.000000e+00> : vector<144x128xf32>
    %30 = tpu.matmul %28, %29, %cst {dimension_numbers = #tpu.dot_dimension_numbers<[1], [0], [0], [1], [0, 0, 1, 1], [], []>} : vector<144x36xbf16>, vector<36x128xbf16>, vector<144x128xf32> -> vector<144x128xf32>
    %c0_46 = arith.constant 0 : index
    %c0_47 = arith.constant 0 : index
    %31 = vector.load %arg4[%c0_46, %c0_47] : memref<1x128xf32, #tpu.memory_space<vmem>>, vector<1x128xf32>
    %32 = vector.broadcast %31 : vector<1x128xf32> to vector<144x128xf32>
    %33 = arith.addf %30, %32 : vector<144x128xf32>
    %c0_48 = arith.constant 0 : index
    %c0_49 = arith.constant 0 : index
    %34 = vector.load %arg5[%c0_48, %c0_49] : memref<144x128xf32, #tpu.memory_space<vmem>>, vector<144x128xf32>
    tpu.vector_store %arg5[%c0_48, %c0_49], %33 {strides = array<i32>} : memref<144x128xf32, #tpu.memory_space<vmem>>, vector<144x128xf32>,
    return
  }
  func.func @transform_0(%arg0: i32) -> (i32, i32) {
    %c0_i32 = arith.constant 0 : i32
    %c0_i32_0 = arith.constant 0 : i32
    return %arg0, %c0_i32 : i32, i32
  }
  func.func @transform_1(%arg0: i32) -> (i32, i32) {
    %c1_i32 = arith.constant 1 : i32
    %0 = arith.addi %arg0, %c1_i32 : i32
    %c0_i32 = arith.constant 0 : i32
    %c0_i32_0 = arith.constant 0 : i32
    return %0, %c0_i32 : i32, i32
  }
  func.func @transform_2(%arg0: i32) -> (i32, i32) {
    %c0_i32 = arith.constant 0 : i32
    %c0_i32_0 = arith.constant 0 : i32
    %c0_i32_1 = arith.constant 0 : i32
    return %c0_i32, %c0_i32_0 : i32, i32
  }
  func.func @transform_3(%arg0: i32) -> (i32, i32) {
    %c0_i32 = arith.constant 0 : i32
    %c0_i32_0 = arith.constant 0 : i32
    %c0_i32_1 = arith.constant 0 : i32
    return %c0_i32, %c0_i32_0 : i32, i32
  }
  func.func @transform_4(%arg0: i32) -> (i32, i32) {
    %c0_i32 = arith.constant 0 : i32
    %c0_i32_0 = arith.constant 0 : i32
    return %arg0, %c0_i32 : i32, i32
  }
}

module attributes {stable_mosaic.version = 11 : i64} {
  func.func @_conv_fused_kernel(%arg0: i32, %arg1: memref<144x16xbf16, #tpu.memory_space<vmem>>, %arg2: memref<144x16xbf16, #tpu.memory_space<vmem>>, %arg3: memref<36x128xbf16, #tpu.memory_space<vmem>>, %arg4: memref<1x128xf32, #tpu.memory_space<vmem>>, %arg5: memref<144x128xf32, #tpu.memory_space<vmem>>, %arg6: memref<144x36xbf16, #tpu.memory_space<vmem>>) attributes {dimension_semantics = [#tpu.dimension_semantics<parallel>], iteration_bounds = array<i64: 2>, scalar_prefetch = 0 : i64, scratch_operands = 1 : i64, tpu.core_type = #tpu.core_type<tc>, window_params = [{transform_indices = @transform_0, window_bounds = array<i64: 144, 16>}, {transform_indices = @transform_1, window_bounds = array<i64: 144, 16>}, {pipeline_mode = #tpu.pipeline_mode<synchronous>, transform_indices = @transform_2, window_bounds = array<i64: 36, 128>}, {pipeline_mode = #tpu.pipeline_mode<synchronous>, transform_indices = @transform_3, window_bounds = array<i64: 1, 128>}, {transform_indices = @transform_4, window_bounds = array<i64: 144, 128>}]} {
    %c0 = arith.constant 0 : index
    %c0_0 = arith.constant 0 : index
    %0 = vector.load %arg1[%c0, %c0_0] : memref<144x16xbf16, #tpu.memory_space<vmem>>, vector<144x4xbf16>
    %c0_1 = arith.constant 0 : index
    %c0_2 = arith.constant 0 : index
    %1 = vector.load %arg6[%c0_1, %c0_2] : memref<144x36xbf16, #tpu.memory_space<vmem>>, vector<144x4xbf16>
    tpu.vector_store %arg6[%c0_1, %c0_2], %0 {strides = array<i32>} : memref<144x36xbf16, #tpu.memory_space<vmem>>, vector<144x4xbf16>,
    %c0_3 = arith.constant 0 : index
    %c4 = arith.constant 4 : index
    %2 = vector.load %arg1[%c0_3, %c4] : memref<144x16xbf16, #tpu.memory_space<vmem>>, vector<144x4xbf16>
    %c0_4 = arith.constant 0 : index
    %c4_5 = arith.constant 4 : index
    %3 = vector.load %arg6[%c0_4, %c4_5] : memref<144x36xbf16, #tpu.memory_space<vmem>>, vector<144x4xbf16>
    tpu.vector_store %arg6[%c0_4, %c4_5], %2 {strides = array<i32>} : memref<144x36xbf16, #tpu.memory_space<vmem>>, vector<144x4xbf16>,
    %c1 = arith.constant 1 : index
    %c0_6 = arith.constant 0 : index
    %4 = vector.load %arg1[%c1, %c0_6] : memref<144x16xbf16, #tpu.memory_space<vmem>>, vector<143x4xbf16>
    %c0_7 = arith.constant 0 : index
    %c8 = arith.constant 8 : index
    %5 = vector.load %arg6[%c0_7, %c8] : memref<144x36xbf16, #tpu.memory_space<vmem>>, vector<143x4xbf16>
    tpu.vector_store %arg6[%c0_7, %c8], %4 {strides = array<i32>} : memref<144x36xbf16, #tpu.memory_space<vmem>>, vector<143x4xbf16>,
    %c0_8 = arith.constant 0 : index
    %c0_9 = arith.constant 0 : index
    %6 = vector.load %arg2[%c0_8, %c0_9] : memref<144x16xbf16, #tpu.memory_space<vmem>>, vector<1x4xbf16>
    %c143 = arith.constant 143 : index
    %c8_10 = arith.constant 8 : index
    %7 = vector.load %arg6[%c143, %c8_10] : memref<144x36xbf16, #tpu.memory_space<vmem>>, vector<1x4xbf16>
    tpu.vector_store %arg6[%c143, %c8_10], %6 {strides = array<i32>} : memref<144x36xbf16, #tpu.memory_space<vmem>>, vector<1x4xbf16>,
    %c0_11 = arith.constant 0 : index
    %c8_12 = arith.constant 8 : index
    %8 = vector.load %arg1[%c0_11, %c8_12] : memref<144x16xbf16, #tpu.memory_space<vmem>>, vector<144x4xbf16>
    %c0_13 = arith.constant 0 : index
    %c12 = arith.constant 12 : index
    %9 = vector.load %arg6[%c0_13, %c12] : memref<144x36xbf16, #tpu.memory_space<vmem>>, vector<144x4xbf16>
    tpu.vector_store %arg6[%c0_13, %c12], %8 {strides = array<i32>} : memref<144x36xbf16, #tpu.memory_space<vmem>>, vector<144x4xbf16>,
    %c0_14 = arith.constant 0 : index
    %c12_15 = arith.constant 12 : index
    %10 = vector.load %arg1[%c0_14, %c12_15] : memref<144x16xbf16, #tpu.memory_space<vmem>>, vector<144x4xbf16>
    %c0_16 = arith.constant 0 : index
    %c16 = arith.constant 16 : index
    %11 = vector.load %arg6[%c0_16, %c16] : memref<144x36xbf16, #tpu.memory_space<vmem>>, vector<144x4xbf16>
    tpu.vector_store %arg6[%c0_16, %c16], %10 {strides = array<i32>} : memref<144x36xbf16, #tpu.memory_space<vmem>>, vector<144x4xbf16>,
    %c1_17 = arith.constant 1 : index
    %c8_18 = arith.constant 8 : index
    %12 = vector.load %arg1[%c1_17, %c8_18] : memref<144x16xbf16, #tpu.memory_space<vmem>>, vector<143x4xbf16>
    %c0_19 = arith.constant 0 : index
    %c20 = arith.constant 20 : index
    %13 = vector.load %arg6[%c0_19, %c20] : memref<144x36xbf16, #tpu.memory_space<vmem>>, vector<143x4xbf16>
    tpu.vector_store %arg6[%c0_19, %c20], %12 {strides = array<i32>} : memref<144x36xbf16, #tpu.memory_space<vmem>>, vector<143x4xbf16>,
    %c0_20 = arith.constant 0 : index
    %c8_21 = arith.constant 8 : index
    %14 = vector.load %arg2[%c0_20, %c8_21] : memref<144x16xbf16, #tpu.memory_space<vmem>>, vector<1x4xbf16>
    %c143_22 = arith.constant 143 : index
    %c20_23 = arith.constant 20 : index
    %15 = vector.load %arg6[%c143_22, %c20_23] : memref<144x36xbf16, #tpu.memory_space<vmem>>, vector<1x4xbf16>
    tpu.vector_store %arg6[%c143_22, %c20_23], %14 {strides = array<i32>} : memref<144x36xbf16, #tpu.memory_space<vmem>>, vector<1x4xbf16>,
    %c16_24 = arith.constant 16 : index
    %c0_25 = arith.constant 0 : index
    %16 = vector.load %arg1[%c16_24, %c0_25] : memref<144x16xbf16, #tpu.memory_space<vmem>>, vector<128x4xbf16>
    %c0_26 = arith.constant 0 : index
    %c24 = arith.constant 24 : index
    %17 = vector.load %arg6[%c0_26, %c24] : memref<144x36xbf16, #tpu.memory_space<vmem>>, vector<128x4xbf16>
    tpu.vector_store %arg6[%c0_26, %c24], %16 {strides = array<i32>} : memref<144x36xbf16, #tpu.memory_space<vmem>>, vector<128x4xbf16>,
    %c0_27 = arith.constant 0 : index
    %c0_28 = arith.constant 0 : index
    %18 = vector.load %arg2[%c0_27, %c0_28] : memref<144x16xbf16, #tpu.memory_space<vmem>>, vector<16x4xbf16>
    %c128 = arith.constant 128 : index
    %c24_29 = arith.constant 24 : index
    %19 = vector.load %arg6[%c128, %c24_29] : memref<144x36xbf16, #tpu.memory_space<vmem>>, vector<16x4xbf16>
    tpu.vector_store %arg6[%c128, %c24_29], %18 {strides = array<i32>} : memref<144x36xbf16, #tpu.memory_space<vmem>>, vector<16x4xbf16>,
    %c16_30 = arith.constant 16 : index
    %c4_31 = arith.constant 4 : index
    %20 = vector.load %arg1[%c16_30, %c4_31] : memref<144x16xbf16, #tpu.memory_space<vmem>>, vector<128x4xbf16>
    %c0_32 = arith.constant 0 : index
    %c28 = arith.constant 28 : index
    %21 = vector.load %arg6[%c0_32, %c28] : memref<144x36xbf16, #tpu.memory_space<vmem>>, vector<128x4xbf16>
    tpu.vector_store %arg6[%c0_32, %c28], %20 {strides = array<i32>} : memref<144x36xbf16, #tpu.memory_space<vmem>>, vector<128x4xbf16>,
    %c0_33 = arith.constant 0 : index
    %c4_34 = arith.constant 4 : index
    %22 = vector.load %arg2[%c0_33, %c4_34] : memref<144x16xbf16, #tpu.memory_space<vmem>>, vector<16x4xbf16>
    %c128_35 = arith.constant 128 : index
    %c28_36 = arith.constant 28 : index
    %23 = vector.load %arg6[%c128_35, %c28_36] : memref<144x36xbf16, #tpu.memory_space<vmem>>, vector<16x4xbf16>
    tpu.vector_store %arg6[%c128_35, %c28_36], %22 {strides = array<i32>} : memref<144x36xbf16, #tpu.memory_space<vmem>>, vector<16x4xbf16>,
    %c17 = arith.constant 17 : index
    %c0_37 = arith.constant 0 : index
    %24 = vector.load %arg1[%c17, %c0_37] : memref<144x16xbf16, #tpu.memory_space<vmem>>, vector<127x4xbf16>
    %c0_38 = arith.constant 0 : index
    %c32 = arith.constant 32 : index
    %25 = vector.load %arg6[%c0_38, %c32] : memref<144x36xbf16, #tpu.memory_space<vmem>>, vector<127x4xbf16>
    tpu.vector_store %arg6[%c0_38, %c32], %24 {strides = array<i32>} : memref<144x36xbf16, #tpu.memory_space<vmem>>, vector<127x4xbf16>,
    %c0_39 = arith.constant 0 : index
    %c0_40 = arith.constant 0 : index
    %26 = vector.load %arg2[%c0_39, %c0_40] : memref<144x16xbf16, #tpu.memory_space<vmem>>, vector<17x4xbf16>
    %c127 = arith.constant 127 : index
    %c32_41 = arith.constant 32 : index
    %27 = vector.load %arg6[%c127, %c32_41] : memref<144x36xbf16, #tpu.memory_space<vmem>>, vector<17x4xbf16>
    tpu.vector_store %arg6[%c127, %c32_41], %26 {strides = array<i32>} : memref<144x36xbf16, #tpu.memory_space<vmem>>, vector<17x4xbf16>,
    %c0_42 = arith.constant 0 : index
    %c0_43 = arith.constant 0 : index
    %28 = vector.load %arg6[%c0_42, %c0_43] : memref<144x36xbf16, #tpu.memory_space<vmem>>, vector<144x36xbf16>
    %c0_44 = arith.constant 0 : index
    %c0_45 = arith.constant 0 : index
    %29 = vector.load %arg3[%c0_44, %c0_45] : memref<36x128xbf16, #tpu.memory_space<vmem>>, vector<36x128xbf16>
    %cst = arith.constant dense<0.000000e+00> : vector<144x128xf32>
    %30 = tpu.matmul %28, %29, %cst {dimension_numbers = #tpu.dot_dimension_numbers<[1], [0], [0], [1], [0, 0, 1, 1], [], []>} : vector<144x36xbf16>, vector<36x128xbf16>, vector<144x128xf32> -> vector<144x128xf32>
    %c0_46 = arith.constant 0 : index
    %c0_47 = arith.constant 0 : index
    %31 = vector.load %arg4[%c0_46, %c0_47] : memref<1x128xf32, #tpu.memory_space<vmem>>, vector<1x128xf32>
    %32 = vector.broadcast %31 : vector<1x128xf32> to vector<144x128xf32>
    %33 = arith.addf %30, %32 : vector<144x128xf32>
    %c0_48 = arith.constant 0 : index
    %c0_49 = arith.constant 0 : index
    %34 = vector.load %arg5[%c0_48, %c0_49] : memref<144x128xf32, #tpu.memory_space<vmem>>, vector<144x128xf32>
    tpu.vector_store %arg5[%c0_48, %c0_49], %33 {strides = array<i32>} : memref<144x128xf32, #tpu.memory_space<vmem>>, vector<144x128xf32>,
    return
  }
  func.func @transform_0(%arg0: i32) -> (i32, i32) {
    %c0_i32 = arith.constant 0 : i32
    %c0_i32_0 = arith.constant 0 : i32
    return %arg0, %c0_i32 : i32, i32
  }
  func.func @transform_1(%arg0: i32) -> (i32, i32) {
    %c1_i32 = arith.constant 1 : i32
    %0 = arith.addi %arg0, %c1_i32 : i32
    %c0_i32 = arith.constant 0 : i32
    %c0_i32_0 = arith.constant 0 : i32
    return %0, %c0_i32 : i32, i32
  }
  func.func @transform_2(%arg0: i32) -> (i32, i32) {
    %c0_i32 = arith.constant 0 : i32
    %c0_i32_0 = arith.constant 0 : i32
    %c0_i32_1 = arith.constant 0 : i32
    return %c0_i32, %c0_i32_0 : i32, i32
  }
  func.func @transform_3(%arg0: i32) -> (i32, i32) {
    %c0_i32 = arith.constant 0 : i32
    %c0_i32_0 = arith.constant 0 : i32
    %c0_i32_1 = arith.constant 0 : i32
    return %c0_i32, %c0_i32_0 : i32, i32
  }
  func.func @transform_4(%arg0: i32) -> (i32, i32) {
    %c0_i32 = arith.constant 0 : i32
    %c0_i32_0 = arith.constant 0 : i32
    return %arg0, %c0_i32 : i32, i32
  }
}

</mosaic_0001>

<bundles_post_ra>
// kernel: _conv_forward.1
= control target key start
LH: loop header
LB: loop body
LE: loop exit
PB: predicated region body
PF: predicated region fallthrough
CT: control target
= control target key end

     0   :  { %s2078_s15 = smov 0   ;;  %s3024_s0 = inlined_call_operand.vmem [shape: bf16[432,16], index: 0, kind: input, shape index: {}, may-alias: {0,1}]   ;;  %s3025_s1 = inlined_call_operand.vmem [shape: bf16[432,16], index: 1, kind: input, shape index: {}, may-alias: {0,1}]   ;;  %s3026_s2 = inlined_call_operand.vmem [shape: bf16[36,128], index: 2, kind: input, shape index: {}]   ;;  %s3027_s3 = inlined_call_operand.vmem [shape: f32[1,128], index: 3, kind: input, shape index: {}]   ;;  %s3028_s4 = inlined_call_operand.vmem [shape: f32[288,128], index: 4, kind: output, shape index: {}]  }
   0x1 LB: > { %s1919_s16 = sadd.s32 4294967295, %s2044_s15   ;;  %p1923_p0 = scmp.ge.s32.totalorder %s2044_s15, 1  ;;  %s2044_s15 = sphi %s2078_s15, %s14_s15  }
   0x2   : > { %p178_p1 = scmp.lt.s32.totalorder %s2044_s15, 3 }
   0x4   : > { %p179_p2 = pnand %p1923_p0, %p178_p1 }
   0x5   : > { %s2088_s17 = smul.u32 (!%p179_p2), 18, %s1919_s16  ;;  %s2046_s23 = smov (!%p179_p2), 4  }
   0x6   : > { %182 = sbr.rel (%p179_p2) target bundleno = 598 (0x256), region = 36  ;;  %s2047_s24 = smov (!%p179_p2), 24  }
   0x7   : > { %p211_p3 = scmp.lt.s32.totalorder (!%p179_p2), %s2088_s17, 53  ;;  %s2048_s25 = smov (!%p179_p2), 8  }
   0x8   : > { %s2049_s26 = smov (!%p179_p2), 12   ;;  %s2050_s27 = smov (!%p179_p2), 32  }
   0x9   : > { %s2281_s28 = sadd.s32 (!%p179_p2), 1, %s1919_s16  ;;  %p225_p5 = scmp.lt.s32.totalorder (!%p179_p2), %s2088_s17, 35 }
   0xa   : > { %s217_s29 = smul.u32 (!%p179_p2), 18, %s2281_s28 }
   0xb   : > { %s212_s18 = scalar_select %p211_p3, %s2088_s17, 53  ;;  %vm323_vm0 = vsmask.f32 3328  ;;  %vm324_vm1 = vsmask.f32 7440  ;;  %vm249_vm3 = vcmask 27648  }
   0xc   : > { %vm2124_vm2 = vmor %vm323_vm0, %vm324_vm1  ;;  %vm286_vm4 = vcmask 60448   ;;  %p2306_p4 = scmp.lt.s32.totalorder %s217_s29, 53  ;;  %vm1724_vm5 = vcmask 1041408   ;;  %vm2052_vm6 = vmmov 0   ;;  %vm559_vm7 = vcmask 93248   ;;  %s3035_s17 = smov (!%p225_p5, %s2088_s17), 35 }
   0xd   : > { %s1924_s19 = sshll.u32 %s212_s18, 2  ;;  %vm686_vm8 = vcmask 126048   ;;  %vm795_vm9 = vcmask 158848   ;;  %vm1065_vm10 = vcmask 191648   ;;  %vm1181_vm11 = vcmask 224448   ;;  %vm578_vm13 = vmand %vm559_vm7, %vm323_vm0  ;;  %s1926_s16 = sshll.u32 %s3035_s17, 3 }
   0xe   : > { %s2095_s22 = scalar_lea.vmem %s3024_s0, %s1924_s19  ;;  %s3033_s29 = smov (!%p2306_p4, %s217_s29), 53  ;;  %vm1290_vm12 = vcmask 257248   ;;  %vm1542_vm14 = vcmask 290048   ;;  %vm1696_vm15 = vcmask 293888   ;;  %vm590_vm1 = vcmask 93251  }
   0xf   : > { %v596_v0 = vld [vmem:[%s2095_s22] sm:$0xf]  ;;  %v597_v2 = vld [vmem:[%s2095_s22 + $0x4] sm:$0xf]  ;;  %v1101_v3 = vld [vmem:[%s2095_s22 + $0x8] sm:$0xf] }
  0x10   : > { %v705_v1 = vld [vmem:[%s2095_s22] sm:$0xf]  ;;  %632 = vrot.lane.b32.xlu1 %v596_v0, %s2046_s23  ;;  %v306_v5 = vld [vmem:[%s2095_s22 + $0x4] sm:$0xf]  ;;  %v2106_v10 = vld [vmem:[%s2095_s22 + $0x8] sm:$0xf] }
  0x11   : > { %741 = vrot.lane.b32.xlu0 %v705_v1, %s2046_s23  ;;  %v305_v4 = vld [vmem:[%s2095_s22] sm:$0xf]  ;;  %v336_v8 = vshll.u32 %v306_v5, 16  ;;  %v340_v9 = vshrl.u32 %v306_v5, 16  ;;  %v346_v11 = vshll.u32 %v2106_v10, 16  ;;  %s1925_s11 = sshll.u32 %s3033_s29, 2 }
  0x12   : > { %v327_v6 = vshrl.u32 %v305_v4, 16  ;;  %v330_v7 = vshll.u32 %v305_v4, 16  ;;  %v815_v12 = vld [vmem:[%s2095_s22 + $0x4] sm:$0xf]  ;;  %v2111_v13 = vld [vmem:[%s2095_s22 + $0x8] sm:$0xf]  ;;  %s2376_s14 = scalar_lea.vmem %s3025_s1, %s1925_s11 }
  0x13   : > { %v338_v16 = vrot.slane %v336_v8, 5  ;;  %v342_v17 = vrot.slane %v340_v9, 4  ;;  %v814_v18 = vld [vmem:[%s2095_s22] sm:$0xf]  ;;  %v706_v19 = vld [vmem:[%s2095_s22 + $0x4] sm:$0xf] }
  0x14   : > { %634 = vrot.lane.b32.xlu1 %v597_v2, %s2046_s23  ;;  %v329_v14 = vrot.slane %v327_v6, 4  ;;  %v332_v15 = vrot.slane %v330_v7, 5  ;;  %v842_v20 = vshll.u32 %v815_v12, 16  ;;  %v846_v21 = vshrl.u32 %v815_v12, 16  ;;  %v322_v27 = vld [vmem:[%s2095_s22 + $0x44] sm:$0xf] }
  0x15   : > { %1133 = vrot.lane.b32.xlu0 %v1101_v3, %s2047_s24  ;;  %v852_v22 = vshll.u32 %v2111_v13, 16  ;;  %v343_v24 = vor.u32 %v342_v17, %v338_v16  ;;  %v2118_v25 = vrot.slane %v346_v11, 5  ;;  %v833_v26 = vshrl.u32 %v814_v18, 16  ;;  %v1319_v28 = vld [vmem:[%s2095_s22 + $0x8] sm:$0xf] }
  0x16   : > { %v333_v23 = vor.u32 %v332_v15, %v329_v14  ;;  %v1102_v30 = vld [vmem:[%s2095_s22 + $0xc] sm:$0xf]  ;;  %v844_v31 = vrot.slane %v842_v20, 5  ;;  %v848_v32 = vrot.slane %v846_v21, 4  ;;  %v836_v34 = vshll.u32 %v814_v18, 16 }
  0x17   : > { %v2129_v33 = vrot.slane %v852_v22, 5  ;;  %v344_v36 = vrot.slane %v343_v24, 4  ;;  %v835_v37 = vrot.slane %v833_v26, 4  ;;  %v496_v38 = vshll.u32 %v322_v27, 16  ;;  %v1320_v39 = vld [vmem:[%s2095_s22 + $0xc] sm:$0xf] }
  0x18   : > { %743 = vrot.lane.b32.xlu1 %v706_v19, %s2046_s23  ;;  %v334_v35 = vrot.slane %v333_v23, 4  ;;  %v849_v40 = vor.u32 %v848_v32, %v844_v31  ;;  %v838_v41 = vrot.slane %v836_v34, 5  ;;  %v500_v42 = vshrl.u32 %v322_v27, 16  ;;  %v320_v44 = vld [vmem:[%s2095_s22 + $0x3c] sm:$0xf] }
  0x19   : > { %v1336_v43 = vshrl.u32 %v1319_v28, 16  ;;  %v349_v46 = vsel %vm2124_vm2, %v344_v36, %v2118_v25  ;;  %v2139_v47 = vrot.slane %v496_v38, 5  ;;  %v1339_v48 = vshll.u32 %v1319_v28, 16  ;;  %v321_v53 = vld [vmem:[%s2095_s22 + $0x40] sm:$0xf] }
  0x1a   : > { %v339_v45 = vsel %vm2124_vm2, %v334_v35, %v338_v16  ;;  %v850_v49 = vrot.slane %v849_v40, 4  ;;  %v839_v50 = vor.u32 %v838_v41, %v835_v37  ;;  %v502_v51 = vrot.slane %v500_v42, 4  ;;  %v308_v0 = vld [vmem:[%s2095_s22 + $0xc] sm:$0xf]  ;;  %v2153_v5 = vld [vmem:[%s2095_s22 + $0x10] sm:$0xf] }
  0x1b   : > { %505 = vrot.lane.b32.xlu0 %v339_v45, %s2048_s25  ;;  %v1338_v52 = vrot.slane %v1336_v43, 4  ;;  %v1341_v54 = vrot.slane %v1339_v48, 5  ;;  %v1345_v55 = vshll.u32 %v1320_v39, 16  ;;  %v1349_v56 = vshrl.u32 %v1320_v39, 16  ;;  %v1210_v8 = vld [vmem:[%s2095_s22 + $0x8] sm:$0xf] }
  0x1c   : > { %1135 = vrot.lane.b32.xlu1 %v1102_v30, %s2047_s24  ;;  %v476_v57 = vshll.u32 %v320_v44, 16  ;;  %v855_v58 = vsel %vm2124_vm2, %v850_v49, %v2129_v33  ;;  %v840_v59 = vrot.slane %v839_v50, 4  ;;  %v480_v60 = vshrl.u32 %v320_v44, 16  ;;  %v2166_v16 = vld [vmem:[%s2095_s22 + $0x10] sm:$0xf] }
  0x1d   : > { %v1342_v61 = vor.u32 %v1341_v54, %v1338_v52  ;;  %v486_v63 = vshll.u32 %v321_v53, 16  ;;  %v503_v1 = vor.u32 %v502_v51, %v2139_v47  ;;  %v1347_v2 = vrot.slane %v1345_v55, 5  ;;  %v316_v19 = vld [vmem:[%s2095_s22 + $0x2c] sm:$0xf]  ;;  %v315_v30 = vld [vmem:[%s2095_s22 + $0x28] sm:$0xf] }
  0x1e   : > { %v2147_v62 = vrot.slane %v476_v57, 5  ;;  %v482_v3 = vrot.slane %v480_v60, 4  ;;  %v490_v4 = vshrl.u32 %v321_v53, 16  ;;  %v350_v6 = vshrl.u32 %v2106_v10, 16  ;;  %v2181_v37 = vld [vmem:[%s2095_s22 + $0x30] sm:$0xf] }
  0x1f   : > { %507 = vrot.lane.b32.xlu0 %v349_v46, %s2048_s25  ;;  %v845_v7 = vsel %vm2124_vm2, %v840_v59, %v844_v31  ;;  %v1343_v9 = vrot.slane %v1342_v61, 4  ;;  %v1351_v11 = vrot.slane %v1349_v56, 4  ;;  %v2161_v14 = vrot.slane %v486_v63, 5  ;;  %v1211_v42 = vld [vmem:[%s2095_s22 + $0xc] sm:$0xf] }
  0x20   : > { %1013 = vrot.lane.b32.xlu1 %v855_v58, %s2049_s26  ;;  %v483_v12 = vor.u32 %v482_v3, %v2147_v62  ;;  %v2163_v15 = vrot.slane %v490_v4, 4  ;;  %v356_v17 = vshll.u32 %v308_v0, 16  ;;  %v1355_v10 = vshll.u32 %v2153_v5, 16  ;;  %v830_v52 = vld [vmem:[%s2095_s22 + $0x40] sm:$0xf] }
  0x21   : > { %v360_v18 = vshrl.u32 %v308_v0, 16  ;;  %v504_v20 = vrot.slane %v503_v1, 4  ;;  %v1352_v22 = vor.u32 %v1351_v11, %v1347_v2  ;;  %v366_v27 = vshll.u32 %v2166_v16, 16  ;;  %v606_v11 = vld [vmem:[%s2095_s22 + $0x28] sm:$0xf] }
  0x22   : > { %v493_v21 = vor.u32 %v2163_v15, %v2161_v14  ;;  %v358_v23 = vrot.slane %v356_v17, 5  ;;  %v484_v24 = vrot.slane %v483_v12, 4  ;;  %v352_v28 = vrot.slane %v350_v6, 4  ;;  %v598_v6 = vld [vmem:[%s2095_s22 + $0x8] sm:$0xf] }
  0x23   : > { %1011 = vrot.lane.b32.xlu0 %v845_v7, %s2049_s26  ;;  %v362_v26 = vrot.slane %v360_v18, 4  ;;  %v1348_v31 = vsel %vm2124_vm2, %v1343_v9, %v1347_v2  ;;  %v436_v32 = vshll.u32 %v316_v19, 16  ;;  %v440_v34 = vshrl.u32 %v316_v19, 16  ;;  %v829_v12 = vld [vmem:[%s2095_s22 + $0x3c] sm:$0xf] }
  0x24   : > { %1242 = vrot.lane.b32.xlu1 %v1210_v8, %s2047_s24  ;;  %v2178_v35 = vrot.slane %v1355_v10, 5  ;;  %v1353_v38 = vrot.slane %v1352_v22, 4  ;;  %v426_v41 = vshll.u32 %v315_v30, 16  ;;  %v489_v43 = vsel %vm2124_vm2, %v484_v24, %v2161_v14  ;;  %v611_v8 = vld [vmem:[%s2095_s22 + $0x3c] sm:$0xf] }
  0x25   : > { %v363_v36 = vor.u32 %v362_v26, %v358_v23  ;;  %v438_v39 = vrot.slane %v436_v32, 5  ;;  %v442_v40 = vrot.slane %v440_v34, 4  ;;  %v2189_v44 = vrot.slane %v366_v27, 5  ;;  %v824_v17 = vld [vmem:[%s2095_s22 + $0x28] sm:$0xf] }
  0x26   : > { %v353_v45 = vor.u32 %v352_v28, %v2118_v25  ;;  %v430_v46 = vshrl.u32 %v315_v30, 16  ;;  %v446_v50 = vshll.u32 %v2181_v37, 16  ;;  %v2193_v51 = vrot.slane %v426_v41, 5  ;;  %v599_v18 = vld [vmem:[%s2095_s22 + $0xc] sm:$0xf] }
  0x27   : > { %539 = vrot.lane.b32.xlu0 %v504_v20, %s2048_s25  ;;  %v364_v48 = vrot.slane %v363_v36, 4  ;;  %v443_v49 = vor.u32 %v442_v40, %v438_v39  ;;  %v1358_v54 = vsel %vm2124_vm2, %v1353_v38, %v2178_v35  ;;  %v992_v56 = vshll.u32 %v830_v52, 16  ;;  %v720_v19 = vld [vmem:[%s2095_s22 + $0x3c] sm:$0xf]  ;;  %v817_v22 = vld [vmem:[%s2095_s22 + $0xc] sm:$0xf] }
  0x28   : > { %1494 = vrot.lane.b32.xlu1 %v1348_v31, %s2050_s27  ;;  %v432_v53 = vrot.slane %v430_v46, 4  ;;  %v354_v55 = vrot.slane %v353_v45, 4  ;;  %v996_v57 = vshrl.u32 %v830_v52, 16  ;;  %v2205_v60 = vrot.slane %v446_v50, 5  ;;  %v607_v28 = vld [vmem:[%s2095_s22 + $0x2c] sm:$0xf] }
  0x29   : > { %v369_v58 = vsel %vm2124_vm2, %v364_v48, %v2189_v44  ;;  %v444_v59 = vrot.slane %v443_v49, 4  ;;  %v2207_v61 = vrot.slane %v992_v56, 5  ;;  %v370_v7 = vshrl.u32 %v2166_v16, 16  ;;  %v825_v36 = vld [vmem:[%s2095_s22 + $0x2c] sm:$0xf] }
  0x2a   : > { %v433_v25 = vor.u32 %v432_v53, %v2193_v51  ;;  %v2209_v63 = vrot.slane %v996_v57, 4  ;;  %v359_v0 = vsel %vm2124_vm2, %v354_v55, %v358_v23  ;;  %v856_v9 = vshrl.u32 %v2111_v13, 16  ;;  %v708_v38 = vld [vmem:[%s2095_s22 + $0xc] sm:$0xf]  ;;  %v707_v41 = vld [vmem:[%s2095_s22 + $0x8] sm:$0xf] }
  0x2b   : > { %1244 = vrot.lane.b32.xlu0 %v1211_v42, %s2047_s24  ;;  %v449_v3 = vsel %vm2124_vm2, %v444_v59, %v2205_v60  ;;  %v2233_v10 = vrot.slane %v370_v7, 4  ;;  %v982_v16 = vshll.u32 %v829_v12, 16  ;;  %v986_v20 = vshrl.u32 %v829_v12, 16  ;;  %v716_v42 = vld [vmem:[%s2095_s22 + $0x2c] sm:$0xf] }
  0x2c   : > { %535 = vrot.lane.b32.xlu1 %v489_v43, %s2048_s25  ;;  %v434_v1 = vrot.slane %v433_v25, 4  ;;  %v999_v2 = vor.u32 %v2209_v63, %v2207_v61  ;;  %v858_v23 = vrot.slane %v856_v9, 4  ;;  %v932_v24 = vshll.u32 %v824_v17, 16  ;;  %v231_v46 = vld [vmem:[%s2095_s22] sm:$0xf] }
  0x2d   : > { %v936_v13 = vshrl.u32 %v824_v17, 16  ;;  %v373_v26 = vor.u32 %v2233_v10, %v2189_v44  ;;  %v450_v27 = vshrl.u32 %v2181_v37, 16  ;;  %v862_v30 = vshll.u32 %v817_v22, 16  ;;  %v268_v48 = vld [vmem:[%s2095_s22] sm:$0xf] }
  0x2e   : > { %v439_v4 = vsel %vm2124_vm2, %v434_v1, %v438_v39  ;;  %v866_v31 = vshrl.u32 %v817_v22, 16  ;;  %v2246_v32 = vrot.slane %v982_v16, 5  ;;  %v988_v34 = vrot.slane %v986_v20, 4  ;;  %250 = vst.msk [vmem:[#allocation2] sm:$0xf] %vm249_vm3, %v231_v46 }
  0x2f   : > { %1496 = vrot.lane.b32.xlu0 %v1358_v54, %s2050_s27  ;;  %v859_v39 = vor.u32 %v858_v23, %v2129_v33  ;;  %v2251_v40 = vrot.slane %v932_v24, 5  ;;  %v938_v37 = vrot.slane %v936_v13, 4  ;;  %v942_v43 = vshll.u32 %v825_v36, 16  ;;  %v232_v53 = vld [vmem:[%s2095_s22 + $0x4] sm:$0xf] }
  0x30   : > { %511 = vrot.lane.b32.xlu1 %v369_v58, %s2048_s25  ;;  %v2256_v45 = vrot.slane %v450_v27, 4  ;;  %v864_v33 = vrot.slane %v862_v30, 5  ;;  %v989_v49 = vor.u32 %v988_v34, %v2246_v32  ;;  %v946_v50 = vshrl.u32 %v825_v36, 16  ;;  %v2266_v25 = vld [vmem:[%s2095_s22 + $0x10] sm:$0xf]  ;;  %v2027_v36 = vld [vmem:[%s3026_s2 + $0x8] sm:$0xff]  }
  0x31   : > { %v868_v52 = vrot.slane %v866_v31, 4  ;;  %v860_v54 = vrot.slane %v859_v39, 4  ;;  %v939_v55 = vor.u32 %v938_v37, %v2251_v40  ;;  %287 = vst.msk [vmem:[#allocation2] sm:$0xf] %vm286_vm4, %v268_v48  ;;  %v269_v57 = vld [vmem:[%s2095_s22 + $0x4] sm:$0xf] }
  0x32   : > { %v453_v56 = vor.u32 %v2256_v45, %v2205_v60  ;;  %251 = vst.msk [vmem:[#allocation2 + $0x4] sm:$0xf] %vm249_vm3, %v232_v53  ;;  %v715_v58 = vld [vmem:[%s2095_s22 + $0x28] sm:$0xf]  ;;  %v944_v59 = vrot.slane %v942_v43, 5  ;;  %v990_v1 = vrot.slane %v989_v49, 4 }
  0x33   : > { %509 = vrot.lane.b32.xlu0 %v359_v0, %s2048_s25  ;;  %288 = vst.msk [vmem:[#allocation2 + $0x4] sm:$0xf] %vm286_vm4, %v269_v57  ;;  %v2277_v0 = vld [vmem:[%s2095_s22 + $0x30] sm:$0xf]  ;;  %v248_v7 = vld [vmem:[%s2095_s22 + $0x44] sm:$0xf] }
  0x34   : > { %527 = vrot.lane.b32.xlu1 %v449_v3, %s2048_s25  ;;  %v869_v3 = vor.u32 %v868_v52, %v864_v33  ;;  %v940_v9 = vrot.slane %v939_v55, 4  ;;  %267 = vst.msk [vmem:[#allocation2 + $0x44] sm:$0xf] %vm249_vm3, %v248_v7  ;;  %v952_v12 = vshll.u32 %v2277_v0, 16  ;;  %v995_v17 = vsel %vm2124_vm2, %v990_v1, %v2207_v61  ;;  %v246_v22 = vld [vmem:[%s2095_s22 + $0x3c] sm:$0xf] }
  0x35   : > { %v283_v23 = vld [vmem:[%s2095_s22 + $0x3c] sm:$0xf]  ;;  %v2051_v24 = vmov 0.0   ;;  %265 = vst.msk [vmem:[#allocation2 + $0x3c] sm:$0xf] %vm249_vm3, %v246_v22  ;;  %v2028_v52 = vld [vmem:[%s3026_s2] sm:$0xff]  }
  0x36   : > { %v945_v20 = vsel %vm2124_vm2, %v940_v9, %v944_v59  ;;  %1963 = vmatprep.subr.bf16.mxu0 %v2051_v24  ;;  %v2026_v13 = vld [vmem:[%s3026_s2 + $0x10] ss:$0 sps:$4 sm:$0x33]   ;;  %2005 = vmatprep.subr.bf16.mxu1 %v2051_v24  ;;  %302 = vst.msk [vmem:[#allocation2 + $0x3c] sm:$0xf] %vm286_vm4, %v283_v23  ;;  %v2322_v30 = vrot.slane %v952_v12, 5 }
  0x37   : > { %525 = vrot.lane.b32.xlu0 %v439_v4, %s2048_s25  ;;  %v872_v4 = vshll.u32 %v2266_v25, 16  ;;  %v1726_v31 = vsel %vm1724_vm5, %v2026_v13, 0  ;;  %v234_v34 = vld [vmem:[%s2095_s22 + $0xc] sm:$0xf]  ;;  %1969 = vmatprep.mubr.msk.bf16.mxu0 %vm2052_vm6, %v2051_v24  ;;  %v233_v37 = vld [vmem:[%s2095_s22 + $0x8] sm:$0xf] }
  0x38   : > { %636 = vrot.lane.b32.xlu1 %v598_v6, %s2046_s23  ;;  %v948_v6 = vrot.slane %v946_v50, 4  ;;  %1964 = vmatpush3.bf16.msra.mxu0 %v1726_v31  ;;  %253 = vst.msk [vmem:[#allocation2 + $0xc] sm:$0xf] %vm249_vm3, %v234_v34  ;;  %v271_v39 = vld [vmem:[%s2095_s22 + $0xc] sm:$0xf]  ;;  %v454_v10 = vrot.slane %v453_v56, 4 }
  0x39   : > { %2008 = vmatpush3.bf16.msra.mxu1 %v1726_v31  ;;  %1965 = vmatprep.subr.bf16.mxu0 %v2051_v24  ;;  %290 = vst.msk [vmem:[#allocation2 + $0xc] sm:$0xf] %vm286_vm4, %v271_v39  ;;  %v279_v43 = vld [vmem:[%s2095_s22 + $0x2c] sm:$0xf]  ;;  %v1322_v48 = vld [vmem:[%s2095_s22 + $0x14] sm:$0xf] }
  0x3a   : > { %v949_v16 = vor.u32 %v948_v6, %v944_v59  ;;  %252 = vst.msk [vmem:[#allocation2 + $0x8] sm:$0xf] %vm249_vm3, %v233_v37  ;;  %2006 = vmatprep.subr.bf16.mxu1 %v2051_v24  ;;  %1989 = vmatprep.mubr.msk.bf16.mxu1 %vm2052_vm6, %v2051_v24  ;;  %v278_v49 = vld [vmem:[%s2095_s22 + $0x28] sm:$0xf]  ;;  %v1104_v50 = vld [vmem:[%s2095_s22 + $0x14] sm:$0xf] }
  0x3b   : > { %662 = vrot.lane.b32.xlu0 %v611_v8, %s2046_s23  ;;  %v865_v8 = vsel %vm2124_vm2, %v860_v54, %v864_v33  ;;  %v241_v33 = vld [vmem:[%s2095_s22 + $0x28] sm:$0xf]  ;;  %v1365_v53 = vshll.u32 %v1322_v48, 16  ;;  %v1369_v54 = vshrl.u32 %v1322_v48, 16  ;;  %v1103_v55 = vld [vmem:[%s2095_s22 + $0x10] sm:$0xf] }
  0x3c   : > { %652 = vrot.lane.b32.xlu1 %v606_v11, %s2046_s23  ;;  %v285_v11 = vld [vmem:[%s2095_s22 + $0x44] sm:$0xf]  ;;  %1966 = vmatpush3.bf16.msra.mxu0 %v2027_v36  ;;  %260 = vst.msk [vmem:[#allocation2 + $0x28] sm:$0xf] %vm249_vm3, %v241_v33  ;;  %v1112_v57 = vld [vmem:[%s2095_s22 + $0x34] sm:$0xf] }
  0x3d   : > { %304 = vst.msk [vmem:[#allocation2 + $0x44] sm:$0xf] %vm286_vm4, %v285_v11  ;;  %2009 = vmatpush3.bf16.msra.mxu1 %v2027_v36  ;;  %1967 = vmatprep.subr.bf16.mxu0 %v2051_v24  ;;  %297 = vst.msk [vmem:[#allocation2 + $0x28] sm:$0xf] %vm286_vm4, %v278_v49  ;;  %v1359_v59 = vshrl.u32 %v2153_v5, 16  ;;  %v2493_v60 = vrot.slane %v999_v2, 4 }
  0x3e   : > { %2007 = vmatprep.subr.bf16.mxu1 %v2051_v24  ;;  %v1111_v1 = vld [vmem:[%s2095_s22 + $0x30] sm:$0xf]  ;;  %v582_v6 = vld [vmem:[%s2376_s14] sm:$0x1]  ;;  %v2387_v7 = vld [vmem:[%s2095_s22 + $0x18] sm:$0xf] }
  0x3f   : > { %638 = vrot.lane.b32.xlu0 %v599_v18, %s2046_s23  ;;  %v870_v18 = vrot.slane %v869_v3, 4  ;;  %v2382_v3 = vrot.slane %v1365_v53, 5  ;;  %v1212_v11 = vld [vmem:[%s2095_s22 + $0x10] sm:$0xf]  ;;  %v1225_v5 = vld [vmem:[%s2095_s22 + $0x44] sm:$0xf] }
  0x40   : > { %771 = vrot.lane.b32.xlu1 %v720_v19, %s2046_s23  ;;  %v2298_v19 = vrot.slane %v872_v4, 5  ;;  %1968 = vmatpush3.bf16.msra.mxu0 %v2028_v52  ;;  %v1371_v4 = vrot.slane %v1369_v54, 4  ;;  %v1329_v12 = vld [vmem:[%s2095_s22 + $0x30] sm:$0xf]  ;;  %v1361_v22 = vrot.slane %v1359_v59, 4  ;;  %v876_v63 = vshrl.u32 %v2266_v25, 16 }
  0x41   : > { %2010 = vmatpush3.bf16.msra.mxu1 %v2028_v52  ;;  %v2398_v23 = vld [vmem:[%s2095_s22 + $0x38] sm:$0xf]  ;;  %v1439_v31 = vshrl.u32 %v1329_v12, 16  ;;  %v1220_v34 = vld [vmem:[%s2095_s22 + $0x30] sm:$0xf] }
  0x42   : > { %v875_v27 = vsel %vm2124_vm2, %v870_v18, %v2298_v19  ;;  %v584_v18 = vshll.u32 %v582_v6, 16  ;;  %v318_v39 = vld [vmem:[%s2095_s22 + $0x34] sm:$0xf]  ;;  %v2415_v52 = vld [vmem:[%s2095_s22 + $0x18] sm:$0xf] }
  0x43   : > { %654 = vrot.lane.b32.xlu0 %v607_v28, %s2046_s23  ;;  %v950_v28 = vrot.slane %v949_v16, 4  ;;  %v1372_v16 = vor.u32 %v1371_v4, %v2382_v3  ;;  %v386_v6 = vshll.u32 %v2415_v52, 16  ;;  %v600_v45 = vld [vmem:[%s2095_s22 + $0x10] sm:$0xf]  ;;  %v819_v56 = vld [vmem:[%s2095_s22 + $0x14] sm:$0xf] }
  0x44   : > { %747 = vrot.lane.b32.xlu1 %v708_v38, %s2046_s23  ;;  %v1116_v38 = vld [vmem:[%s2095_s22 + $0x44] sm:$0xf]  ;;  %v586_v37 = vrot.slane %v584_v18, 5  ;;  %v2431_v18 = vld [vmem:[%s2095_s22 + $0x38] sm:$0xf] }
  0x45   : > { %v955_v46 = vsel %vm2124_vm2, %v950_v28, %v2322_v30  ;;  %v1435_v28 = vshll.u32 %v1329_v12, 16  ;;  %v1373_v48 = vrot.slane %v1372_v16, 4  ;;  %v235_v16 = vld [vmem:[%s2095_s22 + $0x10] sm:$0xf]  ;;  %v827_v61 = vld [vmem:[%s2095_s22 + $0x34] sm:$0xf] }
  0x46   : > { %254 = vst.msk [vmem:[#allocation2 + $0x10] sm:$0xf] %vm249_vm3, %v235_v16  ;;  %v601_v2 = vld [vmem:[%s2095_s22 + $0x14] sm:$0xf]  ;;  %v2512_v16 = vld [vmem:[%s2095_s22 + $0x18] sm:$0xf] }
  0x47   : > { %745 = vrot.lane.b32.xlu0 %v707_v41, %s2046_s23  ;;  %v270_v41 = vld [vmem:[%s2095_s22 + $0x8] sm:$0xf]  ;;  %v2412_v49 = vrot.slane %v1435_v28, 5  ;;  %v2442_v28 = vrot.slane %v386_v6, 5  ;;  %v722_v6 = vld [vmem:[%s2095_s22 + $0x44] sm:$0xf] }
  0x48   : > { %763 = vrot.lane.b32.xlu1 %v716_v42, %s2046_s23  ;;  %289 = vst.msk [vmem:[#allocation2 + $0x8] sm:$0xf] %vm286_vm4, %v270_v41  ;;  %v242_v42 = vld [vmem:[%s2095_s22 + $0x2c] sm:$0xf]  ;;  %v609_v25 = vld [vmem:[%s2095_s22 + $0x34] sm:$0xf] }
  0x49   : > { %261 = vst.msk [vmem:[#allocation2 + $0x2c] sm:$0xf] %vm249_vm3, %v242_v42  ;;  %v1362_v42 = vor.u32 %v1361_v22, %v2178_v35  ;;  %v460_v35 = vshrl.u32 %v318_v39, 16  ;;  %vm591_vm5 = vsmask.f32 7950 }
  0x4a   : > { %298 = vst.msk [vmem:[#allocation2 + $0x2c] sm:$0xf] %vm286_vm4, %v279_v43  ;;  %v1455_v43 = vshll.u32 %v2398_v23, 16 }
  0x4b   : > { %761 = vrot.lane.b32.xlu0 %v715_v58, %s2046_s23  ;;  %v1330_v58 = vld [vmem:[%s2095_s22 + $0x34] sm:$0xf] }
  0x4c   : > { %1015 = vrot.lane.b32.xlu1 %v865_v8, %s2049_s26  ;;  %v1445_v8 = vshll.u32 %v1330_v58, 16  ;;  %v1449_v9 = vshrl.u32 %v1330_v58, 16  ;;  %v1221_v58 = vld [vmem:[%s2095_s22 + $0x34] sm:$0xf] }
  0x4e   : > { %v2400_v13 = vrot.slane %v1445_v8, 5  ;;  %v236_v8 = vld [vmem:[%s2095_s22 + $0x14] sm:$0xf] }
  0x4f   : > { %1041 = vrot.lane.b32.xlu0 %v995_v17, %s2049_s26  ;;  %v310_v17 = vld [vmem:[%s2095_s22 + $0x14] sm:$0xf]  ;;  %255 = vst.msk [vmem:[#allocation2 + $0x14] sm:$0xf] %vm249_vm3, %v236_v8 }
  0x50   : > { %1031 = vrot.lane.b32.xlu1 %v945_v20, %s2049_s26  ;;  %v1375_v20 = vshll.u32 %v2387_v7, 16  ;;  %v376_v36 = vshll.u32 %v310_v17, 16 }
  0x52   : > { %v2405_v41 = vrot.slane %v1375_v20, 5  ;;  %v378_v53 = vrot.slane %v376_v36, 5  ;;  %v272_v20 = vld [vmem:[%s2095_s22 + $0x10] sm:$0xf] }
  0x53   : > { %1017 = vrot.lane.b32.xlu0 %v875_v27, %s2049_s26  ;;  %v1451_v27 = vrot.slane %v1449_v9, 4  ;;  %291 = vst.msk [vmem:[#allocation2 + $0x10] sm:$0xf] %vm286_vm4, %v272_v20  ;;  %v956_v20 = vshrl.u32 %v2277_v0, 16  ;;  %v709_v0 = vld [vmem:[%s2095_s22 + $0x10] sm:$0xf] }
  0x54   : > { %1163 = vrot.lane.b32.xlu1 %v1116_v38, %s2047_s24  ;;  %v380_v38 = vshrl.u32 %v310_v17, 16  ;;  %v1378_v59 = vsel %vm2124_vm2, %v1373_v48, %v2405_v41  ;;  %v462_v17 = vrot.slane %v460_v35, 4 }
  0x55   : > { %v1452_v33 = vor.u32 %v1451_v27, %v2400_v13 }
  0x56   : > { %v382_v54 = vrot.slane %v380_v38, 4  ;;  %v466_v38 = vshll.u32 %v2431_v18, 16 }
  0x57   : > { %1033 = vrot.lane.b32.xlu0 %v955_v46, %s2049_s26  ;;  %v1213_v46 = vld [vmem:[%s2095_s22 + $0x14] sm:$0xf]  ;;  %v1453_v9 = vrot.slane %v1452_v33, 4 }
  0x58   : > { %1139 = vrot.lane.b32.xlu1 %v1104_v50, %s2047_s24  ;;  %v1441_v50 = vrot.slane %v1439_v31, 4 }
  0x5a   : > { %v1442_v4 = vor.u32 %v1441_v50, %v2412_v49  ;;  %v2468_v50 = vrot.slane %v466_v38, 5 }
  0x5b   : > { %1137 = vrot.lane.b32.xlu0 %v1103_v55, %s2047_s24  ;;  %v456_v55 = vshll.u32 %v318_v39, 16  ;;  %v244_v39 = vld [vmem:[%s2095_s22 + $0x34] sm:$0xf] }
  0x5c   : > { %1155 = vrot.lane.b32.xlu1 %v1112_v57, %s2047_s24  ;;  %v1363_v57 = vrot.slane %v1362_v42, 4  ;;  %v1443_v27 = vrot.slane %v1442_v4, 4  ;;  %263 = vst.msk [vmem:[#allocation2 + $0x34] sm:$0xf] %vm249_vm3, %v244_v39  ;;  %v243_v42 = vld [vmem:[%s2095_s22 + $0x30] sm:$0xf] }
  0x5d   : > { %v458_v12 = vrot.slane %v456_v55, 5  ;;  %262 = vst.msk [vmem:[#allocation2 + $0x30] sm:$0xf] %vm249_vm3, %v243_v42  ;;  %v886_v4 = vshrl.u32 %v819_v56, 16 }
  0x5e   : > { %v1368_v22 = vsel %vm2124_vm2, %v1363_v57, %v2382_v3  ;;  %v280_v3 = vld [vmem:[%s2095_s22 + $0x30] sm:$0xf]  ;;  %v613_v57 = vld [vmem:[%s2095_s22 + $0x44] sm:$0xf] }
  0x5f   : > { %1153 = vrot.lane.b32.xlu0 %v1111_v1, %s2047_s24  ;;  %v2423_v1 = vrot.slane %v1455_v43, 5  ;;  %v463_v36 = vor.u32 %v462_v17, %v458_v12  ;;  %v1448_v43 = vsel %vm2124_vm2, %v1443_v27, %v2400_v13  ;;  %299 = vst.msk [vmem:[#allocation2 + $0x30] sm:$0xf] %vm286_vm4, %v280_v3  ;;  %v459_v55 = vsel %vm2124_vm2, %v454_v10, %v458_v12  ;;  %v710_v27 = vld [vmem:[%s2095_s22 + $0x14] sm:$0xf] }
  0x60   : > { %1246 = vrot.lane.b32.xlu1 %v1212_v11, %s2047_s24  ;;  %v383_v11 = vor.u32 %v382_v54, %v378_v53  ;;  %v2471_v54 = vld [vmem:[%s2095_s22 + $0x44] sm:$0xf]  ;;  %v966_v12 = vshrl.u32 %v827_v61, 16 }
  0x61   : > { %v1458_v31 = vsel %vm2124_vm2, %v1453_v9, %v2423_v1  ;;  %v464_v33 = vrot.slane %v463_v36, 4  ;;  %v888_v9 = vrot.slane %v886_v4, 4 }
  0x62   : > { %v968_v38 = vrot.slane %v966_v12, 4  ;;  %v1379_v12 = vshrl.u32 %v2387_v7, 16  ;;  %v579_v7 = vld [vmem:[#allocation2 + $0x44] sm:$0xf] }
  0x63   : > { %1272 = vrot.lane.b32.xlu0 %v1225_v5, %s2047_s24  ;;  %v273_v5 = vld [vmem:[%s2095_s22 + $0x14] sm:$0xf]  ;;  %v469_v13 = vsel %vm2124_vm2, %v464_v33, %v2468_v50 }
  0x64   : > { %1262 = vrot.lane.b32.xlu1 %v1220_v34, %s2047_s24  ;;  %292 = vst.msk [vmem:[#allocation2 + $0x14] sm:$0xf] %vm286_vm4, %v273_v5  ;;  %v384_v34 = vrot.slane %v383_v11, 4  ;;  %v962_v11 = vshll.u32 %v827_v61, 16  ;;  %v1334_v61 = vld [vmem:[%s2095_s22 + $0x44] sm:$0xf] }
  0x66   : > { %v389_v48 = vsel %vm2124_vm2, %v384_v34, %v2442_v28  ;;  %v892_v34 = vshll.u32 %v2512_v16, 16  ;;  %v964_v36 = vrot.slane %v962_v11, 5 }
  0x67   : > { %1248 = vrot.lane.b32.xlu0 %v1213_v46, %s2047_s24  ;;  %v374_v46 = vrot.slane %v373_v26, 4  ;;  %v1002_v26 = vshll.u32 %v2471_v54, 16 }
  0x68   : > { %587 = vrot.lane.b32.xlu1 %v586_v37, %s2048_s25  ;;  %v281_v37 = vld [vmem:[%s2095_s22 + $0x34] sm:$0xf]  ;;  %v2528_v33 = vrot.slane %v892_v34, 5  ;;  %v1459_v34 = vshrl.u32 %v2398_v23, 16  ;;  %v390_v23 = vshrl.u32 %v2415_v52, 16 }
  0x69   : > { %300 = vst.msk [vmem:[#allocation2 + $0x34] sm:$0xf] %vm286_vm4, %v281_v37  ;;  %v379_v44 = vsel %vm2124_vm2, %v374_v46, %v378_v53  ;;  %v2488_v53 = vrot.slane %v1002_v26, 5  ;;  %v2521_v37 = vld [vmem:[%s2095_s22 + $0x38] sm:$0xf] }
  0x6a   : > { %v718_v46 = vld [vmem:[%s2095_s22 + $0x34] sm:$0xf]  ;;  %v972_v10 = vshll.u32 %v2521_v37, 16 }
  0x6b   : > { %1264 = vrot.lane.b32.xlu0 %v1221_v58, %s2047_s24  ;;  %v1005_v35 = vsel %vm2124_vm2, %v2493_v60, %v2488_v53  ;;  %v608_v58 = vld [vmem:[%s2095_s22 + $0x30] sm:$0xf] }
  0x6c   : > { %1500 = vrot.lane.b32.xlu1 %v1378_v59, %s2050_s27  ;;  %v882_v59 = vshll.u32 %v819_v56, 16 }
  0x6e   : > { %v884_v8 = vrot.slane %v882_v59, 5 }
  0x6f   : > { %1498 = vrot.lane.b32.xlu0 %v1368_v22, %s2050_s27  ;;  %v878_v22 = vrot.slane %v876_v63, 4 }
  0x70   : > { %1516 = vrot.lane.b32.xlu1 %v1458_v31, %s2050_s27  ;;  %v889_v31 = vor.u32 %v888_v9, %v884_v8  ;;  %v1489_v9 = vshrl.u32 %v1334_v61, 16 }
  0x71   : > { %v879_v3 = vor.u32 %v878_v22, %v2298_v19 }
  0x72   : > { %v1491_v22 = vrot.slane %v1489_v9, 4 }
  0x73   : > { %1514 = vrot.lane.b32.xlu0 %v1448_v43, %s2050_s27  ;;  %v958_v43 = vrot.slane %v956_v20, 4 }
  0x74   : > { %515 = vrot.lane.b32.xlu1 %v389_v48, %s2048_s25  ;;  %v890_v48 = vrot.slane %v889_v31, 4  ;;  %v1324_v31 = vld [vmem:[%s2095_s22 + $0x1c] sm:$0xf] }
  0x75   : > { %v959_v19 = vor.u32 %v958_v43, %v2322_v30  ;;  %v1385_v43 = vshll.u32 %v1324_v31, 16 }
  0x76   : > { %v895_v56 = vsel %vm2124_vm2, %v890_v48, %v2528_v33  ;;  %v1113_v48 = vld [vmem:[%s2095_s22 + $0x38] sm:$0xf] }
  0x77   : > { %513 = vrot.lane.b32.xlu0 %v379_v44, %s2048_s25  ;;  %v969_v44 = vor.u32 %v968_v38, %v964_v36  ;;  %v960_v4 = vrot.slane %v959_v19, 4  ;;  %v1114_v38 = vld [vmem:[%s2095_s22 + $0x3c] sm:$0xf] }
  0x78   : > { %531 = vrot.lane.b32.xlu1 %v469_v13, %s2048_s25  ;;  %v717_v13 = vld [vmem:[%s2095_s22 + $0x30] sm:$0xf] }
  0x79   : > { %v965_v11 = vsel %vm2124_vm2, %v960_v4, %v964_v36 }
  0x7b   : > { %529 = vrot.lane.b32.xlu0 %v459_v55, %s2048_s25  ;;  %v880_v55 = vrot.slane %v879_v3, 4 }
  0x7c   : > { %640 = vrot.lane.b32.xlu1 %v600_v45, %s2046_s23 }
  0x7d   : > { %v885_v30 = vsel %vm2124_vm2, %v880_v55, %v884_v8  ;;  %v1485_v8 = vshll.u32 %v1334_v61, 16  ;;  %v1461_v55 = vrot.slane %v1459_v34, 4  ;;  %v1222_v61 = vld [vmem:[%s2095_s22 + $0x38] sm:$0xf] }
  0x7f   : > { %666 = vrot.lane.b32.xlu0 %v613_v57, %s2046_s23  ;;  %v970_v57 = vrot.slane %v969_v44, 4 }
  0x80   : > { %656 = vrot.lane.b32.xlu1 %v608_v58, %s2046_s23  ;;  %v2538_v58 = vrot.slane %v972_v10, 5  ;;  %v1214_v10 = vld [vmem:[%s2095_s22 + $0x18] sm:$0xf] }
  0x82   : > { %v633_v17 = vpop.permute.xlu1 %632 }
  0x83   : > { %v742_v5 = vpop.permute.xlu0 %741  ;;  %642 = vrot.lane.b32.xlu0 %v601_v2, %s2046_s23  ;;  %v975_v2 = vsel %vm2124_vm2, %v970_v57, %v2538_v58  ;;  %v470_v57 = vshrl.u32 %v2431_v18, 16  ;;  %v237_v18 = vld [vmem:[%s2095_s22 + $0x18] sm:$0xf] }
  0x84   : > { %775 = vrot.lane.b32.xlu1 %v722_v6, %s2046_s23  ;;  %256 = vst.msk [vmem:[#allocation2 + $0x18] sm:$0xf] %vm249_vm3, %v237_v18 }
  0x86   : > { %v635_v39 = vpop.permute.xlu1 %634 }
  0x87   : > { %658 = vrot.lane.b32.xlu0 %v609_v25, %s2046_s23  ;;  %v1134_v42 = vpop.permute.xlu0 %1133  ;;  %v2567_v25 = vrot.slane %v1485_v8, 5  ;;  %v392_v8 = vrot.slane %v390_v23, 4 }
  0x88   : > { %751 = vrot.lane.b32.xlu1 %v710_v27, %s2046_s23  ;;  %v1105_v27 = vld [vmem:[%s2095_s22 + $0x18] sm:$0xf] }
  0x89   : > { %v1492_v3 = vor.u32 %v1491_v22, %v2567_v25  ;;  %v2605_v22 = vld [vmem:[%s2095_s22 + $0x40] sm:$0xf] }
  0x8a   : > { %v744_v26 = vpop.permute.xlu1 %743  ;;  %v1475_v23 = vshll.u32 %v2605_v22, 16 }
  0x8b   : > { %749 = vrot.lane.b32.xlu0 %v709_v0, %s2046_s23 }
  0x8c   : > { %767 = vrot.lane.b32.xlu1 %v718_v46, %s2046_s23  ;;  %v1389_v46 = vshrl.u32 %v1324_v31, 16 }
  0x8d   : > { %v506_v45 = vpop.permute.xlu0 %505 }
  0x8e   : > { %560 = vst.msk [vmem:[#allocation2] sm:$0xf] %vm559_vm7, %v506_v45  ;;  %v1136_v59 = vpop.permute.xlu1 %1135  ;;  %v1493_v45 = vrot.slane %v1492_v3, 4  ;;  %v1391_v52 = vrot.slane %v1389_v46, 4  ;;  %v245_v3 = vld [vmem:[%s2095_s22 + $0x38] sm:$0xf] }
  0x8f   : > { %687 = vst.msk [vmem:[#allocation2] sm:$0xf] %vm686_vm8, %v633_v17  ;;  %765 = vrot.lane.b32.xlu0 %v717_v13, %s2046_s23  ;;  %v1332_v13 = vld [vmem:[%s2095_s22 + $0x3c] sm:$0xf] }
  0x90   : > { %1021 = vrot.lane.b32.xlu1 %v895_v56, %s2049_s26  ;;  %796 = vst.msk [vmem:[#allocation2] sm:$0xf] %vm795_vm9, %v742_v5  ;;  %v1106_v5 = vld [vmem:[%s2095_s22 + $0x1c] sm:$0xf]  ;;  %v1387_v56 = vrot.slane %v1385_v43, 5 }
  0x91   : > { %v508_v63 = vpop.permute.xlu0 %507  ;;  %v282_v43 = vld [vmem:[%s2095_s22 + $0x38] sm:$0xf]  ;;  %264 = vst.msk [vmem:[#allocation2 + $0x38] sm:$0xf] %vm249_vm3, %v245_v3 }
  0x92   : > { %561 = vst.msk [vmem:[#allocation2 + $0x4] sm:$0xf] %vm559_vm7, %v508_v63  ;;  %v1014_v6 = vpop.permute.xlu1 %1013 }
  0x93   : > { %688 = vst.msk [vmem:[#allocation2 + $0x4] sm:$0xf] %vm686_vm8, %v635_v39  ;;  %1019 = vrot.lane.b32.xlu0 %v885_v30, %s2049_s26  ;;  %v1381_v39 = vrot.slane %v1379_v12, 4  ;;  %v2590_v30 = vld [vmem:[%s2095_s22 + $0x20] sm:$0xf]  ;;  %v1392_v12 = vor.u32 %v1391_v52, %v1387_v56 }
  0x94   : > { %797 = vst.msk [vmem:[#allocation2 + $0x4] sm:$0xf] %vm795_vm9, %v744_v26  ;;  %1037 = vrot.lane.b32.xlu1 %v975_v2, %s2049_s26  ;;  %v1462_v2 = vor.u32 %v1461_v55, %v2423_v1 }
  0x95   : > { %1067 = vst.msk [vmem:[#allocation2 + $0x4] sm:$0xf] %vm1065_vm10, %v1014_v6  ;;  %v1012_v17 = vpop.permute.xlu0 %1011  ;;  %v1382_v26 = vor.u32 %v1381_v39, %v2405_v41  ;;  %v1465_v41 = vshll.u32 %v1332_v13, 16  ;;  %v312_v6 = vld [vmem:[%s2095_s22 + $0x1c] sm:$0xf]  ;;  %v472_v39 = vrot.slane %v470_v57, 4 }
  0x96   : > { %1066 = vst.msk [vmem:[#allocation2] sm:$0xf] %vm1065_vm10, %v1012_v17  ;;  %v1243_v20 = vpop.permute.xlu1 %1242  ;;  %v1395_v17 = vshll.u32 %v2590_v30, 16  ;;  %v1393_v46 = vrot.slane %v1392_v12, 4  ;;  %v2630_v57 = vld [vmem:[%s2095_s22 + $0x20] sm:$0xf] }
  0x97   : > { %1183 = vst.msk [vmem:[#allocation2 + $0x4] sm:$0xf] %vm1181_vm11, %v1136_v59  ;;  %1035 = vrot.lane.b32.xlu0 %v965_v11, %s2049_s26  ;;  %1182 = vst.msk [vmem:[#allocation2] sm:$0xf] %vm1181_vm11, %v1134_v42  ;;  %v1469_v59 = vshrl.u32 %v1332_v13, 16  ;;  %v1383_v63 = vrot.slane %v1382_v26, 4  ;;  %v473_v52 = vor.u32 %v472_v39, %v2468_v50 }
  0x98   : > { %1291 = vst.msk [vmem:[#allocation2] sm:$0xf] %vm1290_vm12, %v1243_v20  ;;  %1143 = vrot.lane.b32.xlu1 %v1106_v5, %s2047_s24  ;;  %v1215_v11 = vld [vmem:[%s2095_s22 + $0x1c] sm:$0xf]  ;;  %v274_v5 = vld [vmem:[%s2095_s22 + $0x18] sm:$0xf] }
  0x99   : > { %v540_v36 = vpop.permute.xlu0 %539  ;;  %v1467_v1 = vrot.slane %v1465_v41, 5  ;;  %v396_v20 = vshll.u32 %v312_v6, 16  ;;  %293 = vst.msk [vmem:[#allocation2 + $0x18] sm:$0xf] %vm286_vm4, %v274_v5  ;;  %v1388_v34 = vsel %vm2124_vm2, %v1383_v63, %v1387_v56  ;;  %301 = vst.msk [vmem:[#allocation2 + $0x38] sm:$0xf] %vm286_vm4, %v282_v43 }
  0x9a   : > { %v580_v42 = vsel %vm578_vm13, %v540_v36, %v579_v7  ;;  %v1495_v0 = vpop.permute.xlu1 %1494  ;;  %v400_v7 = vshrl.u32 %v312_v6, 16  ;;  %v1463_v36 = vrot.slane %v1462_v2, 4  ;;  %v275_v13 = vld [vmem:[%s2095_s22 + $0x1c] sm:$0xf]  ;;  %v406_v63 = vshll.u32 %v2630_v57, 16  ;;  %vm592_vm13 = vmand %vm590_vm1, %vm591_vm5 }
  0x9b   : > { %581 = vst [vmem:[#allocation2 + $0x44] sm:$0xf] %v580_v42  ;;  %1141 = vrot.lane.b32.xlu0 %v1105_v27, %s2047_s24  ;;  %1543 = vst.msk [vmem:[#allocation2] sm:$0xf] %vm1542_vm14, %v1495_v0  ;;  %v1471_v27 = vrot.slane %v1469_v59, 4  ;;  %v1006_v2 = vshrl.u32 %v2471_v54, 16 }
  0x9c   : > { %1159 = vrot.lane.b32.xlu1 %v1114_v38, %s2047_s24  ;;  %v393_v38 = vor.u32 %v392_v8, %v2442_v28  ;;  %v1223_v0 = vld [vmem:[%s2095_s22 + $0x3c] sm:$0xf]  ;;  %v402_v26 = vrot.slane %v400_v7, 4  ;;  %v2656_v12 = vrot.slane %v406_v63, 5  ;;  %v896_v5 = vshrl.u32 %v2512_v16, 16 }
  0x9d   : > { %v1245_v44 = vpop.permute.xlu0 %1244  ;;  %v238_v28 = vld [vmem:[%s2095_s22 + $0x1c] sm:$0xf]  ;;  %vm1096_vm1 = vcmask 191651  }
  0x9e   : > { %1292 = vst.msk [vmem:[#allocation2 + $0x4] sm:$0xf] %vm1290_vm12, %v1245_v44  ;;  %v536_v19 = vpop.permute.xlu1 %535  ;;  %v398_v44 = vrot.slane %v396_v20, 5  ;;  %v394_v56 = vrot.slane %v393_v38, 4  ;;  %v898_v38 = vrot.slane %v896_v5, 4  ;;  %v1479_v5 = vshrl.u32 %v2605_v22, 16 }
  0x9f   : > { %1157 = vrot.lane.b32.xlu0 %v1113_v48, %s2047_s24  ;;  %575 = vst.msk [vmem:[#allocation2 + $0x3c] sm:$0xf] %vm559_vm7, %v536_v19  ;;  %v2617_v48 = vrot.slane %v1395_v17, 5  ;;  %v1008_v17 = vrot.slane %v1006_v2, 4  ;;  %v719_v2 = vld [vmem:[%s2095_s22 + $0x38] sm:$0xf] }
  0xa0   : > { %1250 = vrot.lane.b32.xlu1 %v1214_v10, %s2047_s24  ;;  %v1472_v10 = vor.u32 %v1471_v27, %v1467_v1  ;;  %257 = vst.msk [vmem:[#allocation2 + $0x1c] sm:$0xf] %vm249_vm3, %v238_v28  ;;  %v399_v8 = vsel %vm2124_vm2, %v394_v56, %v398_v44 }
  0xa1   : > { %v1497_v4 = vpop.permute.xlu0 %1496  ;;  %294 = vst.msk [vmem:[#allocation2 + $0x1c] sm:$0xf] %vm286_vm4, %v275_v13  ;;  %v1398_v59 = vsel %vm2124_vm2, %v1393_v46, %v2617_v48  ;;  %v1009_v16 = vor.u32 %v1008_v17, %v2488_v53  ;;  %v899_v46 = vor.u32 %v898_v38, %v2528_v33  ;;  %v2687_v33 = vld [vmem:[%s2095_s22 + $0x20] sm:$0xf]  ;;  %v1199_v53 = vld [vmem:[%s2376_s14 + $0x4] sm:$0xf] }
  0xa2   : > { %1544 = vst.msk [vmem:[#allocation2 + $0x4] sm:$0xf] %vm1542_vm14, %v1497_v4  ;;  %v512_v9 = vpop.permute.xlu1 %511  ;;  %v2640_v4 = vrot.slane %v1475_v23, 5  ;;  %v1473_v50 = vrot.slane %v1472_v10, 4  ;;  %v1216_v38 = vld [vmem:[%s2095_s22 + $0x20] sm:$0xf] }
  0xa3   : > { %1524 = vrot.lane.b32.xlu0 %v1493_v45, %s2050_s27  ;;  %563 = vst.msk [vmem:[#allocation2 + $0xc] sm:$0xf] %vm559_vm7, %v512_v9  ;;  %v1468_v45 = vsel %vm2124_vm2, %v1463_v36, %v1467_v1  ;;  %v474_v9 = vrot.slane %v473_v52, 4  ;;  %v821_v36 = vld [vmem:[%s2095_s22 + $0x1c] sm:$0xf] }
  0xa4   : > { %1266 = vrot.lane.b32.xlu1 %v1222_v61, %s2047_s24  ;;  %v403_v61 = vor.u32 %v402_v26, %v398_v44  ;;  %v1478_v54 = vsel %vm2124_vm2, %v1473_v50, %v2640_v4  ;;  %v902_v3 = vshll.u32 %v821_v36, 16  ;;  %v906_v43 = vshrl.u32 %v821_v36, 16  ;;  %v610_v44 = vld [vmem:[%s2095_s22 + $0x38] sm:$0xf] }
  0xa5   : > { %v510_v31 = vpop.permute.xlu0 %509  ;;  %v479_v20 = vsel %vm2124_vm2, %v474_v9, %v2147_v62  ;;  %v603_v62 = vld [vmem:[%s2095_s22 + $0x1c] sm:$0xf]  ;;  %v711_v52 = vld [vmem:[%s2095_s22 + $0x18] sm:$0xf]  ;;  %v1399_v9 = vshrl.u32 %v2590_v30, 16 }
  0xa6   : > { %562 = vst.msk [vmem:[#allocation2 + $0x8] sm:$0xf] %vm559_vm7, %v510_v31  ;;  %v528_v42 = vpop.permute.xlu1 %527  ;;  %v976_v31 = vshrl.u32 %v2521_v37, 16  ;;  %v904_v10 = vrot.slane %v902_v3, 5  ;;  %v908_v26 = vrot.slane %v906_v43, 4  ;;  %v410_v3 = vshrl.u32 %v2630_v57, 16 }
  0xa7   : > { %1252 = vrot.lane.b32.xlu0 %v1215_v11, %s2047_s24  ;;  %571 = vst.msk [vmem:[#allocation2 + $0x2c] sm:$0xf] %vm559_vm7, %v528_v42  ;;  %v404_v11 = vrot.slane %v403_v61, 4  ;;  %v602_v42 = vld [vmem:[%s2095_s22 + $0x18] sm:$0xf]  ;;  %v1401_v17 = vrot.slane %v1399_v9, 4 }
  0xa8   : > { %1502 = vrot.lane.b32.xlu1 %v1388_v34, %s2050_s27  ;;  %v978_v23 = vrot.slane %v976_v31, 4  ;;  %v1115_v43 = vld [vmem:[%s2095_s22 + $0x40] sm:$0xf] }
  0xa9   : > { %v526_v55 = vpop.permute.xlu0 %525  ;;  %v2029_v19 = vld [vmem:[#allocation2] sm:$0xff]   ;;  %v409_v27 = vsel %vm2124_vm2, %v404_v11, %v2656_v12  ;;  %v1402_v22 = vor.u32 %v1401_v17, %v2617_v48 }
  0xaa   : > { %570 = vst.msk [vmem:[#allocation2 + $0x28] sm:$0xf] %vm559_vm7, %v526_v55  ;;  %v637_v41 = vpop.permute.xlu1 %636  ;;  %1970 = vmatmul.mubr.msk.bf16.vlgmr.msra.gmra.mxu0 %vm1696_vm15, %v2029_v19  ;;  %v712_v55 = vld [vmem:[%s2095_s22 + $0x1c] sm:$0xf]  ;;  %v900_v19 = vrot.slane %v899_v46, 4 }
  0xab   : > { %1268 = vrot.lane.b32.xlu0 %v1223_v0, %s2047_s24  ;;  %689 = vst.msk [vmem:[#allocation2 + $0x8] sm:$0xf] %vm686_vm8, %v637_v41  ;;  %1973 = vmatprep.mubr.msk.bf16.mxu0 %vm2052_vm6, %v2051_v24  ;;  %v1010_v0 = vrot.slane %v1009_v16, 4  ;;  %v909_v41 = vor.u32 %v908_v26, %v904_v10  ;;  %v1107_v16 = vld [vmem:[%s2095_s22 + $0x20] sm:$0xf]  ;;  %v1403_v57 = vrot.slane %v1402_v22, 4 }
  0xac   : > { %1518 = vrot.lane.b32.xlu1 %v1468_v45, %s2050_s27  ;;  %v979_v45 = vor.u32 %v978_v23, %v2538_v58  ;;  %v905_v58 = vsel %vm2124_vm2, %v900_v19, %v904_v10  ;;  %v1224_v48 = vld [vmem:[%s2095_s22 + $0x40] sm:$0xf]  ;;  %v2738_v10 = vld [vmem:[%s2095_s22 + $0x28] sm:$0xf]  ;;  %v240_v19 = vld [vmem:[%s2095_s22 + $0x24] sm:$0xf] }
  0xad   : > { %v663_v6 = vpop.permute.xlu0 %662  ;;  %v2734_v46 = vld [vmem:[%s2376_s14] sm:$0xf]  ;;  %259 = vst.msk [vmem:[#allocation2 + $0x24] sm:$0xf] %vm249_vm3, %v240_v19 }
  0xae   : > { %702 = vst.msk [vmem:[#allocation2 + $0x3c] sm:$0xf] %vm686_vm8, %v663_v6  ;;  %v653_v18 = vpop.permute.xlu1 %652  ;;  %v980_v61 = vrot.slane %v979_v45, 4  ;;  %v910_v6 = vrot.slane %v909_v41, 4  ;;  %v277_v45 = vld [vmem:[%s2095_s22 + $0x24] sm:$0xf] }
  0xaf   : > { %1504 = vrot.lane.b32.xlu0 %v1398_v59, %s2050_s27  ;;  %697 = vst.msk [vmem:[#allocation2 + $0x28] sm:$0xf] %vm686_vm8, %v653_v18  ;;  %v912_v59 = vshll.u32 %v2687_v33, 16  ;;  %v1217_v41 = vld [vmem:[%s2095_s22 + $0x24] sm:$0xf] }
  0xb0   : > { %517 = vrot.lane.b32.xlu1 %v399_v8, %s2048_s25  ;;  %296 = vst.msk [vmem:[#allocation2 + $0x24] sm:$0xf] %vm286_vm4, %v277_v45 }
  0xb1   : > { %v639_v1 = vpop.permute.xlu0 %638  ;;  %v2702_v8 = vrot.slane %v912_v59, 5 }
  0xb2   : > { %690 = vst.msk [vmem:[#allocation2 + $0xc] sm:$0xf] %vm686_vm8, %v639_v1  ;;  %v772_v7 = vpop.permute.xlu1 %771 }
  0xb3   : > { %1520 = vrot.lane.b32.xlu0 %v1478_v54, %s2050_s27  ;;  %811 = vst.msk [vmem:[#allocation2 + $0x3c] sm:$0xf] %vm795_vm9, %v772_v7  ;;  %v985_v54 = vsel %vm2124_vm2, %v980_v61, %v2246_v32  ;;  %v915_v30 = vsel %vm2124_vm2, %v910_v6, %v2702_v8  ;;  %v1108_v32 = vld [vmem:[%s2095_s22 + $0x24] sm:$0xf] }
  0xb4   : > { %533 = vrot.lane.b32.xlu1 %v479_v20, %s2048_s25  ;;  %v1326_v20 = vld [vmem:[%s2095_s22 + $0x24] sm:$0xf] }
  0xb5   : > { %v655_v34 = vpop.permute.xlu0 %654  ;;  %v1405_v31 = vshll.u32 %v1326_v20, 16 }
  0xb6   : > { %698 = vst.msk [vmem:[#allocation2 + $0x2c] sm:$0xf] %vm686_vm8, %v655_v34  ;;  %v748_v39 = vpop.permute.xlu1 %747  ;;  %v1409_v34 = vshrl.u32 %v1326_v20, 16 }
  0xb7   : > { %519 = vrot.lane.b32.xlu0 %v409_v27, %s2048_s25  ;;  %799 = vst.msk [vmem:[#allocation2 + $0xc] sm:$0xf] %vm795_vm9, %v748_v39  ;;  %v314_v27 = vld [vmem:[%s2095_s22 + $0x24] sm:$0xf] }
  0xb8   : > { %646 = vrot.lane.b32.xlu1 %v603_v62, %s2046_s23  ;;  %v1481_v62 = vrot.slane %v1479_v5, 4  ;;  %v416_v39 = vshll.u32 %v314_v27, 16  ;;  %v1411_v23 = vrot.slane %v1409_v34, 4  ;;  %v284_v5 = vld [vmem:[%s2095_s22 + $0x40] sm:$0xf] }
  0xb9   : > { %v746_v37 = vpop.permute.xlu0 %745 }
  0xba   : > { %798 = vst.msk [vmem:[#allocation2 + $0x8] sm:$0xf] %vm795_vm9, %v746_v37  ;;  %v764_v28 = vpop.permute.xlu1 %763  ;;  %v1407_v37 = vrot.slane %v1405_v31, 5  ;;  %v2740_v26 = vrot.slane %v416_v39, 5  ;;  %v604_v39 = vld [vmem:[%s2095_s22 + $0x20] sm:$0xf] }
  0xbb   : > { %644 = vrot.lane.b32.xlu0 %v602_v42, %s2046_s23  ;;  %807 = vst.msk [vmem:[#allocation2 + $0x2c] sm:$0xf] %vm795_vm9, %v764_v28  ;;  %v420_v42 = vshrl.u32 %v314_v27, 16  ;;  %v1482_v28 = vor.u32 %v1481_v62, %v2640_v4  ;;  %v1567_v4 = vshll.u32 %v2734_v46, 16  ;;  %v823_v62 = vld [vmem:[%s2095_s22 + $0x24] sm:$0xf] }
  0xbc   : > { %1045 = vrot.lane.b32.xlu1 %v1010_v0, %s2049_s26  ;;  %v1412_v59 = vor.u32 %v1411_v23, %v1407_v37 }
  0xbd   : > { %v762_v13 = vpop.permute.xlu0 %761 }
  0xbe   : > { %806 = vst.msk [vmem:[#allocation2 + $0x28] sm:$0xf] %vm795_vm9, %v762_v13  ;;  %v1016_v56 = vpop.permute.xlu1 %1015  ;;  %v422_v13 = vrot.slane %v420_v42, 4  ;;  %v922_v42 = vshll.u32 %v823_v62, 16 }
  0xbf   : > { %660 = vrot.lane.b32.xlu0 %v610_v44, %s2046_s23  ;;  %1068 = vst.msk [vmem:[#allocation2 + $0x8] sm:$0xf] %vm1065_vm10, %v1016_v56  ;;  %v412_v56 = vrot.slane %v410_v3, 4 }
  0xc0   : > { %755 = vrot.lane.b32.xlu1 %v712_v55, %s2046_s23  ;;  %v423_v6 = vor.u32 %v422_v13, %v2740_v26  ;;  %v714_v13 = vld [vmem:[%s2095_s22 + $0x24] sm:$0xf] }
  0xc1   : > { %v1042_v50 = vpop.permute.xlu0 %1041 }
  0xc2   : > { %1081 = vst.msk [vmem:[#allocation2 + $0x3c] sm:$0xf] %vm1065_vm10, %v1042_v50  ;;  %v1032_v63 = vpop.permute.xlu1 %1031  ;;  %v1415_v50 = vshll.u32 %v2738_v10, 16  ;;  %v424_v20 = vrot.slane %v423_v6, 4 }
  0xc3   : > { %753 = vrot.lane.b32.xlu0 %v711_v52, %s2046_s23  ;;  %1076 = vst.msk [vmem:[#allocation2 + $0x28] sm:$0xf] %vm1065_vm10, %v1032_v63  ;;  %v239_v52 = vld [vmem:[%s2095_s22 + $0x20] sm:$0xf]  ;;  %v1408_v63 = vsel %vm2124_vm2, %v1403_v57, %v1407_v37  ;;  %v924_v37 = vrot.slane %v922_v42, 5 }
  0xc4   : > { %1023 = vrot.lane.b32.xlu1 %v905_v58, %s2049_s26  ;;  %258 = vst.msk [vmem:[#allocation2 + $0x20] sm:$0xf] %vm249_vm3, %v239_v52  ;;  %v276_v58 = vld [vmem:[%s2095_s22 + $0x20] sm:$0xf]  ;;  %v2770_v17 = vrot.slane %v1415_v50, 5  ;;  %v429_v34 = vsel %vm2124_vm2, %v424_v20, %v2193_v51  ;;  %v494_v51 = vrot.slane %v493_v21, 4 }
  0xc5   : > { %v1018_v18 = vpop.permute.xlu0 %1017  ;;  %295 = vst.msk [vmem:[#allocation2 + $0x20] sm:$0xf] %vm286_vm4, %v276_v58  ;;  %v612_v21 = vld [vmem:[%s2095_s22 + $0x40] sm:$0xf] }
  0xc6   : > { %1069 = vst.msk [vmem:[#allocation2 + $0xc] sm:$0xf] %vm1065_vm10, %v1018_v18  ;;  %v1164_v11 = vpop.permute.xlu1 %1163  ;;  %v2763_v18 = vrot.slane %v1567_v4, 5  ;;  %v499_v14 = vsel %vm2124_vm2, %v494_v51, %v2139_v47 }
  0xc7   : > { %769 = vrot.lane.b32.xlu0 %v719_v2, %s2046_s23  ;;  %1197 = vst.msk [vmem:[#allocation2 + $0x3c] sm:$0xf] %vm1181_vm11, %v1164_v11  ;;  %v1483_v2 = vrot.slane %v1482_v28, 4  ;;  %v413_v11 = vor.u32 %v412_v56, %v2656_v12  ;;  %v713_v56 = vld [vmem:[%s2095_s22 + $0x20] sm:$0xf] }
  0xc8   : > { %1039 = vrot.lane.b32.xlu1 %v985_v54, %s2049_s26  ;;  %v247_v54 = vld [vmem:[%s2095_s22 + $0x40] sm:$0xf] }
  0xc9   : > { %v1034_v1 = vpop.permute.xlu0 %1033  ;;  %266 = vst.msk [vmem:[#allocation2 + $0x40] sm:$0xf] %vm249_vm3, %v247_v54  ;;  %vm1559_vm3 = vmand %vm1542_vm14, %vm323_vm0 }
  0xca   : > { %1077 = vst.msk [vmem:[#allocation2 + $0x2c] sm:$0xf] %vm1065_vm10, %v1034_v1  ;;  %v1140_v7 = vpop.permute.xlu1 %1139 }
  0xcb   : > { %1025 = vrot.lane.b32.xlu0 %v915_v30, %s2049_s26  ;;  %1185 = vst.msk [vmem:[#allocation2 + $0xc] sm:$0xf] %vm1181_vm11, %v1140_v7  ;;  %v1413_v30 = vrot.slane %v1412_v59, 4  ;;  %v593_v7 = vld [vmem:[#allocation2 + $0x44] sm:$0x8] }
  0xcc   : > { %1147 = vrot.lane.b32.xlu1 %v1108_v32, %s2047_s24  ;;  %v1488_v32 = vsel %vm2124_vm2, %v1483_v2, %v2567_v25  ;;  %303 = vst.msk [vmem:[#allocation2 + $0x40] sm:$0xf] %vm286_vm4, %v284_v5 }
  0xcd   : > { %v1138_v36 = vpop.permute.xlu0 %1137  ;;  %v1418_v25 = vsel %vm2124_vm2, %v1413_v30, %v2770_v17  ;;  %v1570_v30 = vshrl.u32 %v2734_v46, 16 }
  0xce   : > { %1184 = vst.msk [vmem:[#allocation2 + $0x8] sm:$0xf] %vm1181_vm11, %v1138_v36  ;;  %v1156_v0 = vpop.permute.xlu1 %1155 }
  0xcf   : > { %1145 = vrot.lane.b32.xlu0 %v1107_v16, %s2047_s24  ;;  %1193 = vst.msk [vmem:[#allocation2 + $0x2c] sm:$0xf] %vm1181_vm11, %v1156_v0  ;;  %v414_v16 = vrot.slane %v413_v11, 4  ;;  %v926_v0 = vshrl.u32 %v823_v62, 16  ;;  %v1109_v11 = vld [vmem:[%s2095_s22 + $0x28] sm:$0xf] }
  0xd0   : > { %1254 = vrot.lane.b32.xlu1 %v1216_v38, %s2047_s24 }
  0xd1   : > { %v1154_v44 = vpop.permute.xlu0 %1153  ;;  %v419_v36 = vsel %vm2124_vm2, %v414_v16, %v2740_v26  ;;  %v928_v23 = vrot.slane %v926_v0, 4  ;;  %v1219_v0 = vld [vmem:[%s2095_s22 + $0x2c] sm:$0xf] }
  0xd2   : > { %1192 = vst.msk [vmem:[#allocation2 + $0x28] sm:$0xf] %vm1181_vm11, %v1154_v44  ;;  %v1247_v55 = vpop.permute.xlu1 %1246  ;;  %v605_v44 = vld [vmem:[%s2095_s22 + $0x24] sm:$0xf] }
  0xd3   : > { %1161 = vrot.lane.b32.xlu0 %v1115_v43, %s2047_s24  ;;  %1293 = vst.msk [vmem:[#allocation2 + $0x8] sm:$0xf] %vm1290_vm12, %v1247_v55  ;;  %v916_v43 = vshrl.u32 %v2687_v33, 16  ;;  %v929_v55 = vor.u32 %v928_v23, %v924_v37  ;;  %v1308_v23 = vld [vmem:[%s2376_s14 + $0x4] sm:$0xf] }
  0xd4   : > { %1270 = vrot.lane.b32.xlu1 %v1224_v48, %s2047_s24  ;;  %v1088_v48 = vld [vmem:[%s2376_s14] sm:$0x1] }
  0xd5   : > { %v1273_v61 = vpop.permute.xlu0 %1272  ;;  %v918_v33 = vrot.slane %v916_v43, 4  ;;  %v1090_v57 = vshll.u32 %v1088_v48, 16  ;;  %v930_v59 = vrot.slane %v929_v55, 4 }
  0xd6   : > { %1306 = vst.msk [vmem:[#allocation2 + $0x3c] sm:$0xf] %vm1290_vm12, %v1273_v61  ;;  %v1263_v9 = vpop.permute.xlu1 %1262 }
  0xd7   : > { %1256 = vrot.lane.b32.xlu0 %v1217_v41, %s2047_s24  ;;  %1301 = vst.msk [vmem:[#allocation2 + $0x28] sm:$0xf] %vm1290_vm12, %v1263_v9  ;;  %v919_v45 = vor.u32 %v918_v33, %v2702_v8  ;;  %v1092_v4 = vrot.slane %v1090_v57, 5  ;;  %v721_v8 = vld [vmem:[%s2095_s22 + $0x40] sm:$0xf]  ;;  %v1419_v9 = vshrl.u32 %v2738_v10, 16 }
  0xd8   : > { %1506 = vrot.lane.b32.xlu1 %v1408_v63, %s2050_s27  ;;  %v935_v63 = vsel %vm2124_vm2, %v930_v59, %v2251_v40 }
  0xd9   : > { %v1249_v1 = vpop.permute.xlu0 %1248  ;;  %v920_v58 = vrot.slane %v919_v45, 4  ;;  %v1421_v10 = vrot.slane %v1419_v9, 4 }
  0xda   : > { %1294 = vst.msk [vmem:[#allocation2 + $0xc] sm:$0xf] %vm1290_vm12, %v1249_v1  ;;  %v588_v12 = vpop.permute.xlu1 %587  ;;  %v1198_v1 = vld [vmem:[%s2376_s14] sm:$0xf] }
  0xdb   : > { %1590 = vrot.lane.b32.xlu0 %v2763_v18, %s2050_s27  ;;  %v594_v27 = vsel %vm592_vm13, %v588_v12, %v593_v7  ;;  %v925_v6 = vsel %vm2124_vm2, %v920_v58, %v924_v37  ;;  %v1110_v12 = vld [vmem:[%s2095_s22 + $0x2c] sm:$0xf]  ;;  %v1422_v16 = vor.u32 %v1421_v10, %v2770_v17  ;;  %v1307_v17 = vld [vmem:[%s2376_s14] sm:$0xf]  ;;  %vm1097_vm13 = vmand %vm1096_vm1, %vm591_vm5 }
  0xdc   : > { %595 = vst [vmem:[#allocation2 + $0x44] sm:$0x8] %v594_v27  ;;  %1522 = vrot.lane.b32.xlu1 %v1488_v32, %s2050_s27  ;;  %v1328_v32 = vld [vmem:[%s2095_s22 + $0x2c] sm:$0xf] }
  0xdd   : > { %v1265_v31 = vpop.permute.xlu0 %1264  ;;  %v1425_v46 = vshll.u32 %v1328_v32, 16  ;;  %v1429_v7 = vshrl.u32 %v1328_v32, 16  ;;  %v1560_v59 = vld [vmem:[#allocation2 + $0x3c] sm:$0xf] }
  0xde   : > { %1302 = vst.msk [vmem:[#allocation2 + $0x2c] sm:$0xf] %vm1290_vm12, %v1265_v31  ;;  %v1501_v22 = vpop.permute.xlu1 %1500  ;;  %v1564_v31 = vld [vmem:[%s2376_s14 + $0x4] sm:$0xf] }
  0xdf   : > { %1508 = vrot.lane.b32.xlu0 %v1418_v25, %s2050_s27  ;;  %1546 = vst.msk [vmem:[#allocation2 + $0xc] sm:$0xf] %vm1542_vm14, %v1501_v22  ;;  %v1218_v25 = vld [vmem:[%s2095_s22 + $0x28] sm:$0xf]  ;;  %v1427_v60 = vrot.slane %v1425_v46, 5  ;;  %v1576_v62 = vshll.u32 %v1564_v31, 16  ;;  %s2968_s22 = scalar_lea.vmem %s3028_s4, %s1926_s16 }
  0xe0   : > { %523 = vrot.lane.b32.xlu1 %v429_v34, %s2048_s25  ;;  %v1572_v34 = vrot.slane %v1570_v30, 4 }
  0xe1   : > { %v1499_v38 = vpop.permute.xlu0 %1498  ;;  %v1578_v43 = vrot.slane %v1576_v62, 5 }
  0xe2   : > { %1545 = vst.msk [vmem:[#allocation2 + $0x8] sm:$0xf] %vm1542_vm14, %v1499_v38  ;;  %v1517_v3 = vpop.permute.xlu1 %1516  ;;  %v1423_v38 = vrot.slane %v1422_v16, 4 }
  0xe3   : > { %521 = vrot.lane.b32.xlu0 %v419_v36, %s2048_s25  ;;  %1554 = vst.msk [vmem:[#allocation2 + $0x2c] sm:$0xf] %vm1542_vm14, %v1517_v3  ;;  %v1580_v36 = vshrl.u32 %v1564_v31, 16 }
  0xe4   : > { %648 = vrot.lane.b32.xlu1 %v604_v39, %s2046_s23  ;;  %v1573_v39 = vor.u32 %v1572_v34, %v2763_v18  ;;  %v1565_v18 = vld [vmem:[%s2376_s14 + $0x8] sm:$0x1] }
  0xe5   : > { %v1515_v15 = vpop.permute.xlu0 %1514 }
  0xe6   : > { %1553 = vst.msk [vmem:[#allocation2 + $0x28] sm:$0xf] %vm1542_vm14, %v1515_v15  ;;  %v516_v28 = vpop.permute.xlu1 %515  ;;  %v1574_v48 = vrot.slane %v1573_v39, 4 }
  0xe7   : > { %537 = vrot.lane.b32.xlu0 %v499_v14, %s2048_s25  ;;  %565 = vst.msk [vmem:[#allocation2 + $0x14] sm:$0xf] %vm559_vm7, %v516_v28  ;;  %v1582_v14 = vrot.slane %v1580_v36, 4 }
  0xe8   : > { %664 = vrot.lane.b32.xlu1 %v612_v21, %s2046_s23  ;;  %v1428_v21 = vsel %vm2124_vm2, %v1423_v38, %v1427_v60 }
  0xe9   : > { %v514_v47 = vpop.permute.xlu0 %513  ;;  %v2030_v26 = vld [vmem:[#allocation2 + $0x8] sm:$0xff]   ;;  %v1583_v33 = vor.u32 %v1582_v14, %v1578_v43 }
  0xea   : > { %564 = vst.msk [vmem:[#allocation2 + $0x10] sm:$0xf] %vm559_vm7, %v514_v47  ;;  %v532_v19 = vpop.permute.xlu1 %531  ;;  %1974 = vmatmul.mubr.msk.bf16.gmra.mxu0 %vm1696_vm15, %v2030_v26  ;;  %v1579_v47 = vsel %vm2124_vm2, %v1574_v48, %v1578_v43 }
  0xeb   : > { %650 = vrot.lane.b32.xlu0 %v605_v44, %s2046_s23  ;;  %573 = vst.msk [vmem:[#allocation2 + $0x34] sm:$0xf] %vm559_vm7, %v532_v19  ;;  %1977 = vmatprep.mubr.msk.bf16.mxu0 %vm2052_vm6, %v2051_v24  ;;  %v1586_v44 = vshll.u32 %v1565_v18, 16  ;;  %v1584_v55 = vrot.slane %v1583_v33, 4 }
  0xec   : > { %759 = vrot.lane.b32.xlu1 %v714_v13, %s2046_s23 }
  0xed   : > { %v530_v52 = vpop.permute.xlu0 %529  ;;  %v2031_v41 = vld [vmem:[#allocation2 + $0x28] sm:$0xff]   ;;  %v1588_v19 = vrot.slane %v1586_v44, 5 }
  0xee   : > { %572 = vst.msk [vmem:[#allocation2 + $0x30] sm:$0xf] %vm559_vm7, %v530_v52  ;;  %v641_v50 = vpop.permute.xlu1 %640  ;;  %1990 = vmatmul.mubr.msk.bf16.vlgmr.msra.gmra.mxu1 %vm1696_vm15, %v2031_v41 }
  0xef   : > { %757 = vrot.lane.b32.xlu0 %v713_v56, %s2046_s23  ;;  %691 = vst.msk [vmem:[#allocation2 + $0x10] sm:$0xf] %vm686_vm8, %v641_v50  ;;  %1993 = vmatprep.mubr.msk.bf16.mxu1 %vm2052_vm6, %v2051_v24 }
  0xf0   : > { %1093 = vrot.lane.b32.xlu1 %v1092_v4, %s2049_s26  ;;  %v1589_v4 = vsel %vm2124_vm2, %v1584_v55, %v1588_v19 }
  0xf1   : > { %v667_v61 = vpop.permute.xlu0 %666 }
  0xf2   : > { %704 = vst.msk [vmem:[#allocation2 + $0x44] sm:$0xf] %vm686_vm8, %v667_v61  ;;  %v657_v2 = vpop.permute.xlu1 %656 }
  0xf3   : > { %773 = vrot.lane.b32.xlu0 %v721_v8, %s2046_s23  ;;  %699 = vst.msk [vmem:[#allocation2 + $0x30] sm:$0xf] %vm686_vm8, %v657_v2 }
  0xf4   : > { %1029 = vrot.lane.b32.xlu1 %v935_v63, %s2049_s26 }
  0xf5   : > { %v643_v54 = vpop.permute.xlu0 %642 }
  0xf6   : > { %692 = vst.msk [vmem:[#allocation2 + $0x14] sm:$0xf] %vm686_vm8, %v643_v54  ;;  %v776_v40 = vpop.permute.xlu1 %775 }
  0xf7   : > { %1027 = vrot.lane.b32.xlu0 %v925_v6, %s2049_s26  ;;  %813 = vst.msk [vmem:[#allocation2 + $0x44] sm:$0xf] %vm795_vm9, %v776_v40 }
  0xf8   : > { %1149 = vrot.lane.b32.xlu1 %v1109_v11, %s2047_s24 }
  0xf9   : > { %v659_v5 = vpop.permute.xlu0 %658 }
  0xfa   : > { %700 = vst.msk [vmem:[#allocation2 + $0x34] sm:$0xf] %vm686_vm8, %v659_v5  ;;  %v752_v20 = vpop.permute.xlu1 %751 }
  0xfb   : > { %1043 = vrot.lane.b32.xlu0 %v1005_v35, %s2049_s26  ;;  %801 = vst.msk [vmem:[#allocation2 + $0x14] sm:$0xf] %vm795_vm9, %v752_v20  ;;  %v1431_v35 = vrot.slane %v1429_v7, 4 }
  0xfc   : > { %1202 = vrot.lane.b32.xlu1 %v1198_v1, %s2047_s24 }
  0xfd   : > { %v750_v27 = vpop.permute.xlu0 %749  ;;  %v1432_v3 = vor.u32 %v1431_v35, %v1427_v60 }
  0xfe   : > { %800 = vst.msk [vmem:[#allocation2 + $0x10] sm:$0xf] %vm795_vm9, %v750_v27  ;;  %v768_v22 = vpop.permute.xlu1 %767  ;;  %v1085_v10 = vld [vmem:[#allocation2 + $0x44] sm:$0xf] }
  0xff   : > { %1151 = vrot.lane.b32.xlu0 %v1110_v12, %s2047_s24  ;;  %809 = vst.msk [vmem:[#allocation2 + $0x34] sm:$0xf] %vm795_vm9, %v768_v22  ;;  %v1433_v28 = vrot.slane %v1432_v3, 4 }
 0x100   : > { %1258 = vrot.lane.b32.xlu1 %v1218_v25, %s2047_s24 }
 0x101   : > { %v766_v51 = vpop.permute.xlu0 %765  ;;  %v1438_v13 = vsel %vm2124_vm2, %v1433_v28, %v2412_v49  ;;  %vm1084_vm2 = vmand %vm1065_vm10, %vm323_vm0  ;;  %vm1599_vm0 = vcmask 290051  }
 0x102   : > { %808 = vst.msk [vmem:[#allocation2 + $0x30] sm:$0xf] %vm795_vm9, %v766_v51  ;;  %v1022_v42 = vpop.permute.xlu1 %1021  ;;  %vm1600_vm4 = vmand %vm1599_vm0, %vm591_vm5 }
 0x103   : > { %1204 = vrot.lane.b32.xlu0 %v1199_v53, %s2047_s24  ;;  %1071 = vst.msk [vmem:[#allocation2 + $0x14] sm:$0xf] %vm1065_vm10, %v1022_v42 }
 0x104   : > { %1311 = vrot.lane.b32.xlu1 %v1307_v17, %s2047_s24 }
 0x105   : > { %v1020_v15 = vpop.permute.xlu0 %1019 }
 0x106   : > { %1070 = vst.msk [vmem:[#allocation2 + $0x10] sm:$0xf] %vm1065_vm10, %v1020_v15  ;;  %v1038_v37 = vpop.permute.xlu1 %1037 }
 0x107   : > { %1260 = vrot.lane.b32.xlu0 %v1219_v0, %s2047_s24  ;;  %1079 = vst.msk [vmem:[#allocation2 + $0x34] sm:$0xf] %vm1065_vm10, %v1038_v37 }
 0x108   : > { %1510 = vrot.lane.b32.xlu1 %v1428_v21, %s2050_s27 }
 0x109   : > { %v1036_v57 = vpop.permute.xlu0 %1035 }
 0x10a   : > { %1078 = vst.msk [vmem:[#allocation2 + $0x30] sm:$0xf] %vm1065_vm10, %v1036_v57  ;;  %v1144_v26 = vpop.permute.xlu1 %1143 }
 0x10b   : > { %1313 = vrot.lane.b32.xlu0 %v1308_v23, %s2047_s24  ;;  %1187 = vst.msk [vmem:[#allocation2 + $0x14] sm:$0xf] %vm1181_vm11, %v1144_v26  ;;  %v2962_v26 = vld [vmem:[%s3027_s3] ss:$0 sm:$0xff] }
 0x10c   : > { %1592 = vrot.lane.b32.xlu1 %v1579_v47, %s2050_s27 }
 0x10d   : > { %v1142_v45 = vpop.permute.xlu0 %1141 }
 0x10e   : > { %1186 = vst.msk [vmem:[#allocation2 + $0x10] sm:$0xf] %vm1181_vm11, %v1142_v45  ;;  %v1160_v56 = vpop.permute.xlu1 %1159 }
 0x10f   : > { %1512 = vrot.lane.b32.xlu0 %v1438_v13, %s2050_s27  ;;  %1195 = vst.msk [vmem:[#allocation2 + $0x34] sm:$0xf] %vm1181_vm11, %v1160_v56 }
 0x111   : > { %v1158_v52 = vpop.permute.xlu0 %1157 }
 0x112   : > { %1194 = vst.msk [vmem:[#allocation2 + $0x30] sm:$0xf] %vm1181_vm11, %v1158_v52  ;;  %v1251_v41 = vpop.permute.xlu1 %1250 }
 0x113   : > { %1594 = vrot.lane.b32.xlu0 %v1589_v4, %s2050_s27  ;;  %1295 = vst.msk [vmem:[#allocation2 + $0x10] sm:$0xf] %vm1290_vm12, %v1251_v41 }
 0x115   : > { %v1525_v49 = vpop.permute.xlu0 %1524 }
 0x116   : > { %v1561_v50 = vsel %vm1559_vm3, %v1525_v49, %v1560_v59  ;;  %v1267_v8 = vpop.permute.xlu1 %1266 }
 0x117   : > { %1562 = vst [vmem:[#allocation2 + $0x3c] sm:$0xf] %v1561_v50  ;;  %1303 = vst.msk [vmem:[#allocation2 + $0x30] sm:$0xf] %vm1290_vm12, %v1267_v8 }
 0x119   : > { %v1253_v29 = vpop.permute.xlu0 %1252 }
 0x11a   : > { %1296 = vst.msk [vmem:[#allocation2 + $0x14] sm:$0xf] %vm1290_vm12, %v1253_v29  ;;  %v1503_v58 = vpop.permute.xlu1 %1502 }
 0x11b   : > { %1547 = vst.msk [vmem:[#allocation2 + $0x10] sm:$0xf] %vm1542_vm14, %v1503_v58 }
 0x11d   : > { %v1269_v61 = vpop.permute.xlu0 %1268 }
 0x11e   : > { %1304 = vst.msk [vmem:[#allocation2 + $0x34] sm:$0xf] %vm1290_vm12, %v1269_v61  ;;  %v1519_v63 = vpop.permute.xlu1 %1518  ;;  %v1601_v17 = vld [vmem:[#allocation2 + $0x3c] sm:$0x8] }
 0x11f   : > { %1555 = vst.msk [vmem:[#allocation2 + $0x30] sm:$0xf] %vm1542_vm14, %v1519_v63 }
 0x121   : > { %v1505_v2 = vpop.permute.xlu0 %1504 }
 0x122   : > { %1548 = vst.msk [vmem:[#allocation2 + $0x14] sm:$0xf] %vm1542_vm14, %v1505_v2  ;;  %v518_v6 = vpop.permute.xlu1 %517 }
 0x123   : > { %566 = vst.msk [vmem:[#allocation2 + $0x18] sm:$0xf] %vm559_vm7, %v518_v6 }
 0x125   : > { %v1521_v9 = vpop.permute.xlu0 %1520 }
 0x126   : > { %1556 = vst.msk [vmem:[#allocation2 + $0x34] sm:$0xf] %vm1542_vm14, %v1521_v9  ;;  %v534_v54 = vpop.permute.xlu1 %533 }
 0x127   : > { %574 = vst.msk [vmem:[#allocation2 + $0x38] sm:$0xf] %vm559_vm7, %v534_v54 }
 0x129   : > { %v520_v11 = vpop.permute.xlu0 %519  ;;  %v2032_v40 = vld [vmem:[#allocation2 + $0x10] sm:$0xff]  }
 0x12a   : > { %567 = vst.msk [vmem:[#allocation2 + $0x1c] sm:$0xf] %vm559_vm7, %v520_v11  ;;  %v647_v30 = vpop.permute.xlu1 %646  ;;  %1978 = vmatmul.mubr.msk.bf16.gmra.mxu0 %vm1696_vm15, %v2032_v40 }
 0x12b   : > { %694 = vst.msk [vmem:[#allocation2 + $0x1c] sm:$0xf] %vm686_vm8, %v647_v30  ;;  %1981 = vmatprep.mubr.msk.bf16.mxu0 %vm2052_vm6, %v2051_v24 }
 0x12d   : > { %v645_v5 = vpop.permute.xlu0 %644  ;;  %v2033_v1 = vld [vmem:[#allocation2 + $0x30] sm:$0xff]  }
 0x12e   : > { %693 = vst.msk [vmem:[#allocation2 + $0x18] sm:$0xf] %vm686_vm8, %v645_v5  ;;  %v1046_v32 = vpop.permute.xlu1 %1045  ;;  %1994 = vmatmul.mubr.msk.bf16.gmra.mxu1 %vm1696_vm15, %v2033_v1 }
 0x12f   : > { %v1086_v20 = vsel %vm1084_vm2, %v1046_v32, %v1085_v10  ;;  %1997 = vmatprep.mubr.msk.bf16.mxu1 %vm2052_vm6, %v2051_v24 }
 0x130   : > { %1087 = vst [vmem:[#allocation2 + $0x44] sm:$0xf] %v1086_v20 }
 0x131   : > { %v661_v12 = vpop.permute.xlu0 %660 }
 0x132   : > { %701 = vst.msk [vmem:[#allocation2 + $0x38] sm:$0xf] %vm686_vm8, %v661_v12  ;;  %v756_v46 = vpop.permute.xlu1 %755 }
 0x133   : > { %803 = vst.msk [vmem:[#allocation2 + $0x1c] sm:$0xf] %vm795_vm9, %v756_v46 }
 0x135   : > { %v754_v7 = vpop.permute.xlu0 %753 }
 0x136   : > { %802 = vst.msk [vmem:[#allocation2 + $0x18] sm:$0xf] %vm795_vm9, %v754_v7  ;;  %v1024_v27 = vpop.permute.xlu1 %1023 }
 0x137   : > { %1072 = vst.msk [vmem:[#allocation2 + $0x18] sm:$0xf] %vm1065_vm10, %v1024_v27  ;;  %v1098_v33 = vld [vmem:[#allocation2 + $0x44] sm:$0x8] }
 0x139   : > { %v770_v25 = vpop.permute.xlu0 %769 }
 0x13a   : > { %810 = vst.msk [vmem:[#allocation2 + $0x38] sm:$0xf] %vm795_vm9, %v770_v25  ;;  %v1040_v16 = vpop.permute.xlu1 %1039 }
 0x13b   : > { %1080 = vst.msk [vmem:[#allocation2 + $0x38] sm:$0xf] %vm1065_vm10, %v1040_v16 }
 0x13d   : > { %v1026_v31 = vpop.permute.xlu0 %1025 }
 0x13e   : > { %1073 = vst.msk [vmem:[#allocation2 + $0x1c] sm:$0xf] %vm1065_vm10, %v1026_v31  ;;  %v1148_v34 = vpop.permute.xlu1 %1147 }
 0x13f   : > { %1189 = vst.msk [vmem:[#allocation2 + $0x1c] sm:$0xf] %vm1181_vm11, %v1148_v34 }
 0x141   : > { %v1146_v22 = vpop.permute.xlu0 %1145 }
 0x142   : > { %1188 = vst.msk [vmem:[#allocation2 + $0x18] sm:$0xf] %vm1181_vm11, %v1146_v22  ;;  %v1255_v53 = vpop.permute.xlu1 %1254 }
 0x143   : > { %1297 = vst.msk [vmem:[#allocation2 + $0x18] sm:$0xf] %vm1290_vm12, %v1255_v53 }
 0x145   : > { %v1162_v60 = vpop.permute.xlu0 %1161 }
 0x146   : > { %1196 = vst.msk [vmem:[#allocation2 + $0x38] sm:$0xf] %vm1181_vm11, %v1162_v60  ;;  %v1271_v35 = vpop.permute.xlu1 %1270 }
 0x147   : > { %1305 = vst.msk [vmem:[#allocation2 + $0x38] sm:$0xf] %vm1290_vm12, %v1271_v35 }
 0x149   : > { %v1257_v62 = vpop.permute.xlu0 %1256 }
 0x14a   : > { %1298 = vst.msk [vmem:[#allocation2 + $0x1c] sm:$0xf] %vm1290_vm12, %v1257_v62  ;;  %v1507_v36 = vpop.permute.xlu1 %1506 }
 0x14b   : > { %1549 = vst.msk [vmem:[#allocation2 + $0x18] sm:$0xf] %vm1542_vm14, %v1507_v36 }
 0x14d   : > { %v1591_v51 = vpop.permute.xlu0 %1590 }
 0x14e   : > { %v1602_v38 = vsel %vm1600_vm4, %v1591_v51, %v1601_v17  ;;  %v1523_v39 = vpop.permute.xlu1 %1522 }
 0x14f   : > { %1603 = vst [vmem:[#allocation2 + $0x3c] sm:$0x8] %v1602_v38  ;;  %1557 = vst.msk [vmem:[#allocation2 + $0x38] sm:$0xf] %vm1542_vm14, %v1523_v39 }
 0x151   : > { %v1509_v42 = vpop.permute.xlu0 %1508 }
 0x152   : > { %1550 = vst.msk [vmem:[#allocation2 + $0x1c] sm:$0xf] %vm1542_vm14, %v1509_v42  ;;  %v524_v0 = vpop.permute.xlu1 %523 }
 0x153   : > { %569 = vst.msk [vmem:[#allocation2 + $0x24] sm:$0xf] %vm559_vm7, %v524_v0 }
 0x155   : > { %v522_v3 = vpop.permute.xlu0 %521 }
 0x156   : > { %568 = vst.msk [vmem:[#allocation2 + $0x20] sm:$0xf] %vm559_vm7, %v522_v3  ;;  %v649_v43 = vpop.permute.xlu1 %648  ;;  %v2034_v14 = vld [vmem:[#allocation2 + $0x38] sm:$0xff]  }
 0x157   : > { %695 = vst.msk [vmem:[#allocation2 + $0x20] sm:$0xf] %vm686_vm8, %v649_v43  ;;  %1998 = vmatmul.mubr.msk.bf16.gmra.mxu1 %vm1696_vm15, %v2034_v14 }
 0x158   : > { %2001 = vmatprep.mubr.msk.bf16.mxu1 %vm2052_vm6, %v2051_v24 }
 0x159   : > { %v538_v15 = vpop.permute.xlu0 %537  ;;  %v2035_v21 = vld [vmem:[#allocation2 + $0x18] sm:$0xff]  }
 0x15a   : > { %576 = vst.msk [vmem:[#allocation2 + $0x40] sm:$0xf] %vm559_vm7, %v538_v15  ;;  %v665_v48 = vpop.permute.xlu1 %664  ;;  %1982 = vmatmul.mubr.msk.bf16.gmra.mxu0 %vm1696_vm15, %v2035_v21 }
 0x15b   : > { %703 = vst.msk [vmem:[#allocation2 + $0x40] sm:$0xf] %vm686_vm8, %v665_v48  ;;  %1985 = vmatprep.mubr.msk.bf16.mxu0 %vm2052_vm6, %v2051_v24 }
 0x15d   : > { %v651_v18 = vpop.permute.xlu0 %650 }
 0x15e   : > { %696 = vst.msk [vmem:[#allocation2 + $0x24] sm:$0xf] %vm686_vm8, %v651_v18  ;;  %v760_v37 = vpop.permute.xlu1 %759 }
 0x15f   : > { %805 = vst.msk [vmem:[#allocation2 + $0x24] sm:$0xf] %vm795_vm9, %v760_v37 }
 0x161   : > { %v758_v23 = vpop.permute.xlu0 %757 }
 0x162   : > { %804 = vst.msk [vmem:[#allocation2 + $0x20] sm:$0xf] %vm795_vm9, %v758_v23  ;;  %v1094_v28 = vpop.permute.xlu1 %1093 }
 0x163   : > { %v1099_v44 = vsel %vm1097_vm13, %v1094_v28, %v1098_v33 }
 0x164   : > { %1100 = vst [vmem:[#allocation2 + $0x44] sm:$0x8] %v1099_v44 }
 0x165   : > { %v774_v57 = vpop.permute.xlu0 %773 }
 0x166   : > { %812 = vst.msk [vmem:[#allocation2 + $0x40] sm:$0xf] %vm795_vm9, %v774_v57  ;;  %v1030_v24 = vpop.permute.xlu1 %1029 }
 0x167   : > { %1075 = vst.msk [vmem:[#allocation2 + $0x24] sm:$0xf] %vm1065_vm10, %v1030_v24 }
 0x169   : > { %v1028_v47 = vpop.permute.xlu0 %1027 }
 0x16a   : > { %1074 = vst.msk [vmem:[#allocation2 + $0x20] sm:$0xf] %vm1065_vm10, %v1028_v47  ;;  %v1150_v13 = vpop.permute.xlu1 %1149  ;;  %v1762_v55 = vpop.f32.mrf.mxu0 }
 0x16b   : > { %1190 = vst.msk [vmem:[#allocation2 + $0x20] sm:$0xf] %vm1181_vm11, %v1150_v13  ;;  %v1763_v19 = vadd.f32 %v2962_v26, %v1762_v55 }
 0x16c   : > { %v1971_v56 = vpop.f32.mrf.mxu0 }
 0x16d   : > { %v1044_v45 = vpop.permute.xlu0 %1043  ;;  %1833 = vst [vmem:[%s2968_s22] sm:$0xff] %v1763_v19 }
 0x16e   : > { %1082 = vst.msk [vmem:[#allocation2 + $0x40] sm:$0xf] %vm1065_vm10, %v1044_v45  ;;  %v1203_v4 = vpop.permute.xlu1 %1202  ;;  %v1765_v52 = vpop.f32.mrf.mxu0 }
 0x16f   : > { %1208 = vst.msk [vmem:[#allocation2 + $0x40] sm:$0xf] %vm1181_vm11, %v1203_v4  ;;  %v1766_v41 = vadd.f32 %v2962_v26, %v1765_v52 }
 0x170   : > { %v1972_v59 = vpop.f32.mrf.mxu0 }
 0x171   : > { %v1152_v49 = vpop.permute.xlu0 %1151  ;;  %1834 = vst [vmem:[%s2968_s22 + $0x8] sm:$0xff] %v1766_v41 }
 0x172   : > { %1191 = vst.msk [vmem:[#allocation2 + $0x24] sm:$0xf] %vm1181_vm11, %v1152_v49  ;;  %v1259_v50 = vpop.permute.xlu1 %1258 }
 0x173   : > { %1299 = vst.msk [vmem:[#allocation2 + $0x20] sm:$0xf] %vm1290_vm12, %v1259_v50 }
 0x175   : > { %v1205_v8 = vpop.permute.xlu0 %1204 }
 0x176   : > { %1209 = vst.msk [vmem:[#allocation2 + $0x44] sm:$0xf] %vm1181_vm11, %v1205_v8  ;;  %v1312_v29 = vpop.permute.xlu1 %1311 }
 0x177   : > { %1317 = vst.msk [vmem:[#allocation2 + $0x40] sm:$0xf] %vm1290_vm12, %v1312_v29 }
 0x179   : > { %v1261_v58 = vpop.permute.xlu0 %1260 }
 0x17a   : > { %1300 = vst.msk [vmem:[#allocation2 + $0x24] sm:$0xf] %vm1290_vm12, %v1261_v58  ;;  %v1511_v61 = vpop.permute.xlu1 %1510 }
 0x17b   : > { %1551 = vst.msk [vmem:[#allocation2 + $0x20] sm:$0xf] %vm1542_vm14, %v1511_v61 }
 0x17d   : > { %v1314_v63 = vpop.permute.xlu0 %1313 }
 0x17e   : > { %1318 = vst.msk [vmem:[#allocation2 + $0x44] sm:$0xf] %vm1290_vm12, %v1314_v63  ;;  %v1593_v2 = vpop.permute.xlu1 %1592 }
 0x17f   : > { %1604 = vst.msk [vmem:[#allocation2 + $0x40] sm:$0xf] %vm1542_vm14, %v1593_v2 }
 0x181   : > { %v1513_v6 = vpop.permute.xlu0 %1512 }
 0x182   : > { %1552 = vst.msk [vmem:[#allocation2 + $0x24] sm:$0xf] %vm1542_vm14, %v1513_v6 }
 0x185   : > { %v1595_v9 = vpop.permute.xlu0 %1594 }
 0x186   : > { %1605 = vst.msk [vmem:[#allocation2 + $0x44] sm:$0xf] %vm1542_vm14, %v1595_v9 }
 0x189   : > { %v2036_v54 = vld [vmem:[#allocation2 + $0x20] sm:$0xff]  }
 0x18a   : > { %1986 = vmatmul.mubr.msk.bf16.gmra.mxu0 %vm1696_vm15, %v2036_v54 }
 0x18d   : > { %v2037_v11 = vld [vmem:[#allocation2 + $0x40] sm:$0xff]  }
 0x18e   : > { %2002 = vmatmul.mubr.msk.bf16.gmra.mxu1 %vm1696_vm15, %v2037_v11 }
 0x1aa   : > { %v1770_v40 = vpop.f32.mrf.mxu0 }
 0x1ab   : > { %v1771_v30 = vadd.f32 %v2962_v26, %v1770_v40 }
 0x1ac   : > { %v1975_v5 = vpop.f32.mrf.mxu0 }
 0x1ad   : > { %1835 = vst [vmem:[%s2968_s22 + $0x10] sm:$0xff] %v1771_v30 }
 0x1ae   : > { %v1773_v1 = vpop.f32.mrf.mxu0  ;;  %v1802_v32 = vpop.f32.mrf.mxu1 }
 0x1af   : > { %v1774_v10 = vadd.f32 %v2962_v26, %v1773_v1  ;;  %v1803_v20 = vadd.f32 %v2962_v26, %v1802_v32 }
 0x1b0   : > { %v1976_v12 = vpop.f32.mrf.mxu0  ;;  %v1991_v46 = vpop.f32.mrf.mxu1 }
 0x1b1   : > { %1836 = vst [vmem:[%s2968_s22 + $0x18] sm:$0xff] %v1774_v10  ;;  %1843 = vst [vmem:[%s2968_s22 + $0x50] sm:$0xff] %v1803_v20 }
 0x1b2   : > { %v1805_v7 = vpop.f32.mrf.mxu1 }
 0x1b3   : > { %v1806_v27 = vadd.f32 %v2962_v26, %v1805_v7 }
 0x1b4   : > { %v1992_v25 = vpop.f32.mrf.mxu1 }
 0x1b5   : > { %1844 = vst [vmem:[%s2968_s22 + $0x58] sm:$0xff] %v1806_v27 }
 0x1ea   : > { %v1778_v16 = vpop.f32.mrf.mxu0 }
 0x1eb   : > { %v1779_v31 = vadd.f32 %v2962_v26, %v1778_v16 }
 0x1ec   : > { %v1979_v34 = vpop.f32.mrf.mxu0 }
 0x1ed   : > { %1837 = vst [vmem:[%s2968_s22 + $0x20] sm:$0xff] %v1779_v31 }
 0x1ee   : > { %v1781_v22 = vpop.f32.mrf.mxu0  ;;  %v1810_v53 = vpop.f32.mrf.mxu1 }
 0x1ef   : > { %v1782_v60 = vadd.f32 %v2962_v26, %v1781_v22  ;;  %v1811_v35 = vadd.f32 %v2962_v26, %v1810_v53 }
 0x1f0   : > { %v1980_v62 = vpop.f32.mrf.mxu0  ;;  %v1995_v36 = vpop.f32.mrf.mxu1 }
 0x1f1   : > { %1838 = vst [vmem:[%s2968_s22 + $0x28] sm:$0xff] %v1782_v60  ;;  %1845 = vst [vmem:[%s2968_s22 + $0x60] sm:$0xff] %v1811_v35 }
 0x1f2   : > { %v1813_v51 = vpop.f32.mrf.mxu1 }
 0x1f3   : > { %v1814_v17 = vadd.f32 %v2962_v26, %v1813_v51 }
 0x1f4   : > { %v1996_v38 = vpop.f32.mrf.mxu1 }
 0x1f5   : > { %1846 = vst [vmem:[%s2968_s22 + $0x68] sm:$0xff] %v1814_v17 }
 0x217   : > { %v1818_v39 = vpop.f32.mrf.mxu1 }
 0x218   : > { %v1819_v42 = vadd.f32 %v2962_v26, %v1818_v39 }
 0x219   : > { %v1999_v0 = vpop.f32.mrf.mxu1 }
 0x21a   : > { %1847 = vst [vmem:[%s2968_s22 + $0x70] sm:$0xff] %v1819_v42  ;;  %v1786_v3 = vpop.f32.mrf.mxu0 }
 0x21b   : > { %v1787_v43 = vadd.f32 %v2962_v26, %v1786_v3  ;;  %v1821_v14 = vpop.f32.mrf.mxu1 }
 0x21c   : > { %v1983_v15 = vpop.f32.mrf.mxu0  ;;  %v1822_v21 = vadd.f32 %v2962_v26, %v1821_v14 }
 0x21d   : > { %1839 = vst [vmem:[%s2968_s22 + $0x30] sm:$0xff] %v1787_v43  ;;  %v2000_v48 = vpop.f32.mrf.mxu1 }
 0x21e   : > { %1848 = vst [vmem:[%s2968_s22 + $0x78] sm:$0xff] %v1822_v21  ;;  %v1789_v18 = vpop.f32.mrf.mxu0 }
 0x21f   : > { %v1790_v37 = vadd.f32 %v2962_v26, %v1789_v18 }
 0x220   : > { %v1984_v23 = vpop.f32.mrf.mxu0 }
 0x221   : > { %1840 = vst [vmem:[%s2968_s22 + $0x38] sm:$0xff] %v1790_v37 }
 0x24a   : > { %v1794_v28 = vpop.f32.mrf.mxu0 }
 0x24b   : > { %v1795_v33 = vadd.f32 %v2962_v26, %v1794_v28 }
 0x24c   : > { %v1987_v44 = vpop.f32.mrf.mxu0 }
 0x24d   : > { %1841 = vst [vmem:[%s2968_s22 + $0x40] sm:$0xff] %v1795_v33 }
 0x24e   : > { %v1797_v57 = vpop.f32.mrf.mxu0  ;;  %v1826_v24 = vpop.f32.mrf.mxu1 }
 0x24f   : > { %v1798_v47 = vadd.f32 %v2962_v26, %v1797_v57  ;;  %v1827_v13 = vadd.f32 %v2962_v26, %v1826_v24 }
 0x250   : > { %v1988_v55 = vpop.f32.mrf.mxu0  ;;  %v2003_v19 = vpop.f32.mrf.mxu1 }
 0x251   : > { %1842 = vst [vmem:[%s2968_s22 + $0x48] sm:$0xff] %v1798_v47  ;;  %1849 = vst [vmem:[%s2968_s22 + $0x80] sm:$0xff] %v1827_v13 }
 0x252   : > { %v1829_v45 = vpop.f32.mrf.mxu1 }
 0x253   : > { %v1830_v56 = vadd.f32 %v2962_v26, %v1829_v45 }
 0x254   : > { %v2004_v4 = vpop.f32.mrf.mxu1 }
 0x255   : > { %1850 = vst [vmem:[%s2968_s22 + $0x88] sm:$0xff] %v1830_v56 }
 0x256 PF: > { %s14_s15 = sadd.s32 1, %s2044_s15  }
 0x257   : > { %p11_p6 = scmp.ge.s32.totalorder %s14_s15, 4  }
 0x259   :  { %13 = sbr.rel (!%p11_p6) target bundleno = 1 (0x1), region = 69 }

// kernel: _conv_forward.1
= control target key start
LH: loop header
LB: loop body
LE: loop exit
PB: predicated region body
PF: predicated region fallthrough
CT: control target
= control target key end

     0   :  { %s2078_s15 = smov 0   ;;  %s3024_s0 = inlined_call_operand.vmem [shape: bf16[432,16], index: 0, kind: input, shape index: {}, may-alias: {0,1}]   ;;  %s3025_s1 = inlined_call_operand.vmem [shape: bf16[432,16], index: 1, kind: input, shape index: {}, may-alias: {0,1}]   ;;  %s3026_s2 = inlined_call_operand.vmem [shape: bf16[36,128], index: 2, kind: input, shape index: {}]   ;;  %s3027_s3 = inlined_call_operand.vmem [shape: f32[1,128], index: 3, kind: input, shape index: {}]   ;;  %s3028_s4 = inlined_call_operand.vmem [shape: f32[288,128], index: 4, kind: output, shape index: {}]  }
   0x1 LB: > { %s1919_s16 = sadd.s32 4294967295, %s2044_s15   ;;  %p1923_p0 = scmp.ge.s32.totalorder %s2044_s15, 1  ;;  %s2044_s15 = sphi %s2078_s15, %s14_s15  }
   0x2   : > { %p178_p1 = scmp.lt.s32.totalorder %s2044_s15, 3 }
   0x4   : > { %p179_p2 = pnand %p1923_p0, %p178_p1 }
   0x5   : > { %s2088_s17 = smul.u32 (!%p179_p2), 18, %s1919_s16  ;;  %s2046_s23 = smov (!%p179_p2), 4  }
   0x6   : > { %182 = sbr.rel (%p179_p2) target bundleno = 598 (0x256), region = 36  ;;  %s2047_s24 = smov (!%p179_p2), 24  }
   0x7   : > { %p211_p3 = scmp.lt.s32.totalorder (!%p179_p2), %s2088_s17, 53  ;;  %s2048_s25 = smov (!%p179_p2), 8  }
   0x8   : > { %s2049_s26 = smov (!%p179_p2), 12   ;;  %s2050_s27 = smov (!%p179_p2), 32  }
   0x9   : > { %s2281_s28 = sadd.s32 (!%p179_p2), 1, %s1919_s16  ;;  %p225_p5 = scmp.lt.s32.totalorder (!%p179_p2), %s2088_s17, 35 }
   0xa   : > { %s217_s29 = smul.u32 (!%p179_p2), 18, %s2281_s28 }
   0xb   : > { %s212_s18 = scalar_select %p211_p3, %s2088_s17, 53  ;;  %vm323_vm0 = vsmask.f32 3328  ;;  %vm324_vm1 = vsmask.f32 7440  ;;  %vm249_vm3 = vcmask 27648  }
   0xc   : > { %vm2124_vm2 = vmor %vm323_vm0, %vm324_vm1  ;;  %vm286_vm4 = vcmask 60448   ;;  %p2306_p4 = scmp.lt.s32.totalorder %s217_s29, 53  ;;  %vm1724_vm5 = vcmask 1041408   ;;  %vm2052_vm6 = vmmov 0   ;;  %vm559_vm7 = vcmask 93248   ;;  %s3035_s17 = smov (!%p225_p5, %s2088_s17), 35 }
   0xd   : > { %s1924_s19 = sshll.u32 %s212_s18, 2  ;;  %vm686_vm8 = vcmask 126048   ;;  %vm795_vm9 = vcmask 158848   ;;  %vm1065_vm10 = vcmask 191648   ;;  %vm1181_vm11 = vcmask 224448   ;;  %vm578_vm13 = vmand %vm559_vm7, %vm323_vm0  ;;  %s1926_s16 = sshll.u32 %s3035_s17, 3 }
   0xe   : > { %s2095_s22 = scalar_lea.vmem %s3024_s0, %s1924_s19  ;;  %s3033_s29 = smov (!%p2306_p4, %s217_s29), 53  ;;  %vm1290_vm12 = vcmask 257248   ;;  %vm1542_vm14 = vcmask 290048   ;;  %vm1696_vm15 = vcmask 293888   ;;  %vm590_vm1 = vcmask 93251  }
   0xf   : > { %v596_v0 = vld [vmem:[%s2095_s22] sm:$0xf]  ;;  %v597_v2 = vld [vmem:[%s2095_s22 + $0x4] sm:$0xf]  ;;  %v1101_v3 = vld [vmem:[%s2095_s22 + $0x8] sm:$0xf] }
  0x10   : > { %v705_v1 = vld [vmem:[%s2095_s22] sm:$0xf]  ;;  %632 = vrot.lane.b32.xlu1 %v596_v0, %s2046_s23  ;;  %v306_v5 = vld [vmem:[%s2095_s22 + $0x4] sm:$0xf]  ;;  %v2106_v10 = vld [vmem:[%s2095_s22 + $0x8] sm:$0xf] }
  0x11   : > { %741 = vrot.lane.b32.xlu0 %v705_v1, %s2046_s23  ;;  %v305_v4 = vld [vmem:[%s2095_s22] sm:$0xf]  ;;  %v336_v8 = vshll.u32 %v306_v5, 16  ;;  %v340_v9 = vshrl.u32 %v306_v5, 16  ;;  %v346_v11 = vshll.u32 %v2106_v10, 16  ;;  %s1925_s11 = sshll.u32 %s3033_s29, 2 }
  0x12   : > { %v327_v6 = vshrl.u32 %v305_v4, 16  ;;  %v330_v7 = vshll.u32 %v305_v4, 16  ;;  %v815_v12 = vld [vmem:[%s2095_s22 + $0x4] sm:$0xf]  ;;  %v2111_v13 = vld [vmem:[%s2095_s22 + $0x8] sm:$0xf]  ;;  %s2376_s14 = scalar_lea.vmem %s3025_s1, %s1925_s11 }
  0x13   : > { %v338_v16 = vrot.slane %v336_v8, 5  ;;  %v342_v17 = vrot.slane %v340_v9, 4  ;;  %v814_v18 = vld [vmem:[%s2095_s22] sm:$0xf]  ;;  %v706_v19 = vld [vmem:[%s2095_s22 + $0x4] sm:$0xf] }
  0x14   : > { %634 = vrot.lane.b32.xlu1 %v597_v2, %s2046_s23  ;;  %v329_v14 = vrot.slane %v327_v6, 4  ;;  %v332_v15 = vrot.slane %v330_v7, 5  ;;  %v842_v20 = vshll.u32 %v815_v12, 16  ;;  %v846_v21 = vshrl.u32 %v815_v12, 16  ;;  %v322_v27 = vld [vmem:[%s2095_s22 + $0x44] sm:$0xf] }
  0x15   : > { %1133 = vrot.lane.b32.xlu0 %v1101_v3, %s2047_s24  ;;  %v852_v22 = vshll.u32 %v2111_v13, 16  ;;  %v343_v24 = vor.u32 %v342_v17, %v338_v16  ;;  %v2118_v25 = vrot.slane %v346_v11, 5  ;;  %v833_v26 = vshrl.u32 %v814_v18, 16  ;;  %v1319_v28 = vld [vmem:[%s2095_s22 + $0x8] sm:$0xf] }
  0x16   : > { %v333_v23 = vor.u32 %v332_v15, %v329_v14  ;;  %v1102_v30 = vld [vmem:[%s2095_s22 + $0xc] sm:$0xf]  ;;  %v844_v31 = vrot.slane %v842_v20, 5  ;;  %v848_v32 = vrot.slane %v846_v21, 4  ;;  %v836_v34 = vshll.u32 %v814_v18, 16 }
  0x17   : > { %v2129_v33 = vrot.slane %v852_v22, 5  ;;  %v344_v36 = vrot.slane %v343_v24, 4  ;;  %v835_v37 = vrot.slane %v833_v26, 4  ;;  %v496_v38 = vshll.u32 %v322_v27, 16  ;;  %v1320_v39 = vld [vmem:[%s2095_s22 + $0xc] sm:$0xf] }
  0x18   : > { %743 = vrot.lane.b32.xlu1 %v706_v19, %s2046_s23  ;;  %v334_v35 = vrot.slane %v333_v23, 4  ;;  %v849_v40 = vor.u32 %v848_v32, %v844_v31  ;;  %v838_v41 = vrot.slane %v836_v34, 5  ;;  %v500_v42 = vshrl.u32 %v322_v27, 16  ;;  %v320_v44 = vld [vmem:[%s2095_s22 + $0x3c] sm:$0xf] }
  0x19   : > { %v1336_v43 = vshrl.u32 %v1319_v28, 16  ;;  %v349_v46 = vsel %vm2124_vm2, %v344_v36, %v2118_v25  ;;  %v2139_v47 = vrot.slane %v496_v38, 5  ;;  %v1339_v48 = vshll.u32 %v1319_v28, 16  ;;  %v321_v53 = vld [vmem:[%s2095_s22 + $0x40] sm:$0xf] }
  0x1a   : > { %v339_v45 = vsel %vm2124_vm2, %v334_v35, %v338_v16  ;;  %v850_v49 = vrot.slane %v849_v40, 4  ;;  %v839_v50 = vor.u32 %v838_v41, %v835_v37  ;;  %v502_v51 = vrot.slane %v500_v42, 4  ;;  %v308_v0 = vld [vmem:[%s2095_s22 + $0xc] sm:$0xf]  ;;  %v2153_v5 = vld [vmem:[%s2095_s22 + $0x10] sm:$0xf] }
  0x1b   : > { %505 = vrot.lane.b32.xlu0 %v339_v45, %s2048_s25  ;;  %v1338_v52 = vrot.slane %v1336_v43, 4  ;;  %v1341_v54 = vrot.slane %v1339_v48, 5  ;;  %v1345_v55 = vshll.u32 %v1320_v39, 16  ;;  %v1349_v56 = vshrl.u32 %v1320_v39, 16  ;;  %v1210_v8 = vld [vmem:[%s2095_s22 + $0x8] sm:$0xf] }
  0x1c   : > { %1135 = vrot.lane.b32.xlu1 %v1102_v30, %s2047_s24  ;;  %v476_v57 = vshll.u32 %v320_v44, 16  ;;  %v855_v58 = vsel %vm2124_vm2, %v850_v49, %v2129_v33  ;;  %v840_v59 = vrot.slane %v839_v50, 4  ;;  %v480_v60 = vshrl.u32 %v320_v44, 16  ;;  %v2166_v16 = vld [vmem:[%s2095_s22 + $0x10] sm:$0xf] }
  0x1d   : > { %v1342_v61 = vor.u32 %v1341_v54, %v1338_v52  ;;  %v486_v63 = vshll.u32 %v321_v53, 16  ;;  %v503_v1 = vor.u32 %v502_v51, %v2139_v47  ;;  %v1347_v2 = vrot.slane %v1345_v55, 5  ;;  %v316_v19 = vld [vmem:[%s2095_s22 + $0x2c] sm:$0xf]  ;;  %v315_v30 = vld [vmem:[%s2095_s22 + $0x28] sm:$0xf] }
  0x1e   : > { %v2147_v62 = vrot.slane %v476_v57, 5  ;;  %v482_v3 = vrot.slane %v480_v60, 4  ;;  %v490_v4 = vshrl.u32 %v321_v53, 16  ;;  %v350_v6 = vshrl.u32 %v2106_v10, 16  ;;  %v2181_v37 = vld [vmem:[%s2095_s22 + $0x30] sm:$0xf] }
  0x1f   : > { %507 = vrot.lane.b32.xlu0 %v349_v46, %s2048_s25  ;;  %v845_v7 = vsel %vm2124_vm2, %v840_v59, %v844_v31  ;;  %v1343_v9 = vrot.slane %v1342_v61, 4  ;;  %v1351_v11 = vrot.slane %v1349_v56, 4  ;;  %v2161_v14 = vrot.slane %v486_v63, 5  ;;  %v1211_v42 = vld [vmem:[%s2095_s22 + $0xc] sm:$0xf] }
  0x20   : > { %1013 = vrot.lane.b32.xlu1 %v855_v58, %s2049_s26  ;;  %v483_v12 = vor.u32 %v482_v3, %v2147_v62  ;;  %v2163_v15 = vrot.slane %v490_v4, 4  ;;  %v356_v17 = vshll.u32 %v308_v0, 16  ;;  %v1355_v10 = vshll.u32 %v2153_v5, 16  ;;  %v830_v52 = vld [vmem:[%s2095_s22 + $0x40] sm:$0xf] }
  0x21   : > { %v360_v18 = vshrl.u32 %v308_v0, 16  ;;  %v504_v20 = vrot.slane %v503_v1, 4  ;;  %v1352_v22 = vor.u32 %v1351_v11, %v1347_v2  ;;  %v366_v27 = vshll.u32 %v2166_v16, 16  ;;  %v606_v11 = vld [vmem:[%s2095_s22 + $0x28] sm:$0xf] }
  0x22   : > { %v493_v21 = vor.u32 %v2163_v15, %v2161_v14  ;;  %v358_v23 = vrot.slane %v356_v17, 5  ;;  %v484_v24 = vrot.slane %v483_v12, 4  ;;  %v352_v28 = vrot.slane %v350_v6, 4  ;;  %v598_v6 = vld [vmem:[%s2095_s22 + $0x8] sm:$0xf] }
  0x23   : > { %1011 = vrot.lane.b32.xlu0 %v845_v7, %s2049_s26  ;;  %v362_v26 = vrot.slane %v360_v18, 4  ;;  %v1348_v31 = vsel %vm2124_vm2, %v1343_v9, %v1347_v2  ;;  %v436_v32 = vshll.u32 %v316_v19, 16  ;;  %v440_v34 = vshrl.u32 %v316_v19, 16  ;;  %v829_v12 = vld [vmem:[%s2095_s22 + $0x3c] sm:$0xf] }
  0x24   : > { %1242 = vrot.lane.b32.xlu1 %v1210_v8, %s2047_s24  ;;  %v2178_v35 = vrot.slane %v1355_v10, 5  ;;  %v1353_v38 = vrot.slane %v1352_v22, 4  ;;  %v426_v41 = vshll.u32 %v315_v30, 16  ;;  %v489_v43 = vsel %vm2124_vm2, %v484_v24, %v2161_v14  ;;  %v611_v8 = vld [vmem:[%s2095_s22 + $0x3c] sm:$0xf] }
  0x25   : > { %v363_v36 = vor.u32 %v362_v26, %v358_v23  ;;  %v438_v39 = vrot.slane %v436_v32, 5  ;;  %v442_v40 = vrot.slane %v440_v34, 4  ;;  %v2189_v44 = vrot.slane %v366_v27, 5  ;;  %v824_v17 = vld [vmem:[%s2095_s22 + $0x28] sm:$0xf] }
  0x26   : > { %v353_v45 = vor.u32 %v352_v28, %v2118_v25  ;;  %v430_v46 = vshrl.u32 %v315_v30, 16  ;;  %v446_v50 = vshll.u32 %v2181_v37, 16  ;;  %v2193_v51 = vrot.slane %v426_v41, 5  ;;  %v599_v18 = vld [vmem:[%s2095_s22 + $0xc] sm:$0xf] }
  0x27   : > { %539 = vrot.lane.b32.xlu0 %v504_v20, %s2048_s25  ;;  %v364_v48 = vrot.slane %v363_v36, 4  ;;  %v443_v49 = vor.u32 %v442_v40, %v438_v39  ;;  %v1358_v54 = vsel %vm2124_vm2, %v1353_v38, %v2178_v35  ;;  %v992_v56 = vshll.u32 %v830_v52, 16  ;;  %v720_v19 = vld [vmem:[%s2095_s22 + $0x3c] sm:$0xf]  ;;  %v817_v22 = vld [vmem:[%s2095_s22 + $0xc] sm:$0xf] }
  0x28   : > { %1494 = vrot.lane.b32.xlu1 %v1348_v31, %s2050_s27  ;;  %v432_v53 = vrot.slane %v430_v46, 4  ;;  %v354_v55 = vrot.slane %v353_v45, 4  ;;  %v996_v57 = vshrl.u32 %v830_v52, 16  ;;  %v2205_v60 = vrot.slane %v446_v50, 5  ;;  %v607_v28 = vld [vmem:[%s2095_s22 + $0x2c] sm:$0xf] }
  0x29   : > { %v369_v58 = vsel %vm2124_vm2, %v364_v48, %v2189_v44  ;;  %v444_v59 = vrot.slane %v443_v49, 4  ;;  %v2207_v61 = vrot.slane %v992_v56, 5  ;;  %v370_v7 = vshrl.u32 %v2166_v16, 16  ;;  %v825_v36 = vld [vmem:[%s2095_s22 + $0x2c] sm:$0xf] }
  0x2a   : > { %v433_v25 = vor.u32 %v432_v53, %v2193_v51  ;;  %v2209_v63 = vrot.slane %v996_v57, 4  ;;  %v359_v0 = vsel %vm2124_vm2, %v354_v55, %v358_v23  ;;  %v856_v9 = vshrl.u32 %v2111_v13, 16  ;;  %v708_v38 = vld [vmem:[%s2095_s22 + $0xc] sm:$0xf]  ;;  %v707_v41 = vld [vmem:[%s2095_s22 + $0x8] sm:$0xf] }
  0x2b   : > { %1244 = vrot.lane.b32.xlu0 %v1211_v42, %s2047_s24  ;;  %v449_v3 = vsel %vm2124_vm2, %v444_v59, %v2205_v60  ;;  %v2233_v10 = vrot.slane %v370_v7, 4  ;;  %v982_v16 = vshll.u32 %v829_v12, 16  ;;  %v986_v20 = vshrl.u32 %v829_v12, 16  ;;  %v716_v42 = vld [vmem:[%s2095_s22 + $0x2c] sm:$0xf] }
  0x2c   : > { %535 = vrot.lane.b32.xlu1 %v489_v43, %s2048_s25  ;;  %v434_v1 = vrot.slane %v433_v25, 4  ;;  %v999_v2 = vor.u32 %v2209_v63, %v2207_v61  ;;  %v858_v23 = vrot.slane %v856_v9, 4  ;;  %v932_v24 = vshll.u32 %v824_v17, 16  ;;  %v231_v46 = vld [vmem:[%s2095_s22] sm:$0xf] }
  0x2d   : > { %v936_v13 = vshrl.u32 %v824_v17, 16  ;;  %v373_v26 = vor.u32 %v2233_v10, %v2189_v44  ;;  %v450_v27 = vshrl.u32 %v2181_v37, 16  ;;  %v862_v30 = vshll.u32 %v817_v22, 16  ;;  %v268_v48 = vld [vmem:[%s2095_s22] sm:$0xf] }
  0x2e   : > { %v439_v4 = vsel %vm2124_vm2, %v434_v1, %v438_v39  ;;  %v866_v31 = vshrl.u32 %v817_v22, 16  ;;  %v2246_v32 = vrot.slane %v982_v16, 5  ;;  %v988_v34 = vrot.slane %v986_v20, 4  ;;  %250 = vst.msk [vmem:[#allocation2] sm:$0xf] %vm249_vm3, %v231_v46 }
  0x2f   : > { %1496 = vrot.lane.b32.xlu0 %v1358_v54, %s2050_s27  ;;  %v859_v39 = vor.u32 %v858_v23, %v2129_v33  ;;  %v2251_v40 = vrot.slane %v932_v24, 5  ;;  %v938_v37 = vrot.slane %v936_v13, 4  ;;  %v942_v43 = vshll.u32 %v825_v36, 16  ;;  %v232_v53 = vld [vmem:[%s2095_s22 + $0x4] sm:$0xf] }
  0x30   : > { %511 = vrot.lane.b32.xlu1 %v369_v58, %s2048_s25  ;;  %v2256_v45 = vrot.slane %v450_v27, 4  ;;  %v864_v33 = vrot.slane %v862_v30, 5  ;;  %v989_v49 = vor.u32 %v988_v34, %v2246_v32  ;;  %v946_v50 = vshrl.u32 %v825_v36, 16  ;;  %v2266_v25 = vld [vmem:[%s2095_s22 + $0x10] sm:$0xf]  ;;  %v2027_v36 = vld [vmem:[%s3026_s2 + $0x8] sm:$0xff]  }
  0x31   : > { %v868_v52 = vrot.slane %v866_v31, 4  ;;  %v860_v54 = vrot.slane %v859_v39, 4  ;;  %v939_v55 = vor.u32 %v938_v37, %v2251_v40  ;;  %287 = vst.msk [vmem:[#allocation2] sm:$0xf] %vm286_vm4, %v268_v48  ;;  %v269_v57 = vld [vmem:[%s2095_s22 + $0x4] sm:$0xf] }
  0x32   : > { %v453_v56 = vor.u32 %v2256_v45, %v2205_v60  ;;  %251 = vst.msk [vmem:[#allocation2 + $0x4] sm:$0xf] %vm249_vm3, %v232_v53  ;;  %v715_v58 = vld [vmem:[%s2095_s22 + $0x28] sm:$0xf]  ;;  %v944_v59 = vrot.slane %v942_v43, 5  ;;  %v990_v1 = vrot.slane %v989_v49, 4 }
  0x33   : > { %509 = vrot.lane.b32.xlu0 %v359_v0, %s2048_s25  ;;  %288 = vst.msk [vmem:[#allocation2 + $0x4] sm:$0xf] %vm286_vm4, %v269_v57  ;;  %v2277_v0 = vld [vmem:[%s2095_s22 + $0x30] sm:$0xf]  ;;  %v248_v7 = vld [vmem:[%s2095_s22 + $0x44] sm:$0xf] }
  0x34   : > { %527 = vrot.lane.b32.xlu1 %v449_v3, %s2048_s25  ;;  %v869_v3 = vor.u32 %v868_v52, %v864_v33  ;;  %v940_v9 = vrot.slane %v939_v55, 4  ;;  %267 = vst.msk [vmem:[#allocation2 + $0x44] sm:$0xf] %vm249_vm3, %v248_v7  ;;  %v952_v12 = vshll.u32 %v2277_v0, 16  ;;  %v995_v17 = vsel %vm2124_vm2, %v990_v1, %v2207_v61  ;;  %v246_v22 = vld [vmem:[%s2095_s22 + $0x3c] sm:$0xf] }
  0x35   : > { %v283_v23 = vld [vmem:[%s2095_s22 + $0x3c] sm:$0xf]  ;;  %v2051_v24 = vmov 0.0   ;;  %265 = vst.msk [vmem:[#allocation2 + $0x3c] sm:$0xf] %vm249_vm3, %v246_v22  ;;  %v2028_v52 = vld [vmem:[%s3026_s2] sm:$0xff]  }
  0x36   : > { %v945_v20 = vsel %vm2124_vm2, %v940_v9, %v944_v59  ;;  %1963 = vmatprep.subr.bf16.mxu0 %v2051_v24  ;;  %v2026_v13 = vld [vmem:[%s3026_s2 + $0x10] ss:$0 sps:$4 sm:$0x33]   ;;  %2005 = vmatprep.subr.bf16.mxu1 %v2051_v24  ;;  %302 = vst.msk [vmem:[#allocation2 + $0x3c] sm:$0xf] %vm286_vm4, %v283_v23  ;;  %v2322_v30 = vrot.slane %v952_v12, 5 }
  0x37   : > { %525 = vrot.lane.b32.xlu0 %v439_v4, %s2048_s25  ;;  %v872_v4 = vshll.u32 %v2266_v25, 16  ;;  %v1726_v31 = vsel %vm1724_vm5, %v2026_v13, 0  ;;  %v234_v34 = vld [vmem:[%s2095_s22 + $0xc] sm:$0xf]  ;;  %1969 = vmatprep.mubr.msk.bf16.mxu0 %vm2052_vm6, %v2051_v24  ;;  %v233_v37 = vld [vmem:[%s2095_s22 + $0x8] sm:$0xf] }
  0x38   : > { %636 = vrot.lane.b32.xlu1 %v598_v6, %s2046_s23  ;;  %v948_v6 = vrot.slane %v946_v50, 4  ;;  %1964 = vmatpush3.bf16.msra.mxu0 %v1726_v31  ;;  %253 = vst.msk [vmem:[#allocation2 + $0xc] sm:$0xf] %vm249_vm3, %v234_v34  ;;  %v271_v39 = vld [vmem:[%s2095_s22 + $0xc] sm:$0xf]  ;;  %v454_v10 = vrot.slane %v453_v56, 4 }
  0x39   : > { %2008 = vmatpush3.bf16.msra.mxu1 %v1726_v31  ;;  %1965 = vmatprep.subr.bf16.mxu0 %v2051_v24  ;;  %290 = vst.msk [vmem:[#allocation2 + $0xc] sm:$0xf] %vm286_vm4, %v271_v39  ;;  %v279_v43 = vld [vmem:[%s2095_s22 + $0x2c] sm:$0xf]  ;;  %v1322_v48 = vld [vmem:[%s2095_s22 + $0x14] sm:$0xf] }
  0x3a   : > { %v949_v16 = vor.u32 %v948_v6, %v944_v59  ;;  %252 = vst.msk [vmem:[#allocation2 + $0x8] sm:$0xf] %vm249_vm3, %v233_v37  ;;  %2006 = vmatprep.subr.bf16.mxu1 %v2051_v24  ;;  %1989 = vmatprep.mubr.msk.bf16.mxu1 %vm2052_vm6, %v2051_v24  ;;  %v278_v49 = vld [vmem:[%s2095_s22 + $0x28] sm:$0xf]  ;;  %v1104_v50 = vld [vmem:[%s2095_s22 + $0x14] sm:$0xf] }
  0x3b   : > { %662 = vrot.lane.b32.xlu0 %v611_v8, %s2046_s23  ;;  %v865_v8 = vsel %vm2124_vm2, %v860_v54, %v864_v33  ;;  %v241_v33 = vld [vmem:[%s2095_s22 + $0x28] sm:$0xf]  ;;  %v1365_v53 = vshll.u32 %v1322_v48, 16  ;;  %v1369_v54 = vshrl.u32 %v1322_v48, 16  ;;  %v1103_v55 = vld [vmem:[%s2095_s22 + $0x10] sm:$0xf] }
  0x3c   : > { %652 = vrot.lane.b32.xlu1 %v606_v11, %s2046_s23  ;;  %v285_v11 = vld [vmem:[%s2095_s22 + $0x44] sm:$0xf]  ;;  %1966 = vmatpush3.bf16.msra.mxu0 %v2027_v36  ;;  %260 = vst.msk [vmem:[#allocation2 + $0x28] sm:$0xf] %vm249_vm3, %v241_v33  ;;  %v1112_v57 = vld [vmem:[%s2095_s22 + $0x34] sm:$0xf] }
  0x3d   : > { %304 = vst.msk [vmem:[#allocation2 + $0x44] sm:$0xf] %vm286_vm4, %v285_v11  ;;  %2009 = vmatpush3.bf16.msra.mxu1 %v2027_v36  ;;  %1967 = vmatprep.subr.bf16.mxu0 %v2051_v24  ;;  %297 = vst.msk [vmem:[#allocation2 + $0x28] sm:$0xf] %vm286_vm4, %v278_v49  ;;  %v1359_v59 = vshrl.u32 %v2153_v5, 16  ;;  %v2493_v60 = vrot.slane %v999_v2, 4 }
  0x3e   : > { %2007 = vmatprep.subr.bf16.mxu1 %v2051_v24  ;;  %v1111_v1 = vld [vmem:[%s2095_s22 + $0x30] sm:$0xf]  ;;  %v582_v6 = vld [vmem:[%s2376_s14] sm:$0x1]  ;;  %v2387_v7 = vld [vmem:[%s2095_s22 + $0x18] sm:$0xf] }
  0x3f   : > { %638 = vrot.lane.b32.xlu0 %v599_v18, %s2046_s23  ;;  %v870_v18 = vrot.slane %v869_v3, 4  ;;  %v2382_v3 = vrot.slane %v1365_v53, 5  ;;  %v1212_v11 = vld [vmem:[%s2095_s22 + $0x10] sm:$0xf]  ;;  %v1225_v5 = vld [vmem:[%s2095_s22 + $0x44] sm:$0xf] }
  0x40   : > { %771 = vrot.lane.b32.xlu1 %v720_v19, %s2046_s23  ;;  %v2298_v19 = vrot.slane %v872_v4, 5  ;;  %1968 = vmatpush3.bf16.msra.mxu0 %v2028_v52  ;;  %v1371_v4 = vrot.slane %v1369_v54, 4  ;;  %v1329_v12 = vld [vmem:[%s2095_s22 + $0x30] sm:$0xf]  ;;  %v1361_v22 = vrot.slane %v1359_v59, 4  ;;  %v876_v63 = vshrl.u32 %v2266_v25, 16 }
  0x41   : > { %2010 = vmatpush3.bf16.msra.mxu1 %v2028_v52  ;;  %v2398_v23 = vld [vmem:[%s2095_s22 + $0x38] sm:$0xf]  ;;  %v1439_v31 = vshrl.u32 %v1329_v12, 16  ;;  %v1220_v34 = vld [vmem:[%s2095_s22 + $0x30] sm:$0xf] }
  0x42   : > { %v875_v27 = vsel %vm2124_vm2, %v870_v18, %v2298_v19  ;;  %v584_v18 = vshll.u32 %v582_v6, 16  ;;  %v318_v39 = vld [vmem:[%s2095_s22 + $0x34] sm:$0xf]  ;;  %v2415_v52 = vld [vmem:[%s2095_s22 + $0x18] sm:$0xf] }
  0x43   : > { %654 = vrot.lane.b32.xlu0 %v607_v28, %s2046_s23  ;;  %v950_v28 = vrot.slane %v949_v16, 4  ;;  %v1372_v16 = vor.u32 %v1371_v4, %v2382_v3  ;;  %v386_v6 = vshll.u32 %v2415_v52, 16  ;;  %v600_v45 = vld [vmem:[%s2095_s22 + $0x10] sm:$0xf]  ;;  %v819_v56 = vld [vmem:[%s2095_s22 + $0x14] sm:$0xf] }
  0x44   : > { %747 = vrot.lane.b32.xlu1 %v708_v38, %s2046_s23  ;;  %v1116_v38 = vld [vmem:[%s2095_s22 + $0x44] sm:$0xf]  ;;  %v586_v37 = vrot.slane %v584_v18, 5  ;;  %v2431_v18 = vld [vmem:[%s2095_s22 + $0x38] sm:$0xf] }
  0x45   : > { %v955_v46 = vsel %vm2124_vm2, %v950_v28, %v2322_v30  ;;  %v1435_v28 = vshll.u32 %v1329_v12, 16  ;;  %v1373_v48 = vrot.slane %v1372_v16, 4  ;;  %v235_v16 = vld [vmem:[%s2095_s22 + $0x10] sm:$0xf]  ;;  %v827_v61 = vld [vmem:[%s2095_s22 + $0x34] sm:$0xf] }
  0x46   : > { %254 = vst.msk [vmem:[#allocation2 + $0x10] sm:$0xf] %vm249_vm3, %v235_v16  ;;  %v601_v2 = vld [vmem:[%s2095_s22 + $0x14] sm:$0xf]  ;;  %v2512_v16 = vld [vmem:[%s2095_s22 + $0x18] sm:$0xf] }
  0x47   : > { %745 = vrot.lane.b32.xlu0 %v707_v41, %s2046_s23  ;;  %v270_v41 = vld [vmem:[%s2095_s22 + $0x8] sm:$0xf]  ;;  %v2412_v49 = vrot.slane %v1435_v28, 5  ;;  %v2442_v28 = vrot.slane %v386_v6, 5  ;;  %v722_v6 = vld [vmem:[%s2095_s22 + $0x44] sm:$0xf] }
  0x48   : > { %763 = vrot.lane.b32.xlu1 %v716_v42, %s2046_s23  ;;  %289 = vst.msk [vmem:[#allocation2 + $0x8] sm:$0xf] %vm286_vm4, %v270_v41  ;;  %v242_v42 = vld [vmem:[%s2095_s22 + $0x2c] sm:$0xf]  ;;  %v609_v25 = vld [vmem:[%s2095_s22 + $0x34] sm:$0xf] }
  0x49   : > { %261 = vst.msk [vmem:[#allocation2 + $0x2c] sm:$0xf] %vm249_vm3, %v242_v42  ;;  %v1362_v42 = vor.u32 %v1361_v22, %v2178_v35  ;;  %v460_v35 = vshrl.u32 %v318_v39, 16  ;;  %vm591_vm5 = vsmask.f32 7950 }
  0x4a   : > { %298 = vst.msk [vmem:[#allocation2 + $0x2c] sm:$0xf] %vm286_vm4, %v279_v43  ;;  %v1455_v43 = vshll.u32 %v2398_v23, 16 }
  0x4b   : > { %761 = vrot.lane.b32.xlu0 %v715_v58, %s2046_s23  ;;  %v1330_v58 = vld [vmem:[%s2095_s22 + $0x34] sm:$0xf] }
  0x4c   : > { %1015 = vrot.lane.b32.xlu1 %v865_v8, %s2049_s26  ;;  %v1445_v8 = vshll.u32 %v1330_v58, 16  ;;  %v1449_v9 = vshrl.u32 %v1330_v58, 16  ;;  %v1221_v58 = vld [vmem:[%s2095_s22 + $0x34] sm:$0xf] }
  0x4e   : > { %v2400_v13 = vrot.slane %v1445_v8, 5  ;;  %v236_v8 = vld [vmem:[%s2095_s22 + $0x14] sm:$0xf] }
  0x4f   : > { %1041 = vrot.lane.b32.xlu0 %v995_v17, %s2049_s26  ;;  %v310_v17 = vld [vmem:[%s2095_s22 + $0x14] sm:$0xf]  ;;  %255 = vst.msk [vmem:[#allocation2 + $0x14] sm:$0xf] %vm249_vm3, %v236_v8 }
  0x50   : > { %1031 = vrot.lane.b32.xlu1 %v945_v20, %s2049_s26  ;;  %v1375_v20 = vshll.u32 %v2387_v7, 16  ;;  %v376_v36 = vshll.u32 %v310_v17, 16 }
  0x52   : > { %v2405_v41 = vrot.slane %v1375_v20, 5  ;;  %v378_v53 = vrot.slane %v376_v36, 5  ;;  %v272_v20 = vld [vmem:[%s2095_s22 + $0x10] sm:$0xf] }
  0x53   : > { %1017 = vrot.lane.b32.xlu0 %v875_v27, %s2049_s26  ;;  %v1451_v27 = vrot.slane %v1449_v9, 4  ;;  %291 = vst.msk [vmem:[#allocation2 + $0x10] sm:$0xf] %vm286_vm4, %v272_v20  ;;  %v956_v20 = vshrl.u32 %v2277_v0, 16  ;;  %v709_v0 = vld [vmem:[%s2095_s22 + $0x10] sm:$0xf] }
  0x54   : > { %1163 = vrot.lane.b32.xlu1 %v1116_v38, %s2047_s24  ;;  %v380_v38 = vshrl.u32 %v310_v17, 16  ;;  %v1378_v59 = vsel %vm2124_vm2, %v1373_v48, %v2405_v41  ;;  %v462_v17 = vrot.slane %v460_v35, 4 }
  0x55   : > { %v1452_v33 = vor.u32 %v1451_v27, %v2400_v13 }
  0x56   : > { %v382_v54 = vrot.slane %v380_v38, 4  ;;  %v466_v38 = vshll.u32 %v2431_v18, 16 }
  0x57   : > { %1033 = vrot.lane.b32.xlu0 %v955_v46, %s2049_s26  ;;  %v1213_v46 = vld [vmem:[%s2095_s22 + $0x14] sm:$0xf]  ;;  %v1453_v9 = vrot.slane %v1452_v33, 4 }
  0x58   : > { %1139 = vrot.lane.b32.xlu1 %v1104_v50, %s2047_s24  ;;  %v1441_v50 = vrot.slane %v1439_v31, 4 }
  0x5a   : > { %v1442_v4 = vor.u32 %v1441_v50, %v2412_v49  ;;  %v2468_v50 = vrot.slane %v466_v38, 5 }
  0x5b   : > { %1137 = vrot.lane.b32.xlu0 %v1103_v55, %s2047_s24  ;;  %v456_v55 = vshll.u32 %v318_v39, 16  ;;  %v244_v39 = vld [vmem:[%s2095_s22 + $0x34] sm:$0xf] }
  0x5c   : > { %1155 = vrot.lane.b32.xlu1 %v1112_v57, %s2047_s24  ;;  %v1363_v57 = vrot.slane %v1362_v42, 4  ;;  %v1443_v27 = vrot.slane %v1442_v4, 4  ;;  %263 = vst.msk [vmem:[#allocation2 + $0x34] sm:$0xf] %vm249_vm3, %v244_v39  ;;  %v243_v42 = vld [vmem:[%s2095_s22 + $0x30] sm:$0xf] }
  0x5d   : > { %v458_v12 = vrot.slane %v456_v55, 5  ;;  %262 = vst.msk [vmem:[#allocation2 + $0x30] sm:$0xf] %vm249_vm3, %v243_v42  ;;  %v886_v4 = vshrl.u32 %v819_v56, 16 }
  0x5e   : > { %v1368_v22 = vsel %vm2124_vm2, %v1363_v57, %v2382_v3  ;;  %v280_v3 = vld [vmem:[%s2095_s22 + $0x30] sm:$0xf]  ;;  %v613_v57 = vld [vmem:[%s2095_s22 + $0x44] sm:$0xf] }
  0x5f   : > { %1153 = vrot.lane.b32.xlu0 %v1111_v1, %s2047_s24  ;;  %v2423_v1 = vrot.slane %v1455_v43, 5  ;;  %v463_v36 = vor.u32 %v462_v17, %v458_v12  ;;  %v1448_v43 = vsel %vm2124_vm2, %v1443_v27, %v2400_v13  ;;  %299 = vst.msk [vmem:[#allocation2 + $0x30] sm:$0xf] %vm286_vm4, %v280_v3  ;;  %v459_v55 = vsel %vm2124_vm2, %v454_v10, %v458_v12  ;;  %v710_v27 = vld [vmem:[%s2095_s22 + $0x14] sm:$0xf] }
  0x60   : > { %1246 = vrot.lane.b32.xlu1 %v1212_v11, %s2047_s24  ;;  %v383_v11 = vor.u32 %v382_v54, %v378_v53  ;;  %v2471_v54 = vld [vmem:[%s2095_s22 + $0x44] sm:$0xf]  ;;  %v966_v12 = vshrl.u32 %v827_v61, 16 }
  0x61   : > { %v1458_v31 = vsel %vm2124_vm2, %v1453_v9, %v2423_v1  ;;  %v464_v33 = vrot.slane %v463_v36, 4  ;;  %v888_v9 = vrot.slane %v886_v4, 4 }
  0x62   : > { %v968_v38 = vrot.slane %v966_v12, 4  ;;  %v1379_v12 = vshrl.u32 %v2387_v7, 16  ;;  %v579_v7 = vld [vmem:[#allocation2 + $0x44] sm:$0xf] }
  0x63   : > { %1272 = vrot.lane.b32.xlu0 %v1225_v5, %s2047_s24  ;;  %v273_v5 = vld [vmem:[%s2095_s22 + $0x14] sm:$0xf]  ;;  %v469_v13 = vsel %vm2124_vm2, %v464_v33, %v2468_v50 }
  0x64   : > { %1262 = vrot.lane.b32.xlu1 %v1220_v34, %s2047_s24  ;;  %292 = vst.msk [vmem:[#allocation2 + $0x14] sm:$0xf] %vm286_vm4, %v273_v5  ;;  %v384_v34 = vrot.slane %v383_v11, 4  ;;  %v962_v11 = vshll.u32 %v827_v61, 16  ;;  %v1334_v61 = vld [vmem:[%s2095_s22 + $0x44] sm:$0xf] }
  0x66   : > { %v389_v48 = vsel %vm2124_vm2, %v384_v34, %v2442_v28  ;;  %v892_v34 = vshll.u32 %v2512_v16, 16  ;;  %v964_v36 = vrot.slane %v962_v11, 5 }
  0x67   : > { %1248 = vrot.lane.b32.xlu0 %v1213_v46, %s2047_s24  ;;  %v374_v46 = vrot.slane %v373_v26, 4  ;;  %v1002_v26 = vshll.u32 %v2471_v54, 16 }
  0x68   : > { %587 = vrot.lane.b32.xlu1 %v586_v37, %s2048_s25  ;;  %v281_v37 = vld [vmem:[%s2095_s22 + $0x34] sm:$0xf]  ;;  %v2528_v33 = vrot.slane %v892_v34, 5  ;;  %v1459_v34 = vshrl.u32 %v2398_v23, 16  ;;  %v390_v23 = vshrl.u32 %v2415_v52, 16 }
  0x69   : > { %300 = vst.msk [vmem:[#allocation2 + $0x34] sm:$0xf] %vm286_vm4, %v281_v37  ;;  %v379_v44 = vsel %vm2124_vm2, %v374_v46, %v378_v53  ;;  %v2488_v53 = vrot.slane %v1002_v26, 5  ;;  %v2521_v37 = vld [vmem:[%s2095_s22 + $0x38] sm:$0xf] }
  0x6a   : > { %v718_v46 = vld [vmem:[%s2095_s22 + $0x34] sm:$0xf]  ;;  %v972_v10 = vshll.u32 %v2521_v37, 16 }
  0x6b   : > { %1264 = vrot.lane.b32.xlu0 %v1221_v58, %s2047_s24  ;;  %v1005_v35 = vsel %vm2124_vm2, %v2493_v60, %v2488_v53  ;;  %v608_v58 = vld [vmem:[%s2095_s22 + $0x30] sm:$0xf] }
  0x6c   : > { %1500 = vrot.lane.b32.xlu1 %v1378_v59, %s2050_s27  ;;  %v882_v59 = vshll.u32 %v819_v56, 16 }
  0x6e   : > { %v884_v8 = vrot.slane %v882_v59, 5 }
  0x6f   : > { %1498 = vrot.lane.b32.xlu0 %v1368_v22, %s2050_s27  ;;  %v878_v22 = vrot.slane %v876_v63, 4 }
  0x70   : > { %1516 = vrot.lane.b32.xlu1 %v1458_v31, %s2050_s27  ;;  %v889_v31 = vor.u32 %v888_v9, %v884_v8  ;;  %v1489_v9 = vshrl.u32 %v1334_v61, 16 }
  0x71   : > { %v879_v3 = vor.u32 %v878_v22, %v2298_v19 }
  0x72   : > { %v1491_v22 = vrot.slane %v1489_v9, 4 }
  0x73   : > { %1514 = vrot.lane.b32.xlu0 %v1448_v43, %s2050_s27  ;;  %v958_v43 = vrot.slane %v956_v20, 4 }
  0x74   : > { %515 = vrot.lane.b32.xlu1 %v389_v48, %s2048_s25  ;;  %v890_v48 = vrot.slane %v889_v31, 4  ;;  %v1324_v31 = vld [vmem:[%s2095_s22 + $0x1c] sm:$0xf] }
  0x75   : > { %v959_v19 = vor.u32 %v958_v43, %v2322_v30  ;;  %v1385_v43 = vshll.u32 %v1324_v31, 16 }
  0x76   : > { %v895_v56 = vsel %vm2124_vm2, %v890_v48, %v2528_v33  ;;  %v1113_v48 = vld [vmem:[%s2095_s22 + $0x38] sm:$0xf] }
  0x77   : > { %513 = vrot.lane.b32.xlu0 %v379_v44, %s2048_s25  ;;  %v969_v44 = vor.u32 %v968_v38, %v964_v36  ;;  %v960_v4 = vrot.slane %v959_v19, 4  ;;  %v1114_v38 = vld [vmem:[%s2095_s22 + $0x3c] sm:$0xf] }
  0x78   : > { %531 = vrot.lane.b32.xlu1 %v469_v13, %s2048_s25  ;;  %v717_v13 = vld [vmem:[%s2095_s22 + $0x30] sm:$0xf] }
  0x79   : > { %v965_v11 = vsel %vm2124_vm2, %v960_v4, %v964_v36 }
  0x7b   : > { %529 = vrot.lane.b32.xlu0 %v459_v55, %s2048_s25  ;;  %v880_v55 = vrot.slane %v879_v3, 4 }
  0x7c   : > { %640 = vrot.lane.b32.xlu1 %v600_v45, %s2046_s23 }
  0x7d   : > { %v885_v30 = vsel %vm2124_vm2, %v880_v55, %v884_v8  ;;  %v1485_v8 = vshll.u32 %v1334_v61, 16  ;;  %v1461_v55 = vrot.slane %v1459_v34, 4  ;;  %v1222_v61 = vld [vmem:[%s2095_s22 + $0x38] sm:$0xf] }
  0x7f   : > { %666 = vrot.lane.b32.xlu0 %v613_v57, %s2046_s23  ;;  %v970_v57 = vrot.slane %v969_v44, 4 }
  0x80   : > { %656 = vrot.lane.b32.xlu1 %v608_v58, %s2046_s23  ;;  %v2538_v58 = vrot.slane %v972_v10, 5  ;;  %v1214_v10 = vld [vmem:[%s2095_s22 + $0x18] sm:$0xf] }
  0x82   : > { %v633_v17 = vpop.permute.xlu1 %632 }
  0x83   : > { %v742_v5 = vpop.permute.xlu0 %741  ;;  %642 = vrot.lane.b32.xlu0 %v601_v2, %s2046_s23  ;;  %v975_v2 = vsel %vm2124_vm2, %v970_v57, %v2538_v58  ;;  %v470_v57 = vshrl.u32 %v2431_v18, 16  ;;  %v237_v18 = vld [vmem:[%s2095_s22 + $0x18] sm:$0xf] }
  0x84   : > { %775 = vrot.lane.b32.xlu1 %v722_v6, %s2046_s23  ;;  %256 = vst.msk [vmem:[#allocation2 + $0x18] sm:$0xf] %vm249_vm3, %v237_v18 }
  0x86   : > { %v635_v39 = vpop.permute.xlu1 %634 }
  0x87   : > { %658 = vrot.lane.b32.xlu0 %v609_v25, %s2046_s23  ;;  %v1134_v42 = vpop.permute.xlu0 %1133  ;;  %v2567_v25 = vrot.slane %v1485_v8, 5  ;;  %v392_v8 = vrot.slane %v390_v23, 4 }
  0x88   : > { %751 = vrot.lane.b32.xlu1 %v710_v27, %s2046_s23  ;;  %v1105_v27 = vld [vmem:[%s2095_s22 + $0x18] sm:$0xf] }
  0x89   : > { %v1492_v3 = vor.u32 %v1491_v22, %v2567_v25  ;;  %v2605_v22 = vld [vmem:[%s2095_s22 + $0x40] sm:$0xf] }
  0x8a   : > { %v744_v26 = vpop.permute.xlu1 %743  ;;  %v1475_v23 = vshll.u32 %v2605_v22, 16 }
  0x8b   : > { %749 = vrot.lane.b32.xlu0 %v709_v0, %s2046_s23 }
  0x8c   : > { %767 = vrot.lane.b32.xlu1 %v718_v46, %s2046_s23  ;;  %v1389_v46 = vshrl.u32 %v1324_v31, 16 }
  0x8d   : > { %v506_v45 = vpop.permute.xlu0 %505 }
  0x8e   : > { %560 = vst.msk [vmem:[#allocation2] sm:$0xf] %vm559_vm7, %v506_v45  ;;  %v1136_v59 = vpop.permute.xlu1 %1135  ;;  %v1493_v45 = vrot.slane %v1492_v3, 4  ;;  %v1391_v52 = vrot.slane %v1389_v46, 4  ;;  %v245_v3 = vld [vmem:[%s2095_s22 + $0x38] sm:$0xf] }
  0x8f   : > { %687 = vst.msk [vmem:[#allocation2] sm:$0xf] %vm686_vm8, %v633_v17  ;;  %765 = vrot.lane.b32.xlu0 %v717_v13, %s2046_s23  ;;  %v1332_v13 = vld [vmem:[%s2095_s22 + $0x3c] sm:$0xf] }
  0x90   : > { %1021 = vrot.lane.b32.xlu1 %v895_v56, %s2049_s26  ;;  %796 = vst.msk [vmem:[#allocation2] sm:$0xf] %vm795_vm9, %v742_v5  ;;  %v1106_v5 = vld [vmem:[%s2095_s22 + $0x1c] sm:$0xf]  ;;  %v1387_v56 = vrot.slane %v1385_v43, 5 }
  0x91   : > { %v508_v63 = vpop.permute.xlu0 %507  ;;  %v282_v43 = vld [vmem:[%s2095_s22 + $0x38] sm:$0xf]  ;;  %264 = vst.msk [vmem:[#allocation2 + $0x38] sm:$0xf] %vm249_vm3, %v245_v3 }
  0x92   : > { %561 = vst.msk [vmem:[#allocation2 + $0x4] sm:$0xf] %vm559_vm7, %v508_v63  ;;  %v1014_v6 = vpop.permute.xlu1 %1013 }
  0x93   : > { %688 = vst.msk [vmem:[#allocation2 + $0x4] sm:$0xf] %vm686_vm8, %v635_v39  ;;  %1019 = vrot.lane.b32.xlu0 %v885_v30, %s2049_s26  ;;  %v1381_v39 = vrot.slane %v1379_v12, 4  ;;  %v2590_v30 = vld [vmem:[%s2095_s22 + $0x20] sm:$0xf]  ;;  %v1392_v12 = vor.u32 %v1391_v52, %v1387_v56 }
  0x94   : > { %797 = vst.msk [vmem:[#allocation2 + $0x4] sm:$0xf] %vm795_vm9, %v744_v26  ;;  %1037 = vrot.lane.b32.xlu1 %v975_v2, %s2049_s26  ;;  %v1462_v2 = vor.u32 %v1461_v55, %v2423_v1 }
  0x95   : > { %1067 = vst.msk [vmem:[#allocation2 + $0x4] sm:$0xf] %vm1065_vm10, %v1014_v6  ;;  %v1012_v17 = vpop.permute.xlu0 %1011  ;;  %v1382_v26 = vor.u32 %v1381_v39, %v2405_v41  ;;  %v1465_v41 = vshll.u32 %v1332_v13, 16  ;;  %v312_v6 = vld [vmem:[%s2095_s22 + $0x1c] sm:$0xf]  ;;  %v472_v39 = vrot.slane %v470_v57, 4 }
  0x96   : > { %1066 = vst.msk [vmem:[#allocation2] sm:$0xf] %vm1065_vm10, %v1012_v17  ;;  %v1243_v20 = vpop.permute.xlu1 %1242  ;;  %v1395_v17 = vshll.u32 %v2590_v30, 16  ;;  %v1393_v46 = vrot.slane %v1392_v12, 4  ;;  %v2630_v57 = vld [vmem:[%s2095_s22 + $0x20] sm:$0xf] }
  0x97   : > { %1183 = vst.msk [vmem:[#allocation2 + $0x4] sm:$0xf] %vm1181_vm11, %v1136_v59  ;;  %1035 = vrot.lane.b32.xlu0 %v965_v11, %s2049_s26  ;;  %1182 = vst.msk [vmem:[#allocation2] sm:$0xf] %vm1181_vm11, %v1134_v42  ;;  %v1469_v59 = vshrl.u32 %v1332_v13, 16  ;;  %v1383_v63 = vrot.slane %v1382_v26, 4  ;;  %v473_v52 = vor.u32 %v472_v39, %v2468_v50 }
  0x98   : > { %1291 = vst.msk [vmem:[#allocation2] sm:$0xf] %vm1290_vm12, %v1243_v20  ;;  %1143 = vrot.lane.b32.xlu1 %v1106_v5, %s2047_s24  ;;  %v1215_v11 = vld [vmem:[%s2095_s22 + $0x1c] sm:$0xf]  ;;  %v274_v5 = vld [vmem:[%s2095_s22 + $0x18] sm:$0xf] }
  0x99   : > { %v540_v36 = vpop.permute.xlu0 %539  ;;  %v1467_v1 = vrot.slane %v1465_v41, 5  ;;  %v396_v20 = vshll.u32 %v312_v6, 16  ;;  %293 = vst.msk [vmem:[#allocation2 + $0x18] sm:$0xf] %vm286_vm4, %v274_v5  ;;  %v1388_v34 = vsel %vm2124_vm2, %v1383_v63, %v1387_v56  ;;  %301 = vst.msk [vmem:[#allocation2 + $0x38] sm:$0xf] %vm286_vm4, %v282_v43 }
  0x9a   : > { %v580_v42 = vsel %vm578_vm13, %v540_v36, %v579_v7  ;;  %v1495_v0 = vpop.permute.xlu1 %1494  ;;  %v400_v7 = vshrl.u32 %v312_v6, 16  ;;  %v1463_v36 = vrot.slane %v1462_v2, 4  ;;  %v275_v13 = vld [vmem:[%s2095_s22 + $0x1c] sm:$0xf]  ;;  %v406_v63 = vshll.u32 %v2630_v57, 16  ;;  %vm592_vm13 = vmand %vm590_vm1, %vm591_vm5 }
  0x9b   : > { %581 = vst [vmem:[#allocation2 + $0x44] sm:$0xf] %v580_v42  ;;  %1141 = vrot.lane.b32.xlu0 %v1105_v27, %s2047_s24  ;;  %1543 = vst.msk [vmem:[#allocation2] sm:$0xf] %vm1542_vm14, %v1495_v0  ;;  %v1471_v27 = vrot.slane %v1469_v59, 4  ;;  %v1006_v2 = vshrl.u32 %v2471_v54, 16 }
  0x9c   : > { %1159 = vrot.lane.b32.xlu1 %v1114_v38, %s2047_s24  ;;  %v393_v38 = vor.u32 %v392_v8, %v2442_v28  ;;  %v1223_v0 = vld [vmem:[%s2095_s22 + $0x3c] sm:$0xf]  ;;  %v402_v26 = vrot.slane %v400_v7, 4  ;;  %v2656_v12 = vrot.slane %v406_v63, 5  ;;  %v896_v5 = vshrl.u32 %v2512_v16, 16 }
  0x9d   : > { %v1245_v44 = vpop.permute.xlu0 %1244  ;;  %v238_v28 = vld [vmem:[%s2095_s22 + $0x1c] sm:$0xf]  ;;  %vm1096_vm1 = vcmask 191651  }
  0x9e   : > { %1292 = vst.msk [vmem:[#allocation2 + $0x4] sm:$0xf] %vm1290_vm12, %v1245_v44  ;;  %v536_v19 = vpop.permute.xlu1 %535  ;;  %v398_v44 = vrot.slane %v396_v20, 5  ;;  %v394_v56 = vrot.slane %v393_v38, 4  ;;  %v898_v38 = vrot.slane %v896_v5, 4  ;;  %v1479_v5 = vshrl.u32 %v2605_v22, 16 }
  0x9f   : > { %1157 = vrot.lane.b32.xlu0 %v1113_v48, %s2047_s24  ;;  %575 = vst.msk [vmem:[#allocation2 + $0x3c] sm:$0xf] %vm559_vm7, %v536_v19  ;;  %v2617_v48 = vrot.slane %v1395_v17, 5  ;;  %v1008_v17 = vrot.slane %v1006_v2, 4  ;;  %v719_v2 = vld [vmem:[%s2095_s22 + $0x38] sm:$0xf] }
  0xa0   : > { %1250 = vrot.lane.b32.xlu1 %v1214_v10, %s2047_s24  ;;  %v1472_v10 = vor.u32 %v1471_v27, %v1467_v1  ;;  %257 = vst.msk [vmem:[#allocation2 + $0x1c] sm:$0xf] %vm249_vm3, %v238_v28  ;;  %v399_v8 = vsel %vm2124_vm2, %v394_v56, %v398_v44 }
  0xa1   : > { %v1497_v4 = vpop.permute.xlu0 %1496  ;;  %294 = vst.msk [vmem:[#allocation2 + $0x1c] sm:$0xf] %vm286_vm4, %v275_v13  ;;  %v1398_v59 = vsel %vm2124_vm2, %v1393_v46, %v2617_v48  ;;  %v1009_v16 = vor.u32 %v1008_v17, %v2488_v53  ;;  %v899_v46 = vor.u32 %v898_v38, %v2528_v33  ;;  %v2687_v33 = vld [vmem:[%s2095_s22 + $0x20] sm:$0xf]  ;;  %v1199_v53 = vld [vmem:[%s2376_s14 + $0x4] sm:$0xf] }
  0xa2   : > { %1544 = vst.msk [vmem:[#allocation2 + $0x4] sm:$0xf] %vm1542_vm14, %v1497_v4  ;;  %v512_v9 = vpop.permute.xlu1 %511  ;;  %v2640_v4 = vrot.slane %v1475_v23, 5  ;;  %v1473_v50 = vrot.slane %v1472_v10, 4  ;;  %v1216_v38 = vld [vmem:[%s2095_s22 + $0x20] sm:$0xf] }
  0xa3   : > { %1524 = vrot.lane.b32.xlu0 %v1493_v45, %s2050_s27  ;;  %563 = vst.msk [vmem:[#allocation2 + $0xc] sm:$0xf] %vm559_vm7, %v512_v9  ;;  %v1468_v45 = vsel %vm2124_vm2, %v1463_v36, %v1467_v1  ;;  %v474_v9 = vrot.slane %v473_v52, 4  ;;  %v821_v36 = vld [vmem:[%s2095_s22 + $0x1c] sm:$0xf] }
  0xa4   : > { %1266 = vrot.lane.b32.xlu1 %v1222_v61, %s2047_s24  ;;  %v403_v61 = vor.u32 %v402_v26, %v398_v44  ;;  %v1478_v54 = vsel %vm2124_vm2, %v1473_v50, %v2640_v4  ;;  %v902_v3 = vshll.u32 %v821_v36, 16  ;;  %v906_v43 = vshrl.u32 %v821_v36, 16  ;;  %v610_v44 = vld [vmem:[%s2095_s22 + $0x38] sm:$0xf] }
  0xa5   : > { %v510_v31 = vpop.permute.xlu0 %509  ;;  %v479_v20 = vsel %vm2124_vm2, %v474_v9, %v2147_v62  ;;  %v603_v62 = vld [vmem:[%s2095_s22 + $0x1c] sm:$0xf]  ;;  %v711_v52 = vld [vmem:[%s2095_s22 + $0x18] sm:$0xf]  ;;  %v1399_v9 = vshrl.u32 %v2590_v30, 16 }
  0xa6   : > { %562 = vst.msk [vmem:[#allocation2 + $0x8] sm:$0xf] %vm559_vm7, %v510_v31  ;;  %v528_v42 = vpop.permute.xlu1 %527  ;;  %v976_v31 = vshrl.u32 %v2521_v37, 16  ;;  %v904_v10 = vrot.slane %v902_v3, 5  ;;  %v908_v26 = vrot.slane %v906_v43, 4  ;;  %v410_v3 = vshrl.u32 %v2630_v57, 16 }
  0xa7   : > { %1252 = vrot.lane.b32.xlu0 %v1215_v11, %s2047_s24  ;;  %571 = vst.msk [vmem:[#allocation2 + $0x2c] sm:$0xf] %vm559_vm7, %v528_v42  ;;  %v404_v11 = vrot.slane %v403_v61, 4  ;;  %v602_v42 = vld [vmem:[%s2095_s22 + $0x18] sm:$0xf]  ;;  %v1401_v17 = vrot.slane %v1399_v9, 4 }
  0xa8   : > { %1502 = vrot.lane.b32.xlu1 %v1388_v34, %s2050_s27  ;;  %v978_v23 = vrot.slane %v976_v31, 4  ;;  %v1115_v43 = vld [vmem:[%s2095_s22 + $0x40] sm:$0xf] }
  0xa9   : > { %v526_v55 = vpop.permute.xlu0 %525  ;;  %v2029_v19 = vld [vmem:[#allocation2] sm:$0xff]   ;;  %v409_v27 = vsel %vm2124_vm2, %v404_v11, %v2656_v12  ;;  %v1402_v22 = vor.u32 %v1401_v17, %v2617_v48 }
  0xaa   : > { %570 = vst.msk [vmem:[#allocation2 + $0x28] sm:$0xf] %vm559_vm7, %v526_v55  ;;  %v637_v41 = vpop.permute.xlu1 %636  ;;  %1970 = vmatmul.mubr.msk.bf16.vlgmr.msra.gmra.mxu0 %vm1696_vm15, %v2029_v19  ;;  %v712_v55 = vld [vmem:[%s2095_s22 + $0x1c] sm:$0xf]  ;;  %v900_v19 = vrot.slane %v899_v46, 4 }
  0xab   : > { %1268 = vrot.lane.b32.xlu0 %v1223_v0, %s2047_s24  ;;  %689 = vst.msk [vmem:[#allocation2 + $0x8] sm:$0xf] %vm686_vm8, %v637_v41  ;;  %1973 = vmatprep.mubr.msk.bf16.mxu0 %vm2052_vm6, %v2051_v24  ;;  %v1010_v0 = vrot.slane %v1009_v16, 4  ;;  %v909_v41 = vor.u32 %v908_v26, %v904_v10  ;;  %v1107_v16 = vld [vmem:[%s2095_s22 + $0x20] sm:$0xf]  ;;  %v1403_v57 = vrot.slane %v1402_v22, 4 }
  0xac   : > { %1518 = vrot.lane.b32.xlu1 %v1468_v45, %s2050_s27  ;;  %v979_v45 = vor.u32 %v978_v23, %v2538_v58  ;;  %v905_v58 = vsel %vm2124_vm2, %v900_v19, %v904_v10  ;;  %v1224_v48 = vld [vmem:[%s2095_s22 + $0x40] sm:$0xf]  ;;  %v2738_v10 = vld [vmem:[%s2095_s22 + $0x28] sm:$0xf]  ;;  %v240_v19 = vld [vmem:[%s2095_s22 + $0x24] sm:$0xf] }
  0xad   : > { %v663_v6 = vpop.permute.xlu0 %662  ;;  %v2734_v46 = vld [vmem:[%s2376_s14] sm:$0xf]  ;;  %259 = vst.msk [vmem:[#allocation2 + $0x24] sm:$0xf] %vm249_vm3, %v240_v19 }
  0xae   : > { %702 = vst.msk [vmem:[#allocation2 + $0x3c] sm:$0xf] %vm686_vm8, %v663_v6  ;;  %v653_v18 = vpop.permute.xlu1 %652  ;;  %v980_v61 = vrot.slane %v979_v45, 4  ;;  %v910_v6 = vrot.slane %v909_v41, 4  ;;  %v277_v45 = vld [vmem:[%s2095_s22 + $0x24] sm:$0xf] }
  0xaf   : > { %1504 = vrot.lane.b32.xlu0 %v1398_v59, %s2050_s27  ;;  %697 = vst.msk [vmem:[#allocation2 + $0x28] sm:$0xf] %vm686_vm8, %v653_v18  ;;  %v912_v59 = vshll.u32 %v2687_v33, 16  ;;  %v1217_v41 = vld [vmem:[%s2095_s22 + $0x24] sm:$0xf] }
  0xb0   : > { %517 = vrot.lane.b32.xlu1 %v399_v8, %s2048_s25  ;;  %296 = vst.msk [vmem:[#allocation2 + $0x24] sm:$0xf] %vm286_vm4, %v277_v45 }
  0xb1   : > { %v639_v1 = vpop.permute.xlu0 %638  ;;  %v2702_v8 = vrot.slane %v912_v59, 5 }
  0xb2   : > { %690 = vst.msk [vmem:[#allocation2 + $0xc] sm:$0xf] %vm686_vm8, %v639_v1  ;;  %v772_v7 = vpop.permute.xlu1 %771 }
  0xb3   : > { %1520 = vrot.lane.b32.xlu0 %v1478_v54, %s2050_s27  ;;  %811 = vst.msk [vmem:[#allocation2 + $0x3c] sm:$0xf] %vm795_vm9, %v772_v7  ;;  %v985_v54 = vsel %vm2124_vm2, %v980_v61, %v2246_v32  ;;  %v915_v30 = vsel %vm2124_vm2, %v910_v6, %v2702_v8  ;;  %v1108_v32 = vld [vmem:[%s2095_s22 + $0x24] sm:$0xf] }
  0xb4   : > { %533 = vrot.lane.b32.xlu1 %v479_v20, %s2048_s25  ;;  %v1326_v20 = vld [vmem:[%s2095_s22 + $0x24] sm:$0xf] }
  0xb5   : > { %v655_v34 = vpop.permute.xlu0 %654  ;;  %v1405_v31 = vshll.u32 %v1326_v20, 16 }
  0xb6   : > { %698 = vst.msk [vmem:[#allocation2 + $0x2c] sm:$0xf] %vm686_vm8, %v655_v34  ;;  %v748_v39 = vpop.permute.xlu1 %747  ;;  %v1409_v34 = vshrl.u32 %v1326_v20, 16 }
  0xb7   : > { %519 = vrot.lane.b32.xlu0 %v409_v27, %s2048_s25  ;;  %799 = vst.msk [vmem:[#allocation2 + $0xc] sm:$0xf] %vm795_vm9, %v748_v39  ;;  %v314_v27 = vld [vmem:[%s2095_s22 + $0x24] sm:$0xf] }
  0xb8   : > { %646 = vrot.lane.b32.xlu1 %v603_v62, %s2046_s23  ;;  %v1481_v62 = vrot.slane %v1479_v5, 4  ;;  %v416_v39 = vshll.u32 %v314_v27, 16  ;;  %v1411_v23 = vrot.slane %v1409_v34, 4  ;;  %v284_v5 = vld [vmem:[%s2095_s22 + $0x40] sm:$0xf] }
  0xb9   : > { %v746_v37 = vpop.permute.xlu0 %745 }
  0xba   : > { %798 = vst.msk [vmem:[#allocation2 + $0x8] sm:$0xf] %vm795_vm9, %v746_v37  ;;  %v764_v28 = vpop.permute.xlu1 %763  ;;  %v1407_v37 = vrot.slane %v1405_v31, 5  ;;  %v2740_v26 = vrot.slane %v416_v39, 5  ;;  %v604_v39 = vld [vmem:[%s2095_s22 + $0x20] sm:$0xf] }
  0xbb   : > { %644 = vrot.lane.b32.xlu0 %v602_v42, %s2046_s23  ;;  %807 = vst.msk [vmem:[#allocation2 + $0x2c] sm:$0xf] %vm795_vm9, %v764_v28  ;;  %v420_v42 = vshrl.u32 %v314_v27, 16  ;;  %v1482_v28 = vor.u32 %v1481_v62, %v2640_v4  ;;  %v1567_v4 = vshll.u32 %v2734_v46, 16  ;;  %v823_v62 = vld [vmem:[%s2095_s22 + $0x24] sm:$0xf] }
  0xbc   : > { %1045 = vrot.lane.b32.xlu1 %v1010_v0, %s2049_s26  ;;  %v1412_v59 = vor.u32 %v1411_v23, %v1407_v37 }
  0xbd   : > { %v762_v13 = vpop.permute.xlu0 %761 }
  0xbe   : > { %806 = vst.msk [vmem:[#allocation2 + $0x28] sm:$0xf] %vm795_vm9, %v762_v13  ;;  %v1016_v56 = vpop.permute.xlu1 %1015  ;;  %v422_v13 = vrot.slane %v420_v42, 4  ;;  %v922_v42 = vshll.u32 %v823_v62, 16 }
  0xbf   : > { %660 = vrot.lane.b32.xlu0 %v610_v44, %s2046_s23  ;;  %1068 = vst.msk [vmem:[#allocation2 + $0x8] sm:$0xf] %vm1065_vm10, %v1016_v56  ;;  %v412_v56 = vrot.slane %v410_v3, 4 }
  0xc0   : > { %755 = vrot.lane.b32.xlu1 %v712_v55, %s2046_s23  ;;  %v423_v6 = vor.u32 %v422_v13, %v2740_v26  ;;  %v714_v13 = vld [vmem:[%s2095_s22 + $0x24] sm:$0xf] }
  0xc1   : > { %v1042_v50 = vpop.permute.xlu0 %1041 }
  0xc2   : > { %1081 = vst.msk [vmem:[#allocation2 + $0x3c] sm:$0xf] %vm1065_vm10, %v1042_v50  ;;  %v1032_v63 = vpop.permute.xlu1 %1031  ;;  %v1415_v50 = vshll.u32 %v2738_v10, 16  ;;  %v424_v20 = vrot.slane %v423_v6, 4 }
  0xc3   : > { %753 = vrot.lane.b32.xlu0 %v711_v52, %s2046_s23  ;;  %1076 = vst.msk [vmem:[#allocation2 + $0x28] sm:$0xf] %vm1065_vm10, %v1032_v63  ;;  %v239_v52 = vld [vmem:[%s2095_s22 + $0x20] sm:$0xf]  ;;  %v1408_v63 = vsel %vm2124_vm2, %v1403_v57, %v1407_v37  ;;  %v924_v37 = vrot.slane %v922_v42, 5 }
  0xc4   : > { %1023 = vrot.lane.b32.xlu1 %v905_v58, %s2049_s26  ;;  %258 = vst.msk [vmem:[#allocation2 + $0x20] sm:$0xf] %vm249_vm3, %v239_v52  ;;  %v276_v58 = vld [vmem:[%s2095_s22 + $0x20] sm:$0xf]  ;;  %v2770_v17 = vrot.slane %v1415_v50, 5  ;;  %v429_v34 = vsel %vm2124_vm2, %v424_v20, %v2193_v51  ;;  %v494_v51 = vrot.slane %v493_v21, 4 }
  0xc5   : > { %v1018_v18 = vpop.permute.xlu0 %1017  ;;  %295 = vst.msk [vmem:[#allocation2 + $0x20] sm:$0xf] %vm286_vm4, %v276_v58  ;;  %v612_v21 = vld [vmem:[%s2095_s22 + $0x40] sm:$0xf] }
  0xc6   : > { %1069 = vst.msk [vmem:[#allocation2 + $0xc] sm:$0xf] %vm1065_vm10, %v1018_v18  ;;  %v1164_v11 = vpop.permute.xlu1 %1163  ;;  %v2763_v18 = vrot.slane %v1567_v4, 5  ;;  %v499_v14 = vsel %vm2124_vm2, %v494_v51, %v2139_v47 }
  0xc7   : > { %769 = vrot.lane.b32.xlu0 %v719_v2, %s2046_s23  ;;  %1197 = vst.msk [vmem:[#allocation2 + $0x3c] sm:$0xf] %vm1181_vm11, %v1164_v11  ;;  %v1483_v2 = vrot.slane %v1482_v28, 4  ;;  %v413_v11 = vor.u32 %v412_v56, %v2656_v12  ;;  %v713_v56 = vld [vmem:[%s2095_s22 + $0x20] sm:$0xf] }
  0xc8   : > { %1039 = vrot.lane.b32.xlu1 %v985_v54, %s2049_s26  ;;  %v247_v54 = vld [vmem:[%s2095_s22 + $0x40] sm:$0xf] }
  0xc9   : > { %v1034_v1 = vpop.permute.xlu0 %1033  ;;  %266 = vst.msk [vmem:[#allocation2 + $0x40] sm:$0xf] %vm249_vm3, %v247_v54  ;;  %vm1559_vm3 = vmand %vm1542_vm14, %vm323_vm0 }
  0xca   : > { %1077 = vst.msk [vmem:[#allocation2 + $0x2c] sm:$0xf] %vm1065_vm10, %v1034_v1  ;;  %v1140_v7 = vpop.permute.xlu1 %1139 }
  0xcb   : > { %1025 = vrot.lane.b32.xlu0 %v915_v30, %s2049_s26  ;;  %1185 = vst.msk [vmem:[#allocation2 + $0xc] sm:$0xf] %vm1181_vm11, %v1140_v7  ;;  %v1413_v30 = vrot.slane %v1412_v59, 4  ;;  %v593_v7 = vld [vmem:[#allocation2 + $0x44] sm:$0x8] }
  0xcc   : > { %1147 = vrot.lane.b32.xlu1 %v1108_v32, %s2047_s24  ;;  %v1488_v32 = vsel %vm2124_vm2, %v1483_v2, %v2567_v25  ;;  %303 = vst.msk [vmem:[#allocation2 + $0x40] sm:$0xf] %vm286_vm4, %v284_v5 }
  0xcd   : > { %v1138_v36 = vpop.permute.xlu0 %1137  ;;  %v1418_v25 = vsel %vm2124_vm2, %v1413_v30, %v2770_v17  ;;  %v1570_v30 = vshrl.u32 %v2734_v46, 16 }
  0xce   : > { %1184 = vst.msk [vmem:[#allocation2 + $0x8] sm:$0xf] %vm1181_vm11, %v1138_v36  ;;  %v1156_v0 = vpop.permute.xlu1 %1155 }
  0xcf   : > { %1145 = vrot.lane.b32.xlu0 %v1107_v16, %s2047_s24  ;;  %1193 = vst.msk [vmem:[#allocation2 + $0x2c] sm:$0xf] %vm1181_vm11, %v1156_v0  ;;  %v414_v16 = vrot.slane %v413_v11, 4  ;;  %v926_v0 = vshrl.u32 %v823_v62, 16  ;;  %v1109_v11 = vld [vmem:[%s2095_s22 + $0x28] sm:$0xf] }
  0xd0   : > { %1254 = vrot.lane.b32.xlu1 %v1216_v38, %s2047_s24 }
  0xd1   : > { %v1154_v44 = vpop.permute.xlu0 %1153  ;;  %v419_v36 = vsel %vm2124_vm2, %v414_v16, %v2740_v26  ;;  %v928_v23 = vrot.slane %v926_v0, 4  ;;  %v1219_v0 = vld [vmem:[%s2095_s22 + $0x2c] sm:$0xf] }
  0xd2   : > { %1192 = vst.msk [vmem:[#allocation2 + $0x28] sm:$0xf] %vm1181_vm11, %v1154_v44  ;;  %v1247_v55 = vpop.permute.xlu1 %1246  ;;  %v605_v44 = vld [vmem:[%s2095_s22 + $0x24] sm:$0xf] }
  0xd3   : > { %1161 = vrot.lane.b32.xlu0 %v1115_v43, %s2047_s24  ;;  %1293 = vst.msk [vmem:[#allocation2 + $0x8] sm:$0xf] %vm1290_vm12, %v1247_v55  ;;  %v916_v43 = vshrl.u32 %v2687_v33, 16  ;;  %v929_v55 = vor.u32 %v928_v23, %v924_v37  ;;  %v1308_v23 = vld [vmem:[%s2376_s14 + $0x4] sm:$0xf] }
  0xd4   : > { %1270 = vrot.lane.b32.xlu1 %v1224_v48, %s2047_s24  ;;  %v1088_v48 = vld [vmem:[%s2376_s14] sm:$0x1] }
  0xd5   : > { %v1273_v61 = vpop.permute.xlu0 %1272  ;;  %v918_v33 = vrot.slane %v916_v43, 4  ;;  %v1090_v57 = vshll.u32 %v1088_v48, 16  ;;  %v930_v59 = vrot.slane %v929_v55, 4 }
  0xd6   : > { %1306 = vst.msk [vmem:[#allocation2 + $0x3c] sm:$0xf] %vm1290_vm12, %v1273_v61  ;;  %v1263_v9 = vpop.permute.xlu1 %1262 }
  0xd7   : > { %1256 = vrot.lane.b32.xlu0 %v1217_v41, %s2047_s24  ;;  %1301 = vst.msk [vmem:[#allocation2 + $0x28] sm:$0xf] %vm1290_vm12, %v1263_v9  ;;  %v919_v45 = vor.u32 %v918_v33, %v2702_v8  ;;  %v1092_v4 = vrot.slane %v1090_v57, 5  ;;  %v721_v8 = vld [vmem:[%s2095_s22 + $0x40] sm:$0xf]  ;;  %v1419_v9 = vshrl.u32 %v2738_v10, 16 }
  0xd8   : > { %1506 = vrot.lane.b32.xlu1 %v1408_v63, %s2050_s27  ;;  %v935_v63 = vsel %vm2124_vm2, %v930_v59, %v2251_v40 }
  0xd9   : > { %v1249_v1 = vpop.permute.xlu0 %1248  ;;  %v920_v58 = vrot.slane %v919_v45, 4  ;;  %v1421_v10 = vrot.slane %v1419_v9, 4 }
  0xda   : > { %1294 = vst.msk [vmem:[#allocation2 + $0xc] sm:$0xf] %vm1290_vm12, %v1249_v1  ;;  %v588_v12 = vpop.permute.xlu1 %587  ;;  %v1198_v1 = vld [vmem:[%s2376_s14] sm:$0xf] }
  0xdb   : > { %1590 = vrot.lane.b32.xlu0 %v2763_v18, %s2050_s27  ;;  %v594_v27 = vsel %vm592_vm13, %v588_v12, %v593_v7  ;;  %v925_v6 = vsel %vm2124_vm2, %v920_v58, %v924_v37  ;;  %v1110_v12 = vld [vmem:[%s2095_s22 + $0x2c] sm:$0xf]  ;;  %v1422_v16 = vor.u32 %v1421_v10, %v2770_v17  ;;  %v1307_v17 = vld [vmem:[%s2376_s14] sm:$0xf]  ;;  %vm1097_vm13 = vmand %vm1096_vm1, %vm591_vm5 }
  0xdc   : > { %595 = vst [vmem:[#allocation2 + $0x44] sm:$0x8] %v594_v27  ;;  %1522 = vrot.lane.b32.xlu1 %v1488_v32, %s2050_s27  ;;  %v1328_v32 = vld [vmem:[%s2095_s22 + $0x2c] sm:$0xf] }
  0xdd   : > { %v1265_v31 = vpop.permute.xlu0 %1264  ;;  %v1425_v46 = vshll.u32 %v1328_v32, 16  ;;  %v1429_v7 = vshrl.u32 %v1328_v32, 16  ;;  %v1560_v59 = vld [vmem:[#allocation2 + $0x3c] sm:$0xf] }
  0xde   : > { %1302 = vst.msk [vmem:[#allocation2 + $0x2c] sm:$0xf] %vm1290_vm12, %v1265_v31  ;;  %v1501_v22 = vpop.permute.xlu1 %1500  ;;  %v1564_v31 = vld [vmem:[%s2376_s14 + $0x4] sm:$0xf] }
  0xdf   : > { %1508 = vrot.lane.b32.xlu0 %v1418_v25, %s2050_s27  ;;  %1546 = vst.msk [vmem:[#allocation2 + $0xc] sm:$0xf] %vm1542_vm14, %v1501_v22  ;;  %v1218_v25 = vld [vmem:[%s2095_s22 + $0x28] sm:$0xf]  ;;  %v1427_v60 = vrot.slane %v1425_v46, 5  ;;  %v1576_v62 = vshll.u32 %v1564_v31, 16  ;;  %s2968_s22 = scalar_lea.vmem %s3028_s4, %s1926_s16 }
  0xe0   : > { %523 = vrot.lane.b32.xlu1 %v429_v34, %s2048_s25  ;;  %v1572_v34 = vrot.slane %v1570_v30, 4 }
  0xe1   : > { %v1499_v38 = vpop.permute.xlu0 %1498  ;;  %v1578_v43 = vrot.slane %v1576_v62, 5 }
  0xe2   : > { %1545 = vst.msk [vmem:[#allocation2 + $0x8] sm:$0xf] %vm1542_vm14, %v1499_v38  ;;  %v1517_v3 = vpop.permute.xlu1 %1516  ;;  %v1423_v38 = vrot.slane %v1422_v16, 4 }
  0xe3   : > { %521 = vrot.lane.b32.xlu0 %v419_v36, %s2048_s25  ;;  %1554 = vst.msk [vmem:[#allocation2 + $0x2c] sm:$0xf] %vm1542_vm14, %v1517_v3  ;;  %v1580_v36 = vshrl.u32 %v1564_v31, 16 }
  0xe4   : > { %648 = vrot.lane.b32.xlu1 %v604_v39, %s2046_s23  ;;  %v1573_v39 = vor.u32 %v1572_v34, %v2763_v18  ;;  %v1565_v18 = vld [vmem:[%s2376_s14 + $0x8] sm:$0x1] }
  0xe5   : > { %v1515_v15 = vpop.permute.xlu0 %1514 }
  0xe6   : > { %1553 = vst.msk [vmem:[#allocation2 + $0x28] sm:$0xf] %vm1542_vm14, %v1515_v15  ;;  %v516_v28 = vpop.permute.xlu1 %515  ;;  %v1574_v48 = vrot.slane %v1573_v39, 4 }
  0xe7   : > { %537 = vrot.lane.b32.xlu0 %v499_v14, %s2048_s25  ;;  %565 = vst.msk [vmem:[#allocation2 + $0x14] sm:$0xf] %vm559_vm7, %v516_v28  ;;  %v1582_v14 = vrot.slane %v1580_v36, 4 }
  0xe8   : > { %664 = vrot.lane.b32.xlu1 %v612_v21, %s2046_s23  ;;  %v1428_v21 = vsel %vm2124_vm2, %v1423_v38, %v1427_v60 }
  0xe9   : > { %v514_v47 = vpop.permute.xlu0 %513  ;;  %v2030_v26 = vld [vmem:[#allocation2 + $0x8] sm:$0xff]   ;;  %v1583_v33 = vor.u32 %v1582_v14, %v1578_v43 }
  0xea   : > { %564 = vst.msk [vmem:[#allocation2 + $0x10] sm:$0xf] %vm559_vm7, %v514_v47  ;;  %v532_v19 = vpop.permute.xlu1 %531  ;;  %1974 = vmatmul.mubr.msk.bf16.gmra.mxu0 %vm1696_vm15, %v2030_v26  ;;  %v1579_v47 = vsel %vm2124_vm2, %v1574_v48, %v1578_v43 }
  0xeb   : > { %650 = vrot.lane.b32.xlu0 %v605_v44, %s2046_s23  ;;  %573 = vst.msk [vmem:[#allocation2 + $0x34] sm:$0xf] %vm559_vm7, %v532_v19  ;;  %1977 = vmatprep.mubr.msk.bf16.mxu0 %vm2052_vm6, %v2051_v24  ;;  %v1586_v44 = vshll.u32 %v1565_v18, 16  ;;  %v1584_v55 = vrot.slane %v1583_v33, 4 }
  0xec   : > { %759 = vrot.lane.b32.xlu1 %v714_v13, %s2046_s23 }
  0xed   : > { %v530_v52 = vpop.permute.xlu0 %529  ;;  %v2031_v41 = vld [vmem:[#allocation2 + $0x28] sm:$0xff]   ;;  %v1588_v19 = vrot.slane %v1586_v44, 5 }
  0xee   : > { %572 = vst.msk [vmem:[#allocation2 + $0x30] sm:$0xf] %vm559_vm7, %v530_v52  ;;  %v641_v50 = vpop.permute.xlu1 %640  ;;  %1990 = vmatmul.mubr.msk.bf16.vlgmr.msra.gmra.mxu1 %vm1696_vm15, %v2031_v41 }
  0xef   : > { %757 = vrot.lane.b32.xlu0 %v713_v56, %s2046_s23  ;;  %691 = vst.msk [vmem:[#allocation2 + $0x10] sm:$0xf] %vm686_vm8, %v641_v50  ;;  %1993 = vmatprep.mubr.msk.bf16.mxu1 %vm2052_vm6, %v2051_v24 }
  0xf0   : > { %1093 = vrot.lane.b32.xlu1 %v1092_v4, %s2049_s26  ;;  %v1589_v4 = vsel %vm2124_vm2, %v1584_v55, %v1588_v19 }
  0xf1   : > { %v667_v61 = vpop.permute.xlu0 %666 }
  0xf2   : > { %704 = vst.msk [vmem:[#allocation2 + $0x44] sm:$0xf] %vm686_vm8, %v667_v61  ;;  %v657_v2 = vpop.permute.xlu1 %656 }
  0xf3   : > { %773 = vrot.lane.b32.xlu0 %v721_v8, %s2046_s23  ;;  %699 = vst.msk [vmem:[#allocation2 + $0x30] sm:$0xf] %vm686_vm8, %v657_v2 }
  0xf4   : > { %1029 = vrot.lane.b32.xlu1 %v935_v63, %s2049_s26 }
  0xf5   : > { %v643_v54 = vpop.permute.xlu0 %642 }
  0xf6   : > { %692 = vst.msk [vmem:[#allocation2 + $0x14] sm:$0xf] %vm686_vm8, %v643_v54  ;;  %v776_v40 = vpop.permute.xlu1 %775 }
  0xf7   : > { %1027 = vrot.lane.b32.xlu0 %v925_v6, %s2049_s26  ;;  %813 = vst.msk [vmem:[#allocation2 + $0x44] sm:$0xf] %vm795_vm9, %v776_v40 }
  0xf8   : > { %1149 = vrot.lane.b32.xlu1 %v1109_v11, %s2047_s24 }
  0xf9   : > { %v659_v5 = vpop.permute.xlu0 %658 }
  0xfa   : > { %700 = vst.msk [vmem:[#allocation2 + $0x34] sm:$0xf] %vm686_vm8, %v659_v5  ;;  %v752_v20 = vpop.permute.xlu1 %751 }
  0xfb   : > { %1043 = vrot.lane.b32.xlu0 %v1005_v35, %s2049_s26  ;;  %801 = vst.msk [vmem:[#allocation2 + $0x14] sm:$0xf] %vm795_vm9, %v752_v20  ;;  %v1431_v35 = vrot.slane %v1429_v7, 4 }
  0xfc   : > { %1202 = vrot.lane.b32.xlu1 %v1198_v1, %s2047_s24 }
  0xfd   : > { %v750_v27 = vpop.permute.xlu0 %749  ;;  %v1432_v3 = vor.u32 %v1431_v35, %v1427_v60 }
  0xfe   : > { %800 = vst.msk [vmem:[#allocation2 + $0x10] sm:$0xf] %vm795_vm9, %v750_v27  ;;  %v768_v22 = vpop.permute.xlu1 %767  ;;  %v1085_v10 = vld [vmem:[#allocation2 + $0x44] sm:$0xf] }
  0xff   : > { %1151 = vrot.lane.b32.xlu0 %v1110_v12, %s2047_s24  ;;  %809 = vst.msk [vmem:[#allocation2 + $0x34] sm:$0xf] %vm795_vm9, %v768_v22  ;;  %v1433_v28 = vrot.slane %v1432_v3, 4 }
 0x100   : > { %1258 = vrot.lane.b32.xlu1 %v1218_v25, %s2047_s24 }
 0x101   : > { %v766_v51 = vpop.permute.xlu0 %765  ;;  %v1438_v13 = vsel %vm2124_vm2, %v1433_v28, %v2412_v49  ;;  %vm1084_vm2 = vmand %vm1065_vm10, %vm323_vm0  ;;  %vm1599_vm0 = vcmask 290051  }
 0x102   : > { %808 = vst.msk [vmem:[#allocation2 + $0x30] sm:$0xf] %vm795_vm9, %v766_v51  ;;  %v1022_v42 = vpop.permute.xlu1 %1021  ;;  %vm1600_vm4 = vmand %vm1599_vm0, %vm591_vm5 }
 0x103   : > { %1204 = vrot.lane.b32.xlu0 %v1199_v53, %s2047_s24  ;;  %1071 = vst.msk [vmem:[#allocation2 + $0x14] sm:$0xf] %vm1065_vm10, %v1022_v42 }
 0x104   : > { %1311 = vrot.lane.b32.xlu1 %v1307_v17, %s2047_s24 }
 0x105   : > { %v1020_v15 = vpop.permute.xlu0 %1019 }
 0x106   : > { %1070 = vst.msk [vmem:[#allocation2 + $0x10] sm:$0xf] %vm1065_vm10, %v1020_v15  ;;  %v1038_v37 = vpop.permute.xlu1 %1037 }
 0x107   : > { %1260 = vrot.lane.b32.xlu0 %v1219_v0, %s2047_s24  ;;  %1079 = vst.msk [vmem:[#allocation2 + $0x34] sm:$0xf] %vm1065_vm10, %v1038_v37 }
 0x108   : > { %1510 = vrot.lane.b32.xlu1 %v1428_v21, %s2050_s27 }
 0x109   : > { %v1036_v57 = vpop.permute.xlu0 %1035 }
 0x10a   : > { %1078 = vst.msk [vmem:[#allocation2 + $0x30] sm:$0xf] %vm1065_vm10, %v1036_v57  ;;  %v1144_v26 = vpop.permute.xlu1 %1143 }
 0x10b   : > { %1313 = vrot.lane.b32.xlu0 %v1308_v23, %s2047_s24  ;;  %1187 = vst.msk [vmem:[#allocation2 + $0x14] sm:$0xf] %vm1181_vm11, %v1144_v26  ;;  %v2962_v26 = vld [vmem:[%s3027_s3] ss:$0 sm:$0xff] }
 0x10c   : > { %1592 = vrot.lane.b32.xlu1 %v1579_v47, %s2050_s27 }
 0x10d   : > { %v1142_v45 = vpop.permute.xlu0 %1141 }
 0x10e   : > { %1186 = vst.msk [vmem:[#allocation2 + $0x10] sm:$0xf] %vm1181_vm11, %v1142_v45  ;;  %v1160_v56 = vpop.permute.xlu1 %1159 }
 0x10f   : > { %1512 = vrot.lane.b32.xlu0 %v1438_v13, %s2050_s27  ;;  %1195 = vst.msk [vmem:[#allocation2 + $0x34] sm:$0xf] %vm1181_vm11, %v1160_v56 }
 0x111   : > { %v1158_v52 = vpop.permute.xlu0 %1157 }
 0x112   : > { %1194 = vst.msk [vmem:[#allocation2 + $0x30] sm:$0xf] %vm1181_vm11, %v1158_v52  ;;  %v1251_v41 = vpop.permute.xlu1 %1250 }
 0x113   : > { %1594 = vrot.lane.b32.xlu0 %v1589_v4, %s2050_s27  ;;  %1295 = vst.msk [vmem:[#allocation2 + $0x10] sm:$0xf] %vm1290_vm12, %v1251_v41 }
 0x115   : > { %v1525_v49 = vpop.permute.xlu0 %1524 }
 0x116   : > { %v1561_v50 = vsel %vm1559_vm3, %v1525_v49, %v1560_v59  ;;  %v1267_v8 = vpop.permute.xlu1 %1266 }
 0x117   : > { %1562 = vst [vmem:[#allocation2 + $0x3c] sm:$0xf] %v1561_v50  ;;  %1303 = vst.msk [vmem:[#allocation2 + $0x30] sm:$0xf] %vm1290_vm12, %v1267_v8 }
 0x119   : > { %v1253_v29 = vpop.permute.xlu0 %1252 }
 0x11a   : > { %1296 = vst.msk [vmem:[#allocation2 + $0x14] sm:$0xf] %vm1290_vm12, %v1253_v29  ;;  %v1503_v58 = vpop.permute.xlu1 %1502 }
 0x11b   : > { %1547 = vst.msk [vmem:[#allocation2 + $0x10] sm:$0xf] %vm1542_vm14, %v1503_v58 }
 0x11d   : > { %v1269_v61 = vpop.permute.xlu0 %1268 }
 0x11e   : > { %1304 = vst.msk [vmem:[#allocation2 + $0x34] sm:$0xf] %vm1290_vm12, %v1269_v61  ;;  %v1519_v63 = vpop.permute.xlu1 %1518  ;;  %v1601_v17 = vld [vmem:[#allocation2 + $0x3c] sm:$0x8] }
 0x11f   : > { %1555 = vst.msk [vmem:[#allocation2 + $0x30] sm:$0xf] %vm1542_vm14, %v1519_v63 }
 0x121   : > { %v1505_v2 = vpop.permute.xlu0 %1504 }
 0x122   : > { %1548 = vst.msk [vmem:[#allocation2 + $0x14] sm:$0xf] %vm1542_vm14, %v1505_v2  ;;  %v518_v6 = vpop.permute.xlu1 %517 }
 0x123   : > { %566 = vst.msk [vmem:[#allocation2 + $0x18] sm:$0xf] %vm559_vm7, %v518_v6 }
 0x125   : > { %v1521_v9 = vpop.permute.xlu0 %1520 }
 0x126   : > { %1556 = vst.msk [vmem:[#allocation2 + $0x34] sm:$0xf] %vm1542_vm14, %v1521_v9  ;;  %v534_v54 = vpop.permute.xlu1 %533 }
 0x127   : > { %574 = vst.msk [vmem:[#allocation2 + $0x38] sm:$0xf] %vm559_vm7, %v534_v54 }
 0x129   : > { %v520_v11 = vpop.permute.xlu0 %519  ;;  %v2032_v40 = vld [vmem:[#allocation2 + $0x10] sm:$0xff]  }
 0x12a   : > { %567 = vst.msk [vmem:[#allocation2 + $0x1c] sm:$0xf] %vm559_vm7, %v520_v11  ;;  %v647_v30 = vpop.permute.xlu1 %646  ;;  %1978 = vmatmul.mubr.msk.bf16.gmra.mxu0 %vm1696_vm15, %v2032_v40 }
 0x12b   : > { %694 = vst.msk [vmem:[#allocation2 + $0x1c] sm:$0xf] %vm686_vm8, %v647_v30  ;;  %1981 = vmatprep.mubr.msk.bf16.mxu0 %vm2052_vm6, %v2051_v24 }
 0x12d   : > { %v645_v5 = vpop.permute.xlu0 %644  ;;  %v2033_v1 = vld [vmem:[#allocation2 + $0x30] sm:$0xff]  }
 0x12e   : > { %693 = vst.msk [vmem:[#allocation2 + $0x18] sm:$0xf] %vm686_vm8, %v645_v5  ;;  %v1046_v32 = vpop.permute.xlu1 %1045  ;;  %1994 = vmatmul.mubr.msk.bf16.gmra.mxu1 %vm1696_vm15, %v2033_v1 }
 0x12f   : > { %v1086_v20 = vsel %vm1084_vm2, %v1046_v32, %v1085_v10  ;;  %1997 = vmatprep.mubr.msk.bf16.mxu1 %vm2052_vm6, %v2051_v24 }
 0x130   : > { %1087 = vst [vmem:[#allocation2 + $0x44] sm:$0xf] %v1086_v20 }
 0x131   : > { %v661_v12 = vpop.permute.xlu0 %660 }
 0x132   : > { %701 = vst.msk [vmem:[#allocation2 + $0x38] sm:$0xf] %vm686_vm8, %v661_v12  ;;  %v756_v46 = vpop.permute.xlu1 %755 }
 0x133   : > { %803 = vst.msk [vmem:[#allocation2 + $0x1c] sm:$0xf] %vm795_vm9, %v756_v46 }
 0x135   : > { %v754_v7 = vpop.permute.xlu0 %753 }
 0x136   : > { %802 = vst.msk [vmem:[#allocation2 + $0x18] sm:$0xf] %vm795_vm9, %v754_v7  ;;  %v1024_v27 = vpop.permute.xlu1 %1023 }
 0x137   : > { %1072 = vst.msk [vmem:[#allocation2 + $0x18] sm:$0xf] %vm1065_vm10, %v1024_v27  ;;  %v1098_v33 = vld [vmem:[#allocation2 + $0x44] sm:$0x8] }
 0x139   : > { %v770_v25 = vpop.permute.xlu0 %769 }
 0x13a   : > { %810 = vst.msk [vmem:[#allocation2 + $0x38] sm:$0xf] %vm795_vm9, %v770_v25  ;;  %v1040_v16 = vpop.permute.xlu1 %1039 }
 0x13b   : > { %1080 = vst.msk [vmem:[#allocation2 + $0x38] sm:$0xf] %vm1065_vm10, %v1040_v16 }
 0x13d   : > { %v1026_v31 = vpop.permute.xlu0 %1025 }
 0x13e   : > { %1073 = vst.msk [vmem:[#allocation2 + $0x1c] sm:$0xf] %vm1065_vm10, %v1026_v31  ;;  %v1148_v34 = vpop.permute.xlu1 %1147 }
 0x13f   : > { %1189 = vst.msk [vmem:[#allocation2 + $0x1c] sm:$0xf] %vm1181_vm11, %v1148_v34 }
 0x141   : > { %v1146_v22 = vpop.permute.xlu0 %1145 }
 0x142   : > { %1188 = vst.msk [vmem:[#allocation2 + $0x18] sm:$0xf] %vm1181_vm11, %v1146_v22  ;;  %v1255_v53 = vpop.permute.xlu1 %1254 }
 0x143   : > { %1297 = vst.msk [vmem:[#allocation2 + $0x18] sm:$0xf] %vm1290_vm12, %v1255_v53 }
 0x145   : > { %v1162_v60 = vpop.permute.xlu0 %1161 }
 0x146   : > { %1196 = vst.msk [vmem:[#allocation2 + $0x38] sm:$0xf] %vm1181_vm11, %v1162_v60  ;;  %v1271_v35 = vpop.permute.xlu1 %1270 }
 0x147   : > { %1305 = vst.msk [vmem:[#allocation2 + $0x38] sm:$0xf] %vm1290_vm12, %v1271_v35 }
 0x149   : > { %v1257_v62 = vpop.permute.xlu0 %1256 }
 0x14a   : > { %1298 = vst.msk [vmem:[#allocation2 + $0x1c] sm:$0xf] %vm1290_vm12, %v1257_v62  ;;  %v1507_v36 = vpop.permute.xlu1 %1506 }
 0x14b   : > { %1549 = vst.msk [vmem:[#allocation2 + $0x18] sm:$0xf] %vm1542_vm14, %v1507_v36 }
 0x14d   : > { %v1591_v51 = vpop.permute.xlu0 %1590 }
 0x14e   : > { %v1602_v38 = vsel %vm1600_vm4, %v1591_v51, %v1601_v17  ;;  %v1523_v39 = vpop.permute.xlu1 %1522 }
 0x14f   : > { %1603 = vst [vmem:[#allocation2 + $0x3c] sm:$0x8] %v1602_v38  ;;  %1557 = vst.msk [vmem:[#allocation2 + $0x38] sm:$0xf] %vm1542_vm14, %v1523_v39 }
 0x151   : > { %v1509_v42 = vpop.permute.xlu0 %1508 }
 0x152   : > { %1550 = vst.msk [vmem:[#allocation2 + $0x1c] sm:$0xf] %vm1542_vm14, %v1509_v42  ;;  %v524_v0 = vpop.permute.xlu1 %523 }
 0x153   : > { %569 = vst.msk [vmem:[#allocation2 + $0x24] sm:$0xf] %vm559_vm7, %v524_v0 }
 0x155   : > { %v522_v3 = vpop.permute.xlu0 %521 }
 0x156   : > { %568 = vst.msk [vmem:[#allocation2 + $0x20] sm:$0xf] %vm559_vm7, %v522_v3  ;;  %v649_v43 = vpop.permute.xlu1 %648  ;;  %v2034_v14 = vld [vmem:[#allocation2 + $0x38] sm:$0xff]  }
 0x157   : > { %695 = vst.msk [vmem:[#allocation2 + $0x20] sm:$0xf] %vm686_vm8, %v649_v43  ;;  %1998 = vmatmul.mubr.msk.bf16.gmra.mxu1 %vm1696_vm15, %v2034_v14 }
 0x158   : > { %2001 = vmatprep.mubr.msk.bf16.mxu1 %vm2052_vm6, %v2051_v24 }
 0x159   : > { %v538_v15 = vpop.permute.xlu0 %537  ;;  %v2035_v21 = vld [vmem:[#allocation2 + $0x18] sm:$0xff]  }
 0x15a   : > { %576 = vst.msk [vmem:[#allocation2 + $0x40] sm:$0xf] %vm559_vm7, %v538_v15  ;;  %v665_v48 = vpop.permute.xlu1 %664  ;;  %1982 = vmatmul.mubr.msk.bf16.gmra.mxu0 %vm1696_vm15, %v2035_v21 }
 0x15b   : > { %703 = vst.msk [vmem:[#allocation2 + $0x40] sm:$0xf] %vm686_vm8, %v665_v48  ;;  %1985 = vmatprep.mubr.msk.bf16.mxu0 %vm2052_vm6, %v2051_v24 }
 0x15d   : > { %v651_v18 = vpop.permute.xlu0 %650 }
 0x15e   : > { %696 = vst.msk [vmem:[#allocation2 + $0x24] sm:$0xf] %vm686_vm8, %v651_v18  ;;  %v760_v37 = vpop.permute.xlu1 %759 }
 0x15f   : > { %805 = vst.msk [vmem:[#allocation2 + $0x24] sm:$0xf] %vm795_vm9, %v760_v37 }
 0x161   : > { %v758_v23 = vpop.permute.xlu0 %757 }
 0x162   : > { %804 = vst.msk [vmem:[#allocation2 + $0x20] sm:$0xf] %vm795_vm9, %v758_v23  ;;  %v1094_v28 = vpop.permute.xlu1 %1093 }
 0x163   : > { %v1099_v44 = vsel %vm1097_vm13, %v1094_v28, %v1098_v33 }
 0x164   : > { %1100 = vst [vmem:[#allocation2 + $0x44] sm:$0x8] %v1099_v44 }
 0x165   : > { %v774_v57 = vpop.permute.xlu0 %773 }
 0x166   : > { %812 = vst.msk [vmem:[#allocation2 + $0x40] sm:$0xf] %vm795_vm9, %v774_v57  ;;  %v1030_v24 = vpop.permute.xlu1 %1029 }
 0x167   : > { %1075 = vst.msk [vmem:[#allocation2 + $0x24] sm:$0xf] %vm1065_vm10, %v1030_v24 }
 0x169   : > { %v1028_v47 = vpop.permute.xlu0 %1027 }
 0x16a   : > { %1074 = vst.msk [vmem:[#allocation2 + $0x20] sm:$0xf] %vm1065_vm10, %v1028_v47  ;;  %v1150_v13 = vpop.permute.xlu1 %1149  ;;  %v1762_v55 = vpop.f32.mrf.mxu0 }
 0x16b   : > { %1190 = vst.msk [vmem:[#allocation2 + $0x20] sm:$0xf] %vm1181_vm11, %v1150_v13  ;;  %v1763_v19 = vadd.f32 %v2962_v26, %v1762_v55 }
 0x16c   : > { %v1971_v56 = vpop.f32.mrf.mxu0 }
 0x16d   : > { %v1044_v45 = vpop.permute.xlu0 %1043  ;;  %1833 = vst [vmem:[%s2968_s22] sm:$0xff] %v1763_v19 }
 0x16e   : > { %1082 = vst.msk [vmem:[#allocation2 + $0x40] sm:$0xf] %vm1065_vm10, %v1044_v45  ;;  %v1203_v4 = vpop.permute.xlu1 %1202  ;;  %v1765_v52 = vpop.f32.mrf.mxu0 }
 0x16f   : > { %1208 = vst.msk [vmem:[#allocation2 + $0x40] sm:$0xf] %vm1181_vm11, %v1203_v4  ;;  %v1766_v41 = vadd.f32 %v2962_v26, %v1765_v52 }
 0x170   : > { %v1972_v59 = vpop.f32.mrf.mxu0 }
 0x171   : > { %v1152_v49 = vpop.permute.xlu0 %1151  ;;  %1834 = vst [vmem:[%s2968_s22 + $0x8] sm:$0xff] %v1766_v41 }
 0x172   : > { %1191 = vst.msk [vmem:[#allocation2 + $0x24] sm:$0xf] %vm1181_vm11, %v1152_v49  ;;  %v1259_v50 = vpop.permute.xlu1 %1258 }
 0x173   : > { %1299 = vst.msk [vmem:[#allocation2 + $0x20] sm:$0xf] %vm1290_vm12, %v1259_v50 }
 0x175   : > { %v1205_v8 = vpop.permute.xlu0 %1204 }
 0x176   : > { %1209 = vst.msk [vmem:[#allocation2 + $0x44] sm:$0xf] %vm1181_vm11, %v1205_v8  ;;  %v1312_v29 = vpop.permute.xlu1 %1311 }
 0x177   : > { %1317 = vst.msk [vmem:[#allocation2 + $0x40] sm:$0xf] %vm1290_vm12, %v1312_v29 }
 0x179   : > { %v1261_v58 = vpop.permute.xlu0 %1260 }
 0x17a   : > { %1300 = vst.msk [vmem:[#allocation2 + $0x24] sm:$0xf] %vm1290_vm12, %v1261_v58  ;;  %v1511_v61 = vpop.permute.xlu1 %1510 }
 0x17b   : > { %1551 = vst.msk [vmem:[#allocation2 + $0x20] sm:$0xf] %vm1542_vm14, %v1511_v61 }
 0x17d   : > { %v1314_v63 = vpop.permute.xlu0 %1313 }
 0x17e   : > { %1318 = vst.msk [vmem:[#allocation2 + $0x44] sm:$0xf] %vm1290_vm12, %v1314_v63  ;;  %v1593_v2 = vpop.permute.xlu1 %1592 }
 0x17f   : > { %1604 = vst.msk [vmem:[#allocation2 + $0x40] sm:$0xf] %vm1542_vm14, %v1593_v2 }
 0x181   : > { %v1513_v6 = vpop.permute.xlu0 %1512 }
 0x182   : > { %1552 = vst.msk [vmem:[#allocation2 + $0x24] sm:$0xf] %vm1542_vm14, %v1513_v6 }
 0x185   : > { %v1595_v9 = vpop.permute.xlu0 %1594 }
 0x186   : > { %1605 = vst.msk [vmem:[#allocation2 + $0x44] sm:$0xf] %vm1542_vm14, %v1595_v9 }
 0x189   : > { %v2036_v54 = vld [vmem:[#allocation2 + $0x20] sm:$0xff]  }
 0x18a   : > { %1986 = vmatmul.mubr.msk.bf16.gmra.mxu0 %vm1696_vm15, %v2036_v54 }
 0x18d   : > { %v2037_v11 = vld [vmem:[#allocation2 + $0x40] sm:$0xff]  }
 0x18e   : > { %2002 = vmatmul.mubr.msk.bf16.gmra.mxu1 %vm1696_vm15, %v2037_v11 }
 0x1aa   : > { %v1770_v40 = vpop.f32.mrf.mxu0 }
 0x1ab   : > { %v1771_v30 = vadd.f32 %v2962_v26, %v1770_v40 }
 0x1ac   : > { %v1975_v5 = vpop.f32.mrf.mxu0 }
 0x1ad   : > { %1835 = vst [vmem:[%s2968_s22 + $0x10] sm:$0xff] %v1771_v30 }
 0x1ae   : > { %v1773_v1 = vpop.f32.mrf.mxu0  ;;  %v1802_v32 = vpop.f32.mrf.mxu1 }
 0x1af   : > { %v1774_v10 = vadd.f32 %v2962_v26, %v1773_v1  ;;  %v1803_v20 = vadd.f32 %v2962_v26, %v1802_v32 }
 0x1b0   : > { %v1976_v12 = vpop.f32.mrf.mxu0  ;;  %v1991_v46 = vpop.f32.mrf.mxu1 }
 0x1b1   : > { %1836 = vst [vmem:[%s2968_s22 + $0x18] sm:$0xff] %v1774_v10  ;;  %1843 = vst [vmem:[%s2968_s22 + $0x50] sm:$0xff] %v1803_v20 }
 0x1b2   : > { %v1805_v7 = vpop.f32.mrf.mxu1 }
 0x1b3   : > { %v1806_v27 = vadd.f32 %v2962_v26, %v1805_v7 }
 0x1b4   : > { %v1992_v25 = vpop.f32.mrf.mxu1 }
 0x1b5   : > { %1844 = vst [vmem:[%s2968_s22 + $0x58] sm:$0xff] %v1806_v27 }
 0x1ea   : > { %v1778_v16 = vpop.f32.mrf.mxu0 }
 0x1eb   : > { %v1779_v31 = vadd.f32 %v2962_v26, %v1778_v16 }
 0x1ec   : > { %v1979_v34 = vpop.f32.mrf.mxu0 }
 0x1ed   : > { %1837 = vst [vmem:[%s2968_s22 + $0x20] sm:$0xff] %v1779_v31 }
 0x1ee   : > { %v1781_v22 = vpop.f32.mrf.mxu0  ;;  %v1810_v53 = vpop.f32.mrf.mxu1 }
 0x1ef   : > { %v1782_v60 = vadd.f32 %v2962_v26, %v1781_v22  ;;  %v1811_v35 = vadd.f32 %v2962_v26, %v1810_v53 }
 0x1f0   : > { %v1980_v62 = vpop.f32.mrf.mxu0  ;;  %v1995_v36 = vpop.f32.mrf.mxu1 }
 0x1f1   : > { %1838 = vst [vmem:[%s2968_s22 + $0x28] sm:$0xff] %v1782_v60  ;;  %1845 = vst [vmem:[%s2968_s22 + $0x60] sm:$0xff] %v1811_v35 }
 0x1f2   : > { %v1813_v51 = vpop.f32.mrf.mxu1 }
 0x1f3   : > { %v1814_v17 = vadd.f32 %v2962_v26, %v1813_v51 }
 0x1f4   : > { %v1996_v38 = vpop.f32.mrf.mxu1 }
 0x1f5   : > { %1846 = vst [vmem:[%s2968_s22 + $0x68] sm:$0xff] %v1814_v17 }
 0x217   : > { %v1818_v39 = vpop.f32.mrf.mxu1 }
 0x218   : > { %v1819_v42 = vadd.f32 %v2962_v26, %v1818_v39 }
 0x219   : > { %v1999_v0 = vpop.f32.mrf.mxu1 }
 0x21a   : > { %1847 = vst [vmem:[%s2968_s22 + $0x70] sm:$0xff] %v1819_v42  ;;  %v1786_v3 = vpop.f32.mrf.mxu0 }
 0x21b   : > { %v1787_v43 = vadd.f32 %v2962_v26, %v1786_v3  ;;  %v1821_v14 = vpop.f32.mrf.mxu1 }
 0x21c   : > { %v1983_v15 = vpop.f32.mrf.mxu0  ;;  %v1822_v21 = vadd.f32 %v2962_v26, %v1821_v14 }
 0x21d   : > { %1839 = vst [vmem:[%s2968_s22 + $0x30] sm:$0xff] %v1787_v43  ;;  %v2000_v48 = vpop.f32.mrf.mxu1 }
 0x21e   : > { %1848 = vst [vmem:[%s2968_s22 + $0x78] sm:$0xff] %v1822_v21  ;;  %v1789_v18 = vpop.f32.mrf.mxu0 }
 0x21f   : > { %v1790_v37 = vadd.f32 %v2962_v26, %v1789_v18 }
 0x220   : > { %v1984_v23 = vpop.f32.mrf.mxu0 }
 0x221   : > { %1840 = vst [vmem:[%s2968_s22 + $0x38] sm:$0xff] %v1790_v37 }
 0x24a   : > { %v1794_v28 = vpop.f32.mrf.mxu0 }
 0x24b   : > { %v1795_v33 = vadd.f32 %v2962_v26, %v1794_v28 }
 0x24c   : > { %v1987_v44 = vpop.f32.mrf.mxu0 }
 0x24d   : > { %1841 = vst [vmem:[%s2968_s22 + $0x40] sm:$0xff] %v1795_v33 }
 0x24e   : > { %v1797_v57 = vpop.f32.mrf.mxu0  ;;  %v1826_v24 = vpop.f32.mrf.mxu1 }
 0x24f   : > { %v1798_v47 = vadd.f32 %v2962_v26, %v1797_v57  ;;  %v1827_v13 = vadd.f32 %v2962_v26, %v1826_v24 }
 0x250   : > { %v1988_v55 = vpop.f32.mrf.mxu0  ;;  %v2003_v19 = vpop.f32.mrf.mxu1 }
 0x251   : > { %1842 = vst [vmem:[%s2968_s22 + $0x48] sm:$0xff] %v1798_v47  ;;  %1849 = vst [vmem:[%s2968_s22 + $0x80] sm:$0xff] %v1827_v13 }
 0x252   : > { %v1829_v45 = vpop.f32.mrf.mxu1 }
 0x253   : > { %v1830_v56 = vadd.f32 %v2962_v26, %v1829_v45 }
 0x254   : > { %v2004_v4 = vpop.f32.mrf.mxu1 }
 0x255   : > { %1850 = vst [vmem:[%s2968_s22 + $0x88] sm:$0xff] %v1830_v56 }
 0x256 PF: > { %s14_s15 = sadd.s32 1, %s2044_s15  }
 0x257   : > { %p11_p6 = scmp.ge.s32.totalorder %s14_s15, 4  }
 0x259   :  { %13 = sbr.rel (!%p11_p6) target bundleno = 1 (0x1), region = 69 }

</bundles_post_ra>
